<compile_context>
chip_gen: v7x
topology: tpu7x:2x2x1
jax: 0.10.0
libtpu: 0.0.40
codegen_flags: <defaults>
</compile_context>

<pallas_src>
import functools

import jax
import jax.numpy as jnp
from jax import lax
from jax.experimental import pallas as pl
from jax.experimental.pallas import tpu as pltpu


def _spatial_attention_kernel(w_ref, x_ref, o_ref, stats_ref, *, K, pad, C, H, W):
    # w_ref     : (2*K*K,) f32 conv weights in SMEM, flat [ch, ki, kj] order;
    #             channel 0 (the "avg" channel) is pre-scaled by 1/C on host.
    # x_ref     : (C, H, W) unpadded input tile (native dtype), one batch elem
    # o_ref     : (C, H, W) output tile (native dtype)
    # stats_ref : (2, H+2*pad, W+2*pad) f32 VMEM scratch for the zero-padded
    #             [sum, max] statistics map (the conv input)
    Hp = H + 2 * pad
    Wp = W + 2 * pad
    f32 = jnp.float32

    # ---- channel-wise statistics (torch.mean / torch.max over dim=1) -------
    # Stream channels; never hold a full (C, H, W) f32 copy live.
    if C <= 32:
        x0 = x_ref[0].astype(f32)
        s, m = x0, x0
        for c in range(1, C):
            xc = x_ref[c].astype(f32)
            s = s + xc
            m = jnp.maximum(m, xc)
    else:
        def red_body(c, carry):
            s_acc, m_acc = carry
            xc = x_ref[c].astype(f32)
            return s_acc + xc, jnp.maximum(m_acc, xc)

        x0 = x_ref[0].astype(f32)
        s, m = lax.fori_loop(1, C, red_body, (x0, x0))

    # ---- zero-padded [sum, max] map in VMEM scratch (== conv2d zero pad) ---
    # Re-zero every step (tiny) so megacore grid partitioning stays correct.
    stats_ref[...] = jnp.zeros((2, Hp, Wp), f32)
    stats_ref[0, pad:pad + H, pad:pad + W] = s     # 1/C folded into weights
    stats_ref[1, pad:pad + H, pad:pad + W] = m

    # ---- KxK cross-correlation over the 2-channel map (VPU) ----------------
    # Lane (W) shift hoisted: one lane-offset load per j; only the sublane
    # offset i varies in the inner loop.
    acc = jnp.zeros((H, W), f32)
    for j in range(K):
        sum_j = stats_ref[0, :, j:j + W]          # (Hp, W)
        max_j = stats_ref[1, :, j:j + W]          # (Hp, W)
        for i in range(K):
            acc = acc + w_ref[i * K + j] * sum_j[i:i + H, :]
            acc = acc + w_ref[K * K + i * K + j] * max_j[i:i + H, :]

    att = jax.nn.sigmoid(acc)                     # (H, W), f32 (exact, tiny)

    # ---- out = sigmoid(conv) * x, streamed per channel ---------------------
    if C <= 32:
        for c in range(C):
            o_ref[c] = (x_ref[c].astype(f32) * att).astype(o_ref.dtype)
    else:
        def mul_body(c, carry):
            o_ref[c] = (x_ref[c].astype(f32) * att).astype(o_ref.dtype)
            return carry

        lax.fori_loop(0, C, mul_body, 0)


def spatial_attention(x, conv_weight, kernel_size=7):
    """x: (N, C, H, W); conv_weight: (1, 2, K, K) like nn.Conv2d(2, 1, K, bias=False)."""
    assert kernel_size in (3, 7), "kernel size must be 3 or 7"
    pad = 3 if kernel_size == 7 else 1
    N, C, H, W = x.shape
    Hp, Wp = H + 2 * pad, W + 2 * pad

    # Flat 1-D f32 weights -> SMEM (no (8,128) SMEM padding, simple sld reads).
    # Fold the 1/C of the channel mean into the avg-channel taps.
    w = conv_weight.astype(jnp.float32).reshape(2, kernel_size, kernel_size)
    w = w * jnp.array([1.0 / C, 1.0], jnp.float32)[:, None, None]
    w_flat = w.reshape(2 * kernel_size * kernel_size)

    kernel = functools.partial(
        _spatial_attention_kernel, K=kernel_size, pad=pad, C=C, H=H, W=W
    )

    # Explicit VMEM budget: double-buffered in + out blocks + stats scratch,
    # accounting for (8,128) tile padding of the last two dims.
    elem = jnp.dtype(x.dtype).itemsize
    Hs, Wl = -(-H // 8) * 8, -(-W // 128) * 128
    Hps, Wpl = -(-Hp // 8) * 8, -(-Wp // 128) * 128
    block_bytes = C * Hs * Wl * elem
    need = 4 * block_bytes + 2 * Hps * Wpl * 4 + (4 << 20)
    vmem_limit = int(min(max(need, 32 << 20), 128 << 20))

    return pl.pallas_call(
        kernel,
        out_shape=jax.ShapeDtypeStruct((N, C, H, W), x.dtype),
        grid=(N,),
        in_specs=[
            # small conv weights live untiled in SMEM (scalar reads per tap)
            pl.BlockSpec(memory_space=pltpu.MemorySpace.SMEM),
            # one (unpadded) batch element per grid step; batch dim squeezed
            pl.BlockSpec((None, C, H, W), lambda n: (n, 0, 0, 0)),
        ],
        out_specs=pl.BlockSpec((None, C, H, W), lambda n: (n, 0, 0, 0)),
        scratch_shapes=[pltpu.VMEM((2, Hp, Wp), jnp.float32)],
        compiler_params=pltpu.CompilerParams(
            dimension_semantics=("parallel",),
            vmem_limit_bytes=vmem_limit,
        ),
    )(w_flat, x)


def _reference(x, conv_weight, kernel_size=7):
    """Pure-JAX reference mirroring the PyTorch forward."""
    pad = 3 if kernel_size == 7 else 1
    avg = jnp.mean(x, axis=1, keepdims=True)
    mx = jnp.max(x, axis=1, keepdims=True)
    att_in = jnp.concatenate([avg, mx], axis=1)
    conv = lax.conv_general_dilated(
        att_in, conv_weight, window_strides=(1, 1),
        padding=[(pad, pad), (pad, pad)],
        dimension_numbers=("NCHW", "OIHW", "NCHW"),
    )
    return jax.nn.sigmoid(conv) * x


if __name__ == "__main__":
    key = jax.random.PRNGKey(0)
    kx, kw, kx2, kw2 = jax.random.split(key, 4)

    # Case 1: small image, K=7, unrolled-channel path.
    N, C, H, W, K = 2, 4, 16, 16, 7
    x = jax.random.normal(kx, (N, C, H, W), dtype=jnp.float32)
    conv_weight = 0.05 * jax.random.normal(kw, (1, 2, K, K), dtype=jnp.float32)
    out = jax.block_until_ready(spatial_attention(x, conv_weight, kernel_size=K))
    ref = _reference(x, conv_weight, kernel_size=K)
    assert out.shape == (N, C, H, W)
    assert jnp.allclose(out, ref, atol=1e-5, rtol=1e-5), "mismatch vs reference (K=7)"

    # Case 2: wide-C streamed (fori_loop) path, K=3, lane-dense W.
    N2, C2, H2, W2, K2 = 1, 40, 8, 128, 3
    x2 = jax.random.normal(kx2, (N2, C2, H2, W2), dtype=jnp.float32)
    conv_weight2 = 0.05 * jax.random.normal(kw2, (1, 2, K2, K2), dtype=jnp.float32)
    out2 = jax.block_until_ready(spatial_attention(x2, conv_weight2, kernel_size=K2))
    ref2 = _reference(x2, conv_weight2, kernel_size=K2)
    assert jnp.allclose(out2, ref2, atol=1e-5, rtol=1e-5), "mismatch vs reference (K=3)"

    print("KERNEL_OK")
</pallas_src>

<mosaic_0001>
module attributes {stable_mosaic.version = 11 : i64} {
  func.func @_spatial_attention_kernel(%arg0: i32, %arg1: memref<98xf32, #tpu.memory_space<smem>>, %arg2: memref<1x4x16x16xf32, #tpu.memory_space<vmem>>, %arg3: memref<1x4x16x16xf32, #tpu.memory_space<vmem>>, %arg4: memref<2x22x22xf32, #tpu.memory_space<vmem>>) attributes {dimension_semantics = [#tpu.dimension_semantics<parallel>], iteration_bounds = array<i64: 2>, scalar_prefetch = 0 : i64, scratch_operands = 1 : i64, tpu.core_type = #tpu.core_type<tc>, window_params = [{transform_indices = @transform_0, window_bounds = array<i64: 98>}, {transform_indices = @transform_1, window_bounds = array<i64: 1, 4, 16, 16>}, {transform_indices = @transform_2, window_bounds = array<i64: 1, 4, 16, 16>}]} {
    %c0 = arith.constant 0 : index
    %c0_0 = arith.constant 0 : index
    %c0_1 = arith.constant 0 : index
    %c0_2 = arith.constant 0 : index
    %0 = vector.load %arg2[%c0, %c0_0, %c0_1, %c0_2] : memref<1x4x16x16xf32, #tpu.memory_space<vmem>>, vector<1x1x16x16xf32>
    %1 = vector.shape_cast %0 : vector<1x1x16x16xf32> to vector<16x16xf32>
    %c0_3 = arith.constant 0 : index
    %c1 = arith.constant 1 : index
    %c0_4 = arith.constant 0 : index
    %c0_5 = arith.constant 0 : index
    %2 = vector.load %arg2[%c0_3, %c1, %c0_4, %c0_5] : memref<1x4x16x16xf32, #tpu.memory_space<vmem>>, vector<1x1x16x16xf32>
    %3 = vector.shape_cast %2 : vector<1x1x16x16xf32> to vector<16x16xf32>
    %4 = arith.addf %1, %3 : vector<16x16xf32>
    %5 = arith.maximumf %1, %3 : vector<16x16xf32>
    %c0_6 = arith.constant 0 : index
    %c2 = arith.constant 2 : index
    %c0_7 = arith.constant 0 : index
    %c0_8 = arith.constant 0 : index
    %6 = vector.load %arg2[%c0_6, %c2, %c0_7, %c0_8] : memref<1x4x16x16xf32, #tpu.memory_space<vmem>>, vector<1x1x16x16xf32>
    %7 = vector.shape_cast %6 : vector<1x1x16x16xf32> to vector<16x16xf32>
    %8 = arith.addf %4, %7 : vector<16x16xf32>
    %9 = arith.maximumf %5, %7 : vector<16x16xf32>
    %c0_9 = arith.constant 0 : index
    %c3 = arith.constant 3 : index
    %c0_10 = arith.constant 0 : index
    %c0_11 = arith.constant 0 : index
    %10 = vector.load %arg2[%c0_9, %c3, %c0_10, %c0_11] : memref<1x4x16x16xf32, #tpu.memory_space<vmem>>, vector<1x1x16x16xf32>
    %11 = vector.shape_cast %10 : vector<1x1x16x16xf32> to vector<16x16xf32>
    %12 = arith.addf %8, %11 : vector<16x16xf32>
    %13 = arith.maximumf %9, %11 : vector<16x16xf32>
    %cst = arith.constant 0.000000e+00 : f32
    %14 = vector.broadcast %cst : f32 to vector<2x22x22xf32>
    %c0_12 = arith.constant 0 : index
    %c0_13 = arith.constant 0 : index
    %c0_14 = arith.constant 0 : index
    %15 = vector.load %arg4[%c0_12, %c0_13, %c0_14] : memref<2x22x22xf32, #tpu.memory_space<vmem>>, vector<2x22x22xf32>
    tpu.vector_store %arg4[%c0_12, %c0_13, %c0_14], %14 {strides = array<i32>} : memref<2x22x22xf32, #tpu.memory_space<vmem>>, vector<2x22x22xf32>,
    %c0_15 = arith.constant 0 : index
    %c3_16 = arith.constant 3 : index
    %c3_17 = arith.constant 3 : index
    %16 = vector.load %arg4[%c0_15, %c3_16, %c3_17] : memref<2x22x22xf32, #tpu.memory_space<vmem>>, vector<1x16x16xf32>
    %17 = vector.shape_cast %16 : vector<1x16x16xf32> to vector<16x16xf32>
    %18 = vector.shape_cast %12 : vector<16x16xf32> to vector<1x16x16xf32>
    tpu.vector_store %arg4[%c0_15, %c3_16, %c3_17], %18 {strides = array<i32>} : memref<2x22x22xf32, #tpu.memory_space<vmem>>, vector<1x16x16xf32>,
    %c1_18 = arith.constant 1 : index
    %c3_19 = arith.constant 3 : index
    %c3_20 = arith.constant 3 : index
    %19 = vector.load %arg4[%c1_18, %c3_19, %c3_20] : memref<2x22x22xf32, #tpu.memory_space<vmem>>, vector<1x16x16xf32>
    %20 = vector.shape_cast %19 : vector<1x16x16xf32> to vector<16x16xf32>
    %21 = vector.shape_cast %13 : vector<16x16xf32> to vector<1x16x16xf32>
    tpu.vector_store %arg4[%c1_18, %c3_19, %c3_20], %21 {strides = array<i32>} : memref<2x22x22xf32, #tpu.memory_space<vmem>>, vector<1x16x16xf32>,
    %cst_21 = arith.constant 0.000000e+00 : f32
    %22 = vector.broadcast %cst_21 : f32 to vector<16x16xf32>
    %c0_22 = arith.constant 0 : index
    %c0_23 = arith.constant 0 : index
    %c0_24 = arith.constant 0 : index
    %23 = vector.load %arg4[%c0_22, %c0_23, %c0_24] : memref<2x22x22xf32, #tpu.memory_space<vmem>>, vector<1x22x16xf32>
    %24 = vector.shape_cast %23 : vector<1x22x16xf32> to vector<22x16xf32>
    %c1_25 = arith.constant 1 : index
    %c0_26 = arith.constant 0 : index
    %c0_27 = arith.constant 0 : index
    %25 = vector.load %arg4[%c1_25, %c0_26, %c0_27] : memref<2x22x22xf32, #tpu.memory_space<vmem>>, vector<1x22x16xf32>
    %26 = vector.shape_cast %25 : vector<1x22x16xf32> to vector<22x16xf32>
    %c0_28 = arith.constant 0 : index
    %27 = memref.load %arg1[%c0_28] : memref<98xf32, #tpu.memory_space<smem>>
    %28 = vector.extract_strided_slice %24 {offsets = [0, 0], sizes = [16, 16], strides = [1, 1]} : vector<22x16xf32> to vector<16x16xf32>
    %29 = vector.broadcast %27 : f32 to vector<16x16xf32>
    %30 = arith.mulf %29, %28 : vector<16x16xf32>
    %31 = arith.addf %22, %30 : vector<16x16xf32>
    %c49 = arith.constant 49 : index
    %32 = memref.load %arg1[%c49] : memref<98xf32, #tpu.memory_space<smem>>
    %33 = vector.extract_strided_slice %26 {offsets = [0, 0], sizes = [16, 16], strides = [1, 1]} : vector<22x16xf32> to vector<16x16xf32>
    %34 = vector.broadcast %32 : f32 to vector<16x16xf32>
    %35 = arith.mulf %34, %33 : vector<16x16xf32>
    %36 = arith.addf %31, %35 : vector<16x16xf32>
    %c7 = arith.constant 7 : index
    %37 = memref.load %arg1[%c7] : memref<98xf32, #tpu.memory_space<smem>>
    %38 = vector.extract_strided_slice %24 {offsets = [1, 0], sizes = [16, 16], strides = [1, 1]} : vector<22x16xf32> to vector<16x16xf32>
    %39 = vector.broadcast %37 : f32 to vector<16x16xf32>
    %40 = arith.mulf %39, %38 : vector<16x16xf32>
    %41 = arith.addf %36, %40 : vector<16x16xf32>
    %c56 = arith.constant 56 : index
    %42 = memref.load %arg1[%c56] : memref<98xf32, #tpu.memory_space<smem>>
    %43 = vector.extract_strided_slice %26 {offsets = [1, 0], sizes = [16, 16], strides = [1, 1]} : vector<22x16xf32> to vector<16x16xf32>
    %44 = vector.broadcast %42 : f32 to vector<16x16xf32>
    %45 = arith.mulf %44, %43 : vector<16x16xf32>
    %46 = arith.addf %41, %45 : vector<16x16xf32>
    %c14 = arith.constant 14 : index
    %47 = memref.load %arg1[%c14] : memref<98xf32, #tpu.memory_space<smem>>
    %48 = vector.extract_strided_slice %24 {offsets = [2, 0], sizes = [16, 16], strides = [1, 1]} : vector<22x16xf32> to vector<16x16xf32>
    %49 = vector.broadcast %47 : f32 to vector<16x16xf32>
    %50 = arith.mulf %49, %48 : vector<16x16xf32>
    %51 = arith.addf %46, %50 : vector<16x16xf32>
    %c63 = arith.constant 63 : index
    %52 = memref.load %arg1[%c63] : memref<98xf32, #tpu.memory_space<smem>>
    %53 = vector.extract_strided_slice %26 {offsets = [2, 0], sizes = [16, 16], strides = [1, 1]} : vector<22x16xf32> to vector<16x16xf32>
    %54 = vector.broadcast %52 : f32 to vector<16x16xf32>
    %55 = arith.mulf %54, %53 : vector<16x16xf32>
    %56 = arith.addf %51, %55 : vector<16x16xf32>
    %c21 = arith.constant 21 : index
    %57 = memref.load %arg1[%c21] : memref<98xf32, #tpu.memory_space<smem>>
    %58 = vector.extract_strided_slice %24 {offsets = [3, 0], sizes = [16, 16], strides = [1, 1]} : vector<22x16xf32> to vector<16x16xf32>
    %59 = vector.broadcast %57 : f32 to vector<16x16xf32>
    %60 = arith.mulf %59, %58 : vector<16x16xf32>
    %61 = arith.addf %56, %60 : vector<16x16xf32>
    %c70 = arith.constant 70 : index
    %62 = memref.load %arg1[%c70] : memref<98xf32, #tpu.memory_space<smem>>
    %63 = vector.extract_strided_slice %26 {offsets = [3, 0], sizes = [16, 16], strides = [1, 1]} : vector<22x16xf32> to vector<16x16xf32>
    %64 = vector.broadcast %62 : f32 to vector<16x16xf32>
    %65 = arith.mulf %64, %63 : vector<16x16xf32>
    %66 = arith.addf %61, %65 : vector<16x16xf32>
    %c28 = arith.constant 28 : index
    %67 = memref.load %arg1[%c28] : memref<98xf32, #tpu.memory_space<smem>>
    %68 = vector.extract_strided_slice %24 {offsets = [4, 0], sizes = [16, 16], strides = [1, 1]} : vector<22x16xf32> to vector<16x16xf32>
    %69 = vector.broadcast %67 : f32 to vector<16x16xf32>
    %70 = arith.mulf %69, %68 : vector<16x16xf32>
    %71 = arith.addf %66, %70 : vector<16x16xf32>
    %c77 = arith.constant 77 : index
    %72 = memref.load %arg1[%c77] : memref<98xf32, #tpu.memory_space<smem>>
    %73 = vector.extract_strided_slice %26 {offsets = [4, 0], sizes = [16, 16], strides = [1, 1]} : vector<22x16xf32> to vector<16x16xf32>
    %74 = vector.broadcast %72 : f32 to vector<16x16xf32>
    %75 = arith.mulf %74, %73 : vector<16x16xf32>
    %76 = arith.addf %71, %75 : vector<16x16xf32>
    %c35 = arith.constant 35 : index
    %77 = memref.load %arg1[%c35] : memref<98xf32, #tpu.memory_space<smem>>
    %78 = vector.extract_strided_slice %24 {offsets = [5, 0], sizes = [16, 16], strides = [1, 1]} : vector<22x16xf32> to vector<16x16xf32>
    %79 = vector.broadcast %77 : f32 to vector<16x16xf32>
    %80 = arith.mulf %79, %78 : vector<16x16xf32>
    %81 = arith.addf %76, %80 : vector<16x16xf32>
    %c84 = arith.constant 84 : index
    %82 = memref.load %arg1[%c84] : memref<98xf32, #tpu.memory_space<smem>>
    %83 = vector.extract_strided_slice %26 {offsets = [5, 0], sizes = [16, 16], strides = [1, 1]} : vector<22x16xf32> to vector<16x16xf32>
    %84 = vector.broadcast %82 : f32 to vector<16x16xf32>
    %85 = arith.mulf %84, %83 : vector<16x16xf32>
    %86 = arith.addf %81, %85 : vector<16x16xf32>
    %c42 = arith.constant 42 : index
    %87 = memref.load %arg1[%c42] : memref<98xf32, #tpu.memory_space<smem>>
    %88 = vector.extract_strided_slice %24 {offsets = [6, 0], sizes = [16, 16], strides = [1, 1]} : vector<22x16xf32> to vector<16x16xf32>
    %89 = vector.broadcast %87 : f32 to vector<16x16xf32>
    %90 = arith.mulf %89, %88 : vector<16x16xf32>
    %91 = arith.addf %86, %90 : vector<16x16xf32>
    %c91 = arith.constant 91 : index
    %92 = memref.load %arg1[%c91] : memref<98xf32, #tpu.memory_space<smem>>
    %93 = vector.extract_strided_slice %26 {offsets = [6, 0], sizes = [16, 16], strides = [1, 1]} : vector<22x16xf32> to vector<16x16xf32>
    %94 = vector.broadcast %92 : f32 to vector<16x16xf32>
    %95 = arith.mulf %94, %93 : vector<16x16xf32>
    %96 = arith.addf %91, %95 : vector<16x16xf32>
    %c0_29 = arith.constant 0 : index
    %c0_30 = arith.constant 0 : index
    %c1_31 = arith.constant 1 : index
    %97 = vector.load %arg4[%c0_29, %c0_30, %c1_31] : memref<2x22x22xf32, #tpu.memory_space<vmem>>, vector<1x22x16xf32>
    %98 = vector.shape_cast %97 : vector<1x22x16xf32> to vector<22x16xf32>
    %c1_32 = arith.constant 1 : index
    %c0_33 = arith.constant 0 : index
    %c1_34 = arith.constant 1 : index
    %99 = vector.load %arg4[%c1_32, %c0_33, %c1_34] : memref<2x22x22xf32, #tpu.memory_space<vmem>>, vector<1x22x16xf32>
    %100 = vector.shape_cast %99 : vector<1x22x16xf32> to vector<22x16xf32>
    %c1_35 = arith.constant 1 : index
    %101 = memref.load %arg1[%c1_35] : memref<98xf32, #tpu.memory_space<smem>>
    %102 = vector.extract_strided_slice %98 {offsets = [0, 0], sizes = [16, 16], strides = [1, 1]} : vector<22x16xf32> to vector<16x16xf32>
    %103 = vector.broadcast %101 : f32 to vector<16x16xf32>
    %104 = arith.mulf %103, %102 : vector<16x16xf32>
    %105 = arith.addf %96, %104 : vector<16x16xf32>
    %c50 = arith.constant 50 : index
    %106 = memref.load %arg1[%c50] : memref<98xf32, #tpu.memory_space<smem>>
    %107 = vector.extract_strided_slice %100 {offsets = [0, 0], sizes = [16, 16], strides = [1, 1]} : vector<22x16xf32> to vector<16x16xf32>
    %108 = vector.broadcast %106 : f32 to vector<16x16xf32>
    %109 = arith.mulf %108, %107 : vector<16x16xf32>
    %110 = arith.addf %105, %109 : vector<16x16xf32>
    %c8 = arith.constant 8 : index
    %111 = memref.load %arg1[%c8] : memref<98xf32, #tpu.memory_space<smem>>
    %112 = vector.extract_strided_slice %98 {offsets = [1, 0], sizes = [16, 16], strides = [1, 1]} : vector<22x16xf32> to vector<16x16xf32>
    %113 = vector.broadcast %111 : f32 to vector<16x16xf32>
    %114 = arith.mulf %113, %112 : vector<16x16xf32>
    %115 = arith.addf %110, %114 : vector<16x16xf32>
    %c57 = arith.constant 57 : index
    %116 = memref.load %arg1[%c57] : memref<98xf32, #tpu.memory_space<smem>>
    %117 = vector.extract_strided_slice %100 {offsets = [1, 0], sizes = [16, 16], strides = [1, 1]} : vector<22x16xf32> to vector<16x16xf32>
    %118 = vector.broadcast %116 : f32 to vector<16x16xf32>
    %119 = arith.mulf %118, %117 : vector<16x16xf32>
    %120 = arith.addf %115, %119 : vector<16x16xf32>
    %c15 = arith.constant 15 : index
    %121 = memref.load %arg1[%c15] : memref<98xf32, #tpu.memory_space<smem>>
    %122 = vector.extract_strided_slice %98 {offsets = [2, 0], sizes = [16, 16], strides = [1, 1]} : vector<22x16xf32> to vector<16x16xf32>
    %123 = vector.broadcast %121 : f32 to vector<16x16xf32>
    %124 = arith.mulf %123, %122 : vector<16x16xf32>
    %125 = arith.addf %120, %124 : vector<16x16xf32>
    %c64 = arith.constant 64 : index
    %126 = memref.load %arg1[%c64] : memref<98xf32, #tpu.memory_space<smem>>
    %127 = vector.extract_strided_slice %100 {offsets = [2, 0], sizes = [16, 16], strides = [1, 1]} : vector<22x16xf32> to vector<16x16xf32>
    %128 = vector.broadcast %126 : f32 to vector<16x16xf32>
    %129 = arith.mulf %128, %127 : vector<16x16xf32>
    %130 = arith.addf %125, %129 : vector<16x16xf32>
    %c22 = arith.constant 22 : index
    %131 = memref.load %arg1[%c22] : memref<98xf32, #tpu.memory_space<smem>>
    %132 = vector.extract_strided_slice %98 {offsets = [3, 0], sizes = [16, 16], strides = [1, 1]} : vector<22x16xf32> to vector<16x16xf32>
    %133 = vector.broadcast %131 : f32 to vector<16x16xf32>
    %134 = arith.mulf %133, %132 : vector<16x16xf32>
    %135 = arith.addf %130, %134 : vector<16x16xf32>
    %c71 = arith.constant 71 : index
    %136 = memref.load %arg1[%c71] : memref<98xf32, #tpu.memory_space<smem>>
    %137 = vector.extract_strided_slice %100 {offsets = [3, 0], sizes = [16, 16], strides = [1, 1]} : vector<22x16xf32> to vector<16x16xf32>
    %138 = vector.broadcast %136 : f32 to vector<16x16xf32>
    %139 = arith.mulf %138, %137 : vector<16x16xf32>
    %140 = arith.addf %135, %139 : vector<16x16xf32>
    %c29 = arith.constant 29 : index
    %141 = memref.load %arg1[%c29] : memref<98xf32, #tpu.memory_space<smem>>
    %142 = vector.extract_strided_slice %98 {offsets = [4, 0], sizes = [16, 16], strides = [1, 1]} : vector<22x16xf32> to vector<16x16xf32>
    %143 = vector.broadcast %141 : f32 to vector<16x16xf32>
    %144 = arith.mulf %143, %142 : vector<16x16xf32>
    %145 = arith.addf %140, %144 : vector<16x16xf32>
    %c78 = arith.constant 78 : index
    %146 = memref.load %arg1[%c78] : memref<98xf32, #tpu.memory_space<smem>>
    %147 = vector.extract_strided_slice %100 {offsets = [4, 0], sizes = [16, 16], strides = [1, 1]} : vector<22x16xf32> to vector<16x16xf32>
    %148 = vector.broadcast %146 : f32 to vector<16x16xf32>
    %149 = arith.mulf %148, %147 : vector<16x16xf32>
    %150 = arith.addf %145, %149 : vector<16x16xf32>
    %c36 = arith.constant 36 : index
    %151 = memref.load %arg1[%c36] : memref<98xf32, #tpu.memory_space<smem>>
    %152 = vector.extract_strided_slice %98 {offsets = [5, 0], sizes = [16, 16], strides = [1, 1]} : vector<22x16xf32> to vector<16x16xf32>
    %153 = vector.broadcast %151 : f32 to vector<16x16xf32>
    %154 = arith.mulf %153, %152 : vector<16x16xf32>
    %155 = arith.addf %150, %154 : vector<16x16xf32>
    %c85 = arith.constant 85 : index
    %156 = memref.load %arg1[%c85] : memref<98xf32, #tpu.memory_space<smem>>
    %157 = vector.extract_strided_slice %100 {offsets = [5, 0], sizes = [16, 16], strides = [1, 1]} : vector<22x16xf32> to vector<16x16xf32>
    %158 = vector.broadcast %156 : f32 to vector<16x16xf32>
    %159 = arith.mulf %158, %157 : vector<16x16xf32>
    %160 = arith.addf %155, %159 : vector<16x16xf32>
    %c43 = arith.constant 43 : index
    %161 = memref.load %arg1[%c43] : memref<98xf32, #tpu.memory_space<smem>>
    %162 = vector.extract_strided_slice %98 {offsets = [6, 0], sizes = [16, 16], strides = [1, 1]} : vector<22x16xf32> to vector<16x16xf32>
    %163 = vector.broadcast %161 : f32 to vector<16x16xf32>
    %164 = arith.mulf %163, %162 : vector<16x16xf32>
    %165 = arith.addf %160, %164 : vector<16x16xf32>
    %c92 = arith.constant 92 : index
    %166 = memref.load %arg1[%c92] : memref<98xf32, #tpu.memory_space<smem>>
    %167 = vector.extract_strided_slice %100 {offsets = [6, 0], sizes = [16, 16], strides = [1, 1]} : vector<22x16xf32> to vector<16x16xf32>
    %168 = vector.broadcast %166 : f32 to vector<16x16xf32>
    %169 = arith.mulf %168, %167 : vector<16x16xf32>
    %170 = arith.addf %165, %169 : vector<16x16xf32>
    %c0_36 = arith.constant 0 : index
    %c0_37 = arith.constant 0 : index
    %c2_38 = arith.constant 2 : index
    %171 = vector.load %arg4[%c0_36, %c0_37, %c2_38] : memref<2x22x22xf32, #tpu.memory_space<vmem>>, vector<1x22x16xf32>
    %172 = vector.shape_cast %171 : vector<1x22x16xf32> to vector<22x16xf32>
    %c1_39 = arith.constant 1 : index
    %c0_40 = arith.constant 0 : index
    %c2_41 = arith.constant 2 : index
    %173 = vector.load %arg4[%c1_39, %c0_40, %c2_41] : memref<2x22x22xf32, #tpu.memory_space<vmem>>, vector<1x22x16xf32>
    %174 = vector.shape_cast %173 : vector<1x22x16xf32> to vector<22x16xf32>
    %c2_42 = arith.constant 2 : index
    %175 = memref.load %arg1[%c2_42] : memref<98xf32, #tpu.memory_space<smem>>
    %176 = vector.extract_strided_slice %172 {offsets = [0, 0], sizes = [16, 16], strides = [1, 1]} : vector<22x16xf32> to vector<16x16xf32>
    %177 = vector.broadcast %175 : f32 to vector<16x16xf32>
    %178 = arith.mulf %177, %176 : vector<16x16xf32>
    %179 = arith.addf %170, %178 : vector<16x16xf32>
    %c51 = arith.constant 51 : index
    %180 = memref.load %arg1[%c51] : memref<98xf32, #tpu.memory_space<smem>>
    %181 = vector.extract_strided_slice %174 {offsets = [0, 0], sizes = [16, 16], strides = [1, 1]} : vector<22x16xf32> to vector<16x16xf32>
    %182 = vector.broadcast %180 : f32 to vector<16x16xf32>
    %183 = arith.mulf %182, %181 : vector<16x16xf32>
    %184 = arith.addf %179, %183 : vector<16x16xf32>
    %c9 = arith.constant 9 : index
    %185 = memref.load %arg1[%c9] : memref<98xf32, #tpu.memory_space<smem>>
    %186 = vector.extract_strided_slice %172 {offsets = [1, 0], sizes = [16, 16], strides = [1, 1]} : vector<22x16xf32> to vector<16x16xf32>
    %187 = vector.broadcast %185 : f32 to vector<16x16xf32>
    %188 = arith.mulf %187, %186 : vector<16x16xf32>
    %189 = arith.addf %184, %188 : vector<16x16xf32>
    %c58 = arith.constant 58 : index
    %190 = memref.load %arg1[%c58] : memref<98xf32, #tpu.memory_space<smem>>
    %191 = vector.extract_strided_slice %174 {offsets = [1, 0], sizes = [16, 16], strides = [1, 1]} : vector<22x16xf32> to vector<16x16xf32>
    %192 = vector.broadcast %190 : f32 to vector<16x16xf32>
    %193 = arith.mulf %192, %191 : vector<16x16xf32>
    %194 = arith.addf %189, %193 : vector<16x16xf32>
    %c16 = arith.constant 16 : index
    %195 = memref.load %arg1[%c16] : memref<98xf32, #tpu.memory_space<smem>>
    %196 = vector.extract_strided_slice %172 {offsets = [2, 0], sizes = [16, 16], strides = [1, 1]} : vector<22x16xf32> to vector<16x16xf32>
    %197 = vector.broadcast %195 : f32 to vector<16x16xf32>
    %198 = arith.mulf %197, %196 : vector<16x16xf32>
    %199 = arith.addf %194, %198 : vector<16x16xf32>
    %c65 = arith.constant 65 : index
    %200 = memref.load %arg1[%c65] : memref<98xf32, #tpu.memory_space<smem>>
    %201 = vector.extract_strided_slice %174 {offsets = [2, 0], sizes = [16, 16], strides = [1, 1]} : vector<22x16xf32> to vector<16x16xf32>
    %202 = vector.broadcast %200 : f32 to vector<16x16xf32>
    %203 = arith.mulf %202, %201 : vector<16x16xf32>
    %204 = arith.addf %199, %203 : vector<16x16xf32>
    %c23 = arith.constant 23 : index
    %205 = memref.load %arg1[%c23] : memref<98xf32, #tpu.memory_space<smem>>
    %206 = vector.extract_strided_slice %172 {offsets = [3, 0], sizes = [16, 16], strides = [1, 1]} : vector<22x16xf32> to vector<16x16xf32>
    %207 = vector.broadcast %205 : f32 to vector<16x16xf32>
    %208 = arith.mulf %207, %206 : vector<16x16xf32>
    %209 = arith.addf %204, %208 : vector<16x16xf32>
    %c72 = arith.constant 72 : index
    %210 = memref.load %arg1[%c72] : memref<98xf32, #tpu.memory_space<smem>>
    %211 = vector.extract_strided_slice %174 {offsets = [3, 0], sizes = [16, 16], strides = [1, 1]} : vector<22x16xf32> to vector<16x16xf32>
    %212 = vector.broadcast %210 : f32 to vector<16x16xf32>
    %213 = arith.mulf %212, %211 : vector<16x16xf32>
    %214 = arith.addf %209, %213 : vector<16x16xf32>
    %c30 = arith.constant 30 : index
    %215 = memref.load %arg1[%c30] : memref<98xf32, #tpu.memory_space<smem>>
    %216 = vector.extract_strided_slice %172 {offsets = [4, 0], sizes = [16, 16], strides = [1, 1]} : vector<22x16xf32> to vector<16x16xf32>
    %217 = vector.broadcast %215 : f32 to vector<16x16xf32>
    %218 = arith.mulf %217, %216 : vector<16x16xf32>
    %219 = arith.addf %214, %218 : vector<16x16xf32>
    %c79 = arith.constant 79 : index
    %220 = memref.load %arg1[%c79] : memref<98xf32, #tpu.memory_space<smem>>
    %221 = vector.extract_strided_slice %174 {offsets = [4, 0], sizes = [16, 16], strides = [1, 1]} : vector<22x16xf32> to vector<16x16xf32>
    %222 = vector.broadcast %220 : f32 to vector<16x16xf32>
    %223 = arith.mulf %222, %221 : vector<16x16xf32>
    %224 = arith.addf %219, %223 : vector<16x16xf32>
    %c37 = arith.constant 37 : index
    %225 = memref.load %arg1[%c37] : memref<98xf32, #tpu.memory_space<smem>>
    %226 = vector.extract_strided_slice %172 {offsets = [5, 0], sizes = [16, 16], strides = [1, 1]} : vector<22x16xf32> to vector<16x16xf32>
    %227 = vector.broadcast %225 : f32 to vector<16x16xf32>
    %228 = arith.mulf %227, %226 : vector<16x16xf32>
    %229 = arith.addf %224, %228 : vector<16x16xf32>
    %c86 = arith.constant 86 : index
    %230 = memref.load %arg1[%c86] : memref<98xf32, #tpu.memory_space<smem>>
    %231 = vector.extract_strided_slice %174 {offsets = [5, 0], sizes = [16, 16], strides = [1, 1]} : vector<22x16xf32> to vector<16x16xf32>
    %232 = vector.broadcast %230 : f32 to vector<16x16xf32>
    %233 = arith.mulf %232, %231 : vector<16x16xf32>
    %234 = arith.addf %229, %233 : vector<16x16xf32>
    %c44 = arith.constant 44 : index
    %235 = memref.load %arg1[%c44] : memref<98xf32, #tpu.memory_space<smem>>
    %236 = vector.extract_strided_slice %172 {offsets = [6, 0], sizes = [16, 16], strides = [1, 1]} : vector<22x16xf32> to vector<16x16xf32>
    %237 = vector.broadcast %235 : f32 to vector<16x16xf32>
    %238 = arith.mulf %237, %236 : vector<16x16xf32>
    %239 = arith.addf %234, %238 : vector<16x16xf32>
    %c93 = arith.constant 93 : index
    %240 = memref.load %arg1[%c93] : memref<98xf32, #tpu.memory_space<smem>>
    %241 = vector.extract_strided_slice %174 {offsets = [6, 0], sizes = [16, 16], strides = [1, 1]} : vector<22x16xf32> to vector<16x16xf32>
    %242 = vector.broadcast %240 : f32 to vector<16x16xf32>
    %243 = arith.mulf %242, %241 : vector<16x16xf32>
    %244 = arith.addf %239, %243 : vector<16x16xf32>
    %c0_43 = arith.constant 0 : index
    %c0_44 = arith.constant 0 : index
    %c3_45 = arith.constant 3 : index
    %245 = vector.load %arg4[%c0_43, %c0_44, %c3_45] : memref<2x22x22xf32, #tpu.memory_space<vmem>>, vector<1x22x16xf32>
    %246 = vector.shape_cast %245 : vector<1x22x16xf32> to vector<22x16xf32>
    %c1_46 = arith.constant 1 : index
    %c0_47 = arith.constant 0 : index
    %c3_48 = arith.constant 3 : index
    %247 = vector.load %arg4[%c1_46, %c0_47, %c3_48] : memref<2x22x22xf32, #tpu.memory_space<vmem>>, vector<1x22x16xf32>
    %248 = vector.shape_cast %247 : vector<1x22x16xf32> to vector<22x16xf32>
    %c3_49 = arith.constant 3 : index
    %249 = memref.load %arg1[%c3_49] : memref<98xf32, #tpu.memory_space<smem>>
    %250 = vector.extract_strided_slice %246 {offsets = [0, 0], sizes = [16, 16], strides = [1, 1]} : vector<22x16xf32> to vector<16x16xf32>
    %251 = vector.broadcast %249 : f32 to vector<16x16xf32>
    %252 = arith.mulf %251, %250 : vector<16x16xf32>
    %253 = arith.addf %244, %252 : vector<16x16xf32>
    %c52 = arith.constant 52 : index
    %254 = memref.load %arg1[%c52] : memref<98xf32, #tpu.memory_space<smem>>
    %255 = vector.extract_strided_slice %248 {offsets = [0, 0], sizes = [16, 16], strides = [1, 1]} : vector<22x16xf32> to vector<16x16xf32>
    %256 = vector.broadcast %254 : f32 to vector<16x16xf32>
    %257 = arith.mulf %256, %255 : vector<16x16xf32>
    %258 = arith.addf %253, %257 : vector<16x16xf32>
    %c10 = arith.constant 10 : index
    %259 = memref.load %arg1[%c10] : memref<98xf32, #tpu.memory_space<smem>>
    %260 = vector.extract_strided_slice %246 {offsets = [1, 0], sizes = [16, 16], strides = [1, 1]} : vector<22x16xf32> to vector<16x16xf32>
    %261 = vector.broadcast %259 : f32 to vector<16x16xf32>
    %262 = arith.mulf %261, %260 : vector<16x16xf32>
    %263 = arith.addf %258, %262 : vector<16x16xf32>
    %c59 = arith.constant 59 : index
    %264 = memref.load %arg1[%c59] : memref<98xf32, #tpu.memory_space<smem>>
    %265 = vector.extract_strided_slice %248 {offsets = [1, 0], sizes = [16, 16], strides = [1, 1]} : vector<22x16xf32> to vector<16x16xf32>
    %266 = vector.broadcast %264 : f32 to vector<16x16xf32>
    %267 = arith.mulf %266, %265 : vector<16x16xf32>
    %268 = arith.addf %263, %267 : vector<16x16xf32>
    %c17 = arith.constant 17 : index
    %269 = memref.load %arg1[%c17] : memref<98xf32, #tpu.memory_space<smem>>
    %270 = vector.extract_strided_slice %246 {offsets = [2, 0], sizes = [16, 16], strides = [1, 1]} : vector<22x16xf32> to vector<16x16xf32>
    %271 = vector.broadcast %269 : f32 to vector<16x16xf32>
    %272 = arith.mulf %271, %270 : vector<16x16xf32>
    %273 = arith.addf %268, %272 : vector<16x16xf32>
    %c66 = arith.constant 66 : index
    %274 = memref.load %arg1[%c66] : memref<98xf32, #tpu.memory_space<smem>>
    %275 = vector.extract_strided_slice %248 {offsets = [2, 0], sizes = [16, 16], strides = [1, 1]} : vector<22x16xf32> to vector<16x16xf32>
    %276 = vector.broadcast %274 : f32 to vector<16x16xf32>
    %277 = arith.mulf %276, %275 : vector<16x16xf32>
    %278 = arith.addf %273, %277 : vector<16x16xf32>
    %c24 = arith.constant 24 : index
    %279 = memref.load %arg1[%c24] : memref<98xf32, #tpu.memory_space<smem>>
    %280 = vector.extract_strided_slice %246 {offsets = [3, 0], sizes = [16, 16], strides = [1, 1]} : vector<22x16xf32> to vector<16x16xf32>
    %281 = vector.broadcast %279 : f32 to vector<16x16xf32>
    %282 = arith.mulf %281, %280 : vector<16x16xf32>
    %283 = arith.addf %278, %282 : vector<16x16xf32>
    %c73 = arith.constant 73 : index
    %284 = memref.load %arg1[%c73] : memref<98xf32, #tpu.memory_space<smem>>
    %285 = vector.extract_strided_slice %248 {offsets = [3, 0], sizes = [16, 16], strides = [1, 1]} : vector<22x16xf32> to vector<16x16xf32>
    %286 = vector.broadcast %284 : f32 to vector<16x16xf32>
    %287 = arith.mulf %286, %285 : vector<16x16xf32>
    %288 = arith.addf %283, %287 : vector<16x16xf32>
    %c31 = arith.constant 31 : index
    %289 = memref.load %arg1[%c31] : memref<98xf32, #tpu.memory_space<smem>>
    %290 = vector.extract_strided_slice %246 {offsets = [4, 0], sizes = [16, 16], strides = [1, 1]} : vector<22x16xf32> to vector<16x16xf32>
    %291 = vector.broadcast %289 : f32 to vector<16x16xf32>
    %292 = arith.mulf %291, %290 : vector<16x16xf32>
    %293 = arith.addf %288, %292 : vector<16x16xf32>
    %c80 = arith.constant 80 : index
    %294 = memref.load %arg1[%c80] : memref<98xf32, #tpu.memory_space<smem>>
    %295 = vector.extract_strided_slice %248 {offsets = [4, 0], sizes = [16, 16], strides = [1, 1]} : vector<22x16xf32> to vector<16x16xf32>
    %296 = vector.broadcast %294 : f32 to vector<16x16xf32>
    %297 = arith.mulf %296, %295 : vector<16x16xf32>
    %298 = arith.addf %293, %297 : vector<16x16xf32>
    %c38 = arith.constant 38 : index
    %299 = memref.load %arg1[%c38] : memref<98xf32, #tpu.memory_space<smem>>
    %300 = vector.extract_strided_slice %246 {offsets = [5, 0], sizes = [16, 16], strides = [1, 1]} : vector<22x16xf32> to vector<16x16xf32>
    %301 = vector.broadcast %299 : f32 to vector<16x16xf32>
    %302 = arith.mulf %301, %300 : vector<16x16xf32>
    %303 = arith.addf %298, %302 : vector<16x16xf32>
    %c87 = arith.constant 87 : index
    %304 = memref.load %arg1[%c87] : memref<98xf32, #tpu.memory_space<smem>>
    %305 = vector.extract_strided_slice %248 {offsets = [5, 0], sizes = [16, 16], strides = [1, 1]} : vector<22x16xf32> to vector<16x16xf32>
    %306 = vector.broadcast %304 : f32 to vector<16x16xf32>
    %307 = arith.mulf %306, %305 : vector<16x16xf32>
    %308 = arith.addf %303, %307 : vector<16x16xf32>
    %c45 = arith.constant 45 : index
    %309 = memref.load %arg1[%c45] : memref<98xf32, #tpu.memory_space<smem>>
    %310 = vector.extract_strided_slice %246 {offsets = [6, 0], sizes = [16, 16], strides = [1, 1]} : vector<22x16xf32> to vector<16x16xf32>
    %311 = vector.broadcast %309 : f32 to vector<16x16xf32>
    %312 = arith.mulf %311, %310 : vector<16x16xf32>
    %313 = arith.addf %308, %312 : vector<16x16xf32>
    %c94 = arith.constant 94 : index
    %314 = memref.load %arg1[%c94] : memref<98xf32, #tpu.memory_space<smem>>
    %315 = vector.extract_strided_slice %248 {offsets = [6, 0], sizes = [16, 16], strides = [1, 1]} : vector<22x16xf32> to vector<16x16xf32>
    %316 = vector.broadcast %314 : f32 to vector<16x16xf32>
    %317 = arith.mulf %316, %315 : vector<16x16xf32>
    %318 = arith.addf %313, %317 : vector<16x16xf32>
    %c0_50 = arith.constant 0 : index
    %c0_51 = arith.constant 0 : index
    %c4 = arith.constant 4 : index
    %319 = vector.load %arg4[%c0_50, %c0_51, %c4] : memref<2x22x22xf32, #tpu.memory_space<vmem>>, vector<1x22x16xf32>
    %320 = vector.shape_cast %319 : vector<1x22x16xf32> to vector<22x16xf32>
    %c1_52 = arith.constant 1 : index
    %c0_53 = arith.constant 0 : index
    %c4_54 = arith.constant 4 : index
    %321 = vector.load %arg4[%c1_52, %c0_53, %c4_54] : memref<2x22x22xf32, #tpu.memory_space<vmem>>, vector<1x22x16xf32>
    %322 = vector.shape_cast %321 : vector<1x22x16xf32> to vector<22x16xf32>
    %c4_55 = arith.constant 4 : index
    %323 = memref.load %arg1[%c4_55] : memref<98xf32, #tpu.memory_space<smem>>
    %324 = vector.extract_strided_slice %320 {offsets = [0, 0], sizes = [16, 16], strides = [1, 1]} : vector<22x16xf32> to vector<16x16xf32>
    %325 = vector.broadcast %323 : f32 to vector<16x16xf32>
    %326 = arith.mulf %325, %324 : vector<16x16xf32>
    %327 = arith.addf %318, %326 : vector<16x16xf32>
    %c53 = arith.constant 53 : index
    %328 = memref.load %arg1[%c53] : memref<98xf32, #tpu.memory_space<smem>>
    %329 = vector.extract_strided_slice %322 {offsets = [0, 0], sizes = [16, 16], strides = [1, 1]} : vector<22x16xf32> to vector<16x16xf32>
    %330 = vector.broadcast %328 : f32 to vector<16x16xf32>
    %331 = arith.mulf %330, %329 : vector<16x16xf32>
    %332 = arith.addf %327, %331 : vector<16x16xf32>
    %c11 = arith.constant 11 : index
    %333 = memref.load %arg1[%c11] : memref<98xf32, #tpu.memory_space<smem>>
    %334 = vector.extract_strided_slice %320 {offsets = [1, 0], sizes = [16, 16], strides = [1, 1]} : vector<22x16xf32> to vector<16x16xf32>
    %335 = vector.broadcast %333 : f32 to vector<16x16xf32>
    %336 = arith.mulf %335, %334 : vector<16x16xf32>
    %337 = arith.addf %332, %336 : vector<16x16xf32>
    %c60 = arith.constant 60 : index
    %338 = memref.load %arg1[%c60] : memref<98xf32, #tpu.memory_space<smem>>
    %339 = vector.extract_strided_slice %322 {offsets = [1, 0], sizes = [16, 16], strides = [1, 1]} : vector<22x16xf32> to vector<16x16xf32>
    %340 = vector.broadcast %338 : f32 to vector<16x16xf32>
    %341 = arith.mulf %340, %339 : vector<16x16xf32>
    %342 = arith.addf %337, %341 : vector<16x16xf32>
    %c18 = arith.constant 18 : index
    %343 = memref.load %arg1[%c18] : memref<98xf32, #tpu.memory_space<smem>>
    %344 = vector.extract_strided_slice %320 {offsets = [2, 0], sizes = [16, 16], strides = [1, 1]} : vector<22x16xf32> to vector<16x16xf32>
    %345 = vector.broadcast %343 : f32 to vector<16x16xf32>
    %346 = arith.mulf %345, %344 : vector<16x16xf32>
    %347 = arith.addf %342, %346 : vector<16x16xf32>
    %c67 = arith.constant 67 : index
    %348 = memref.load %arg1[%c67] : memref<98xf32, #tpu.memory_space<smem>>
    %349 = vector.extract_strided_slice %322 {offsets = [2, 0], sizes = [16, 16], strides = [1, 1]} : vector<22x16xf32> to vector<16x16xf32>
    %350 = vector.broadcast %348 : f32 to vector<16x16xf32>
    %351 = arith.mulf %350, %349 : vector<16x16xf32>
    %352 = arith.addf %347, %351 : vector<16x16xf32>
    %c25 = arith.constant 25 : index
    %353 = memref.load %arg1[%c25] : memref<98xf32, #tpu.memory_space<smem>>
    %354 = vector.extract_strided_slice %320 {offsets = [3, 0], sizes = [16, 16], strides = [1, 1]} : vector<22x16xf32> to vector<16x16xf32>
    %355 = vector.broadcast %353 : f32 to vector<16x16xf32>
    %356 = arith.mulf %355, %354 : vector<16x16xf32>
    %357 = arith.addf %352, %356 : vector<16x16xf32>
    %c74 = arith.constant 74 : index
    %358 = memref.load %arg1[%c74] : memref<98xf32, #tpu.memory_space<smem>>
    %359 = vector.extract_strided_slice %322 {offsets = [3, 0], sizes = [16, 16], strides = [1, 1]} : vector<22x16xf32> to vector<16x16xf32>
    %360 = vector.broadcast %358 : f32 to vector<16x16xf32>
    %361 = arith.mulf %360, %359 : vector<16x16xf32>
    %362 = arith.addf %357, %361 : vector<16x16xf32>
    %c32 = arith.constant 32 : index
    %363 = memref.load %arg1[%c32] : memref<98xf32, #tpu.memory_space<smem>>
    %364 = vector.extract_strided_slice %320 {offsets = [4, 0], sizes = [16, 16], strides = [1, 1]} : vector<22x16xf32> to vector<16x16xf32>
    %365 = vector.broadcast %363 : f32 to vector<16x16xf32>
    %366 = arith.mulf %365, %364 : vector<16x16xf32>
    %367 = arith.addf %362, %366 : vector<16x16xf32>
    %c81 = arith.constant 81 : index
    %368 = memref.load %arg1[%c81] : memref<98xf32, #tpu.memory_space<smem>>
    %369 = vector.extract_strided_slice %322 {offsets = [4, 0], sizes = [16, 16], strides = [1, 1]} : vector<22x16xf32> to vector<16x16xf32>
    %370 = vector.broadcast %368 : f32 to vector<16x16xf32>
    %371 = arith.mulf %370, %369 : vector<16x16xf32>
    %372 = arith.addf %367, %371 : vector<16x16xf32>
    %c39 = arith.constant 39 : index
    %373 = memref.load %arg1[%c39] : memref<98xf32, #tpu.memory_space<smem>>
    %374 = vector.extract_strided_slice %320 {offsets = [5, 0], sizes = [16, 16], strides = [1, 1]} : vector<22x16xf32> to vector<16x16xf32>
    %375 = vector.broadcast %373 : f32 to vector<16x16xf32>
    %376 = arith.mulf %375, %374 : vector<16x16xf32>
    %377 = arith.addf %372, %376 : vector<16x16xf32>
    %c88 = arith.constant 88 : index
    %378 = memref.load %arg1[%c88] : memref<98xf32, #tpu.memory_space<smem>>
    %379 = vector.extract_strided_slice %322 {offsets = [5, 0], sizes = [16, 16], strides = [1, 1]} : vector<22x16xf32> to vector<16x16xf32>
    %380 = vector.broadcast %378 : f32 to vector<16x16xf32>
    %381 = arith.mulf %380, %379 : vector<16x16xf32>
    %382 = arith.addf %377, %381 : vector<16x16xf32>
    %c46 = arith.constant 46 : index
    %383 = memref.load %arg1[%c46] : memref<98xf32, #tpu.memory_space<smem>>
    %384 = vector.extract_strided_slice %320 {offsets = [6, 0], sizes = [16, 16], strides = [1, 1]} : vector<22x16xf32> to vector<16x16xf32>
    %385 = vector.broadcast %383 : f32 to vector<16x16xf32>
    %386 = arith.mulf %385, %384 : vector<16x16xf32>
    %387 = arith.addf %382, %386 : vector<16x16xf32>
    %c95 = arith.constant 95 : index
    %388 = memref.load %arg1[%c95] : memref<98xf32, #tpu.memory_space<smem>>
    %389 = vector.extract_strided_slice %322 {offsets = [6, 0], sizes = [16, 16], strides = [1, 1]} : vector<22x16xf32> to vector<16x16xf32>
    %390 = vector.broadcast %388 : f32 to vector<16x16xf32>
    %391 = arith.mulf %390, %389 : vector<16x16xf32>
    %392 = arith.addf %387, %391 : vector<16x16xf32>
    %c0_56 = arith.constant 0 : index
    %c0_57 = arith.constant 0 : index
    %c5 = arith.constant 5 : index
    %393 = vector.load %arg4[%c0_56, %c0_57, %c5] : memref<2x22x22xf32, #tpu.memory_space<vmem>>, vector<1x22x16xf32>
    %394 = vector.shape_cast %393 : vector<1x22x16xf32> to vector<22x16xf32>
    %c1_58 = arith.constant 1 : index
    %c0_59 = arith.constant 0 : index
    %c5_60 = arith.constant 5 : index
    %395 = vector.load %arg4[%c1_58, %c0_59, %c5_60] : memref<2x22x22xf32, #tpu.memory_space<vmem>>, vector<1x22x16xf32>
    %396 = vector.shape_cast %395 : vector<1x22x16xf32> to vector<22x16xf32>
    %c5_61 = arith.constant 5 : index
    %397 = memref.load %arg1[%c5_61] : memref<98xf32, #tpu.memory_space<smem>>
    %398 = vector.extract_strided_slice %394 {offsets = [0, 0], sizes = [16, 16], strides = [1, 1]} : vector<22x16xf32> to vector<16x16xf32>
    %399 = vector.broadcast %397 : f32 to vector<16x16xf32>
    %400 = arith.mulf %399, %398 : vector<16x16xf32>
    %401 = arith.addf %392, %400 : vector<16x16xf32>
    %c54 = arith.constant 54 : index
    %402 = memref.load %arg1[%c54] : memref<98xf32, #tpu.memory_space<smem>>
    %403 = vector.extract_strided_slice %396 {offsets = [0, 0], sizes = [16, 16], strides = [1, 1]} : vector<22x16xf32> to vector<16x16xf32>
    %404 = vector.broadcast %402 : f32 to vector<16x16xf32>
    %405 = arith.mulf %404, %403 : vector<16x16xf32>
    %406 = arith.addf %401, %405 : vector<16x16xf32>
    %c12 = arith.constant 12 : index
    %407 = memref.load %arg1[%c12] : memref<98xf32, #tpu.memory_space<smem>>
    %408 = vector.extract_strided_slice %394 {offsets = [1, 0], sizes = [16, 16], strides = [1, 1]} : vector<22x16xf32> to vector<16x16xf32>
    %409 = vector.broadcast %407 : f32 to vector<16x16xf32>
    %410 = arith.mulf %409, %408 : vector<16x16xf32>
    %411 = arith.addf %406, %410 : vector<16x16xf32>
    %c61 = arith.constant 61 : index
    %412 = memref.load %arg1[%c61] : memref<98xf32, #tpu.memory_space<smem>>
    %413 = vector.extract_strided_slice %396 {offsets = [1, 0], sizes = [16, 16], strides = [1, 1]} : vector<22x16xf32> to vector<16x16xf32>
    %414 = vector.broadcast %412 : f32 to vector<16x16xf32>
    %415 = arith.mulf %414, %413 : vector<16x16xf32>
    %416 = arith.addf %411, %415 : vector<16x16xf32>
    %c19 = arith.constant 19 : index
    %417 = memref.load %arg1[%c19] : memref<98xf32, #tpu.memory_space<smem>>
    %418 = vector.extract_strided_slice %394 {offsets = [2, 0], sizes = [16, 16], strides = [1, 1]} : vector<22x16xf32> to vector<16x16xf32>
    %419 = vector.broadcast %417 : f32 to vector<16x16xf32>
    %420 = arith.mulf %419, %418 : vector<16x16xf32>
    %421 = arith.addf %416, %420 : vector<16x16xf32>
    %c68 = arith.constant 68 : index
    %422 = memref.load %arg1[%c68] : memref<98xf32, #tpu.memory_space<smem>>
    %423 = vector.extract_strided_slice %396 {offsets = [2, 0], sizes = [16, 16], strides = [1, 1]} : vector<22x16xf32> to vector<16x16xf32>
    %424 = vector.broadcast %422 : f32 to vector<16x16xf32>
    %425 = arith.mulf %424, %423 : vector<16x16xf32>
    %426 = arith.addf %421, %425 : vector<16x16xf32>
    %c26 = arith.constant 26 : index
    %427 = memref.load %arg1[%c26] : memref<98xf32, #tpu.memory_space<smem>>
    %428 = vector.extract_strided_slice %394 {offsets = [3, 0], sizes = [16, 16], strides = [1, 1]} : vector<22x16xf32> to vector<16x16xf32>
    %429 = vector.broadcast %427 : f32 to vector<16x16xf32>
    %430 = arith.mulf %429, %428 : vector<16x16xf32>
    %431 = arith.addf %426, %430 : vector<16x16xf32>
    %c75 = arith.constant 75 : index
    %432 = memref.load %arg1[%c75] : memref<98xf32, #tpu.memory_space<smem>>
    %433 = vector.extract_strided_slice %396 {offsets = [3, 0], sizes = [16, 16], strides = [1, 1]} : vector<22x16xf32> to vector<16x16xf32>
    %434 = vector.broadcast %432 : f32 to vector<16x16xf32>
    %435 = arith.mulf %434, %433 : vector<16x16xf32>
    %436 = arith.addf %431, %435 : vector<16x16xf32>
    %c33 = arith.constant 33 : index
    %437 = memref.load %arg1[%c33] : memref<98xf32, #tpu.memory_space<smem>>
    %438 = vector.extract_strided_slice %394 {offsets = [4, 0], sizes = [16, 16], strides = [1, 1]} : vector<22x16xf32> to vector<16x16xf32>
    %439 = vector.broadcast %437 : f32 to vector<16x16xf32>
    %440 = arith.mulf %439, %438 : vector<16x16xf32>
    %441 = arith.addf %436, %440 : vector<16x16xf32>
    %c82 = arith.constant 82 : index
    %442 = memref.load %arg1[%c82] : memref<98xf32, #tpu.memory_space<smem>>
    %443 = vector.extract_strided_slice %396 {offsets = [4, 0], sizes = [16, 16], strides = [1, 1]} : vector<22x16xf32> to vector<16x16xf32>
    %444 = vector.broadcast %442 : f32 to vector<16x16xf32>
    %445 = arith.mulf %444, %443 : vector<16x16xf32>
    %446 = arith.addf %441, %445 : vector<16x16xf32>
    %c40 = arith.constant 40 : index
    %447 = memref.load %arg1[%c40] : memref<98xf32, #tpu.memory_space<smem>>
    %448 = vector.extract_strided_slice %394 {offsets = [5, 0], sizes = [16, 16], strides = [1, 1]} : vector<22x16xf32> to vector<16x16xf32>
    %449 = vector.broadcast %447 : f32 to vector<16x16xf32>
    %450 = arith.mulf %449, %448 : vector<16x16xf32>
    %451 = arith.addf %446, %450 : vector<16x16xf32>
    %c89 = arith.constant 89 : index
    %452 = memref.load %arg1[%c89] : memref<98xf32, #tpu.memory_space<smem>>
    %453 = vector.extract_strided_slice %396 {offsets = [5, 0], sizes = [16, 16], strides = [1, 1]} : vector<22x16xf32> to vector<16x16xf32>
    %454 = vector.broadcast %452 : f32 to vector<16x16xf32>
    %455 = arith.mulf %454, %453 : vector<16x16xf32>
    %456 = arith.addf %451, %455 : vector<16x16xf32>
    %c47 = arith.constant 47 : index
    %457 = memref.load %arg1[%c47] : memref<98xf32, #tpu.memory_space<smem>>
    %458 = vector.extract_strided_slice %394 {offsets = [6, 0], sizes = [16, 16], strides = [1, 1]} : vector<22x16xf32> to vector<16x16xf32>
    %459 = vector.broadcast %457 : f32 to vector<16x16xf32>
    %460 = arith.mulf %459, %458 : vector<16x16xf32>
    %461 = arith.addf %456, %460 : vector<16x16xf32>
    %c96 = arith.constant 96 : index
    %462 = memref.load %arg1[%c96] : memref<98xf32, #tpu.memory_space<smem>>
    %463 = vector.extract_strided_slice %396 {offsets = [6, 0], sizes = [16, 16], strides = [1, 1]} : vector<22x16xf32> to vector<16x16xf32>
    %464 = vector.broadcast %462 : f32 to vector<16x16xf32>
    %465 = arith.mulf %464, %463 : vector<16x16xf32>
    %466 = arith.addf %461, %465 : vector<16x16xf32>
    %c0_62 = arith.constant 0 : index
    %c0_63 = arith.constant 0 : index
    %c6 = arith.constant 6 : index
    %467 = vector.load %arg4[%c0_62, %c0_63, %c6] : memref<2x22x22xf32, #tpu.memory_space<vmem>>, vector<1x22x16xf32>
    %468 = vector.shape_cast %467 : vector<1x22x16xf32> to vector<22x16xf32>
    %c1_64 = arith.constant 1 : index
    %c0_65 = arith.constant 0 : index
    %c6_66 = arith.constant 6 : index
    %469 = vector.load %arg4[%c1_64, %c0_65, %c6_66] : memref<2x22x22xf32, #tpu.memory_space<vmem>>, vector<1x22x16xf32>
    %470 = vector.shape_cast %469 : vector<1x22x16xf32> to vector<22x16xf32>
    %c6_67 = arith.constant 6 : index
    %471 = memref.load %arg1[%c6_67] : memref<98xf32, #tpu.memory_space<smem>>
    %472 = vector.extract_strided_slice %468 {offsets = [0, 0], sizes = [16, 16], strides = [1, 1]} : vector<22x16xf32> to vector<16x16xf32>
    %473 = vector.broadcast %471 : f32 to vector<16x16xf32>
    %474 = arith.mulf %473, %472 : vector<16x16xf32>
    %475 = arith.addf %466, %474 : vector<16x16xf32>
    %c55 = arith.constant 55 : index
    %476 = memref.load %arg1[%c55] : memref<98xf32, #tpu.memory_space<smem>>
    %477 = vector.extract_strided_slice %470 {offsets = [0, 0], sizes = [16, 16], strides = [1, 1]} : vector<22x16xf32> to vector<16x16xf32>
    %478 = vector.broadcast %476 : f32 to vector<16x16xf32>
    %479 = arith.mulf %478, %477 : vector<16x16xf32>
    %480 = arith.addf %475, %479 : vector<16x16xf32>
    %c13 = arith.constant 13 : index
    %481 = memref.load %arg1[%c13] : memref<98xf32, #tpu.memory_space<smem>>
    %482 = vector.extract_strided_slice %468 {offsets = [1, 0], sizes = [16, 16], strides = [1, 1]} : vector<22x16xf32> to vector<16x16xf32>
    %483 = vector.broadcast %481 : f32 to vector<16x16xf32>
    %484 = arith.mulf %483, %482 : vector<16x16xf32>
    %485 = arith.addf %480, %484 : vector<16x16xf32>
    %c62 = arith.constant 62 : index
    %486 = memref.load %arg1[%c62] : memref<98xf32, #tpu.memory_space<smem>>
    %487 = vector.extract_strided_slice %470 {offsets = [1, 0], sizes = [16, 16], strides = [1, 1]} : vector<22x16xf32> to vector<16x16xf32>
    %488 = vector.broadcast %486 : f32 to vector<16x16xf32>
    %489 = arith.mulf %488, %487 : vector<16x16xf32>
    %490 = arith.addf %485, %489 : vector<16x16xf32>
    %c20 = arith.constant 20 : index
    %491 = memref.load %arg1[%c20] : memref<98xf32, #tpu.memory_space<smem>>
    %492 = vector.extract_strided_slice %468 {offsets = [2, 0], sizes = [16, 16], strides = [1, 1]} : vector<22x16xf32> to vector<16x16xf32>
    %493 = vector.broadcast %491 : f32 to vector<16x16xf32>
    %494 = arith.mulf %493, %492 : vector<16x16xf32>
    %495 = arith.addf %490, %494 : vector<16x16xf32>
    %c69 = arith.constant 69 : index
    %496 = memref.load %arg1[%c69] : memref<98xf32, #tpu.memory_space<smem>>
    %497 = vector.extract_strided_slice %470 {offsets = [2, 0], sizes = [16, 16], strides = [1, 1]} : vector<22x16xf32> to vector<16x16xf32>
    %498 = vector.broadcast %496 : f32 to vector<16x16xf32>
    %499 = arith.mulf %498, %497 : vector<16x16xf32>
    %500 = arith.addf %495, %499 : vector<16x16xf32>
    %c27 = arith.constant 27 : index
    %501 = memref.load %arg1[%c27] : memref<98xf32, #tpu.memory_space<smem>>
    %502 = vector.extract_strided_slice %468 {offsets = [3, 0], sizes = [16, 16], strides = [1, 1]} : vector<22x16xf32> to vector<16x16xf32>
    %503 = vector.broadcast %501 : f32 to vector<16x16xf32>
    %504 = arith.mulf %503, %502 : vector<16x16xf32>
    %505 = arith.addf %500, %504 : vector<16x16xf32>
    %c76 = arith.constant 76 : index
    %506 = memref.load %arg1[%c76] : memref<98xf32, #tpu.memory_space<smem>>
    %507 = vector.extract_strided_slice %470 {offsets = [3, 0], sizes = [16, 16], strides = [1, 1]} : vector<22x16xf32> to vector<16x16xf32>
    %508 = vector.broadcast %506 : f32 to vector<16x16xf32>
    %509 = arith.mulf %508, %507 : vector<16x16xf32>
    %510 = arith.addf %505, %509 : vector<16x16xf32>
    %c34 = arith.constant 34 : index
    %511 = memref.load %arg1[%c34] : memref<98xf32, #tpu.memory_space<smem>>
    %512 = vector.extract_strided_slice %468 {offsets = [4, 0], sizes = [16, 16], strides = [1, 1]} : vector<22x16xf32> to vector<16x16xf32>
    %513 = vector.broadcast %511 : f32 to vector<16x16xf32>
    %514 = arith.mulf %513, %512 : vector<16x16xf32>
    %515 = arith.addf %510, %514 : vector<16x16xf32>
    %c83 = arith.constant 83 : index
    %516 = memref.load %arg1[%c83] : memref<98xf32, #tpu.memory_space<smem>>
    %517 = vector.extract_strided_slice %470 {offsets = [4, 0], sizes = [16, 16], strides = [1, 1]} : vector<22x16xf32> to vector<16x16xf32>
    %518 = vector.broadcast %516 : f32 to vector<16x16xf32>
    %519 = arith.mulf %518, %517 : vector<16x16xf32>
    %520 = arith.addf %515, %519 : vector<16x16xf32>
    %c41 = arith.constant 41 : index
    %521 = memref.load %arg1[%c41] : memref<98xf32, #tpu.memory_space<smem>>
    %522 = vector.extract_strided_slice %468 {offsets = [5, 0], sizes = [16, 16], strides = [1, 1]} : vector<22x16xf32> to vector<16x16xf32>
    %523 = vector.broadcast %521 : f32 to vector<16x16xf32>
    %524 = arith.mulf %523, %522 : vector<16x16xf32>
    %525 = arith.addf %520, %524 : vector<16x16xf32>
    %c90 = arith.constant 90 : index
    %526 = memref.load %arg1[%c90] : memref<98xf32, #tpu.memory_space<smem>>
    %527 = vector.extract_strided_slice %470 {offsets = [5, 0], sizes = [16, 16], strides = [1, 1]} : vector<22x16xf32> to vector<16x16xf32>
    %528 = vector.broadcast %526 : f32 to vector<16x16xf32>
    %529 = arith.mulf %528, %527 : vector<16x16xf32>
    %530 = arith.addf %525, %529 : vector<16x16xf32>
    %c48 = arith.constant 48 : index
    %531 = memref.load %arg1[%c48] : memref<98xf32, #tpu.memory_space<smem>>
    %532 = vector.extract_strided_slice %468 {offsets = [6, 0], sizes = [16, 16], strides = [1, 1]} : vector<22x16xf32> to vector<16x16xf32>
    %533 = vector.broadcast %531 : f32 to vector<16x16xf32>
    %534 = arith.mulf %533, %532 : vector<16x16xf32>
    %535 = arith.addf %530, %534 : vector<16x16xf32>
    %c97 = arith.constant 97 : index
    %536 = memref.load %arg1[%c97] : memref<98xf32, #tpu.memory_space<smem>>
    %537 = vector.extract_strided_slice %470 {offsets = [6, 0], sizes = [16, 16], strides = [1, 1]} : vector<22x16xf32> to vector<16x16xf32>
    %538 = vector.broadcast %536 : f32 to vector<16x16xf32>
    %539 = arith.mulf %538, %537 : vector<16x16xf32>
    %540 = arith.addf %535, %539 : vector<16x16xf32>
    %541 = arith.negf %540 : vector<16x16xf32>
    %542 = math.exp %541 : vector<16x16xf32>
    %cst_68 = arith.constant 1.000000e+00 : f32
    %543 = vector.broadcast %cst_68 : f32 to vector<16x16xf32>
    %544 = arith.addf %543, %542 : vector<16x16xf32>
    %545 = arith.divf %543, %544 : vector<16x16xf32>
    %c0_69 = arith.constant 0 : index
    %c0_70 = arith.constant 0 : index
    %c0_71 = arith.constant 0 : index
    %c0_72 = arith.constant 0 : index
    %546 = vector.load %arg2[%c0_69, %c0_70, %c0_71, %c0_72] : memref<1x4x16x16xf32, #tpu.memory_space<vmem>>, vector<1x1x16x16xf32>
    %547 = vector.shape_cast %546 : vector<1x1x16x16xf32> to vector<16x16xf32>
    %548 = arith.mulf %547, %545 : vector<16x16xf32>
    %c0_73 = arith.constant 0 : index
    %c0_74 = arith.constant 0 : index
    %c0_75 = arith.constant 0 : index
    %c0_76 = arith.constant 0 : index
    %549 = vector.load %arg3[%c0_73, %c0_74, %c0_75, %c0_76] : memref<1x4x16x16xf32, #tpu.memory_space<vmem>>, vector<1x1x16x16xf32>
    %550 = vector.shape_cast %549 : vector<1x1x16x16xf32> to vector<16x16xf32>
    %551 = vector.shape_cast %548 : vector<16x16xf32> to vector<1x1x16x16xf32>
    tpu.vector_store %arg3[%c0_73, %c0_74, %c0_75, %c0_76], %551 {strides = array<i32>} : memref<1x4x16x16xf32, #tpu.memory_space<vmem>>, vector<1x1x16x16xf32>,
    %c0_77 = arith.constant 0 : index
    %c1_78 = arith.constant 1 : index
    %c0_79 = arith.constant 0 : index
    %c0_80 = arith.constant 0 : index
    %552 = vector.load %arg2[%c0_77, %c1_78, %c0_79, %c0_80] : memref<1x4x16x16xf32, #tpu.memory_space<vmem>>, vector<1x1x16x16xf32>
    %553 = vector.shape_cast %552 : vector<1x1x16x16xf32> to vector<16x16xf32>
    %554 = arith.mulf %553, %545 : vector<16x16xf32>
    %c0_81 = arith.constant 0 : index
    %c1_82 = arith.constant 1 : index
    %c0_83 = arith.constant 0 : index
    %c0_84 = arith.constant 0 : index
    %555 = vector.load %arg3[%c0_81, %c1_82, %c0_83, %c0_84] : memref<1x4x16x16xf32, #tpu.memory_space<vmem>>, vector<1x1x16x16xf32>
    %556 = vector.shape_cast %555 : vector<1x1x16x16xf32> to vector<16x16xf32>
    %557 = vector.shape_cast %554 : vector<16x16xf32> to vector<1x1x16x16xf32>
    tpu.vector_store %arg3[%c0_81, %c1_82, %c0_83, %c0_84], %557 {strides = array<i32>} : memref<1x4x16x16xf32, #tpu.memory_space<vmem>>, vector<1x1x16x16xf32>,
    %c0_85 = arith.constant 0 : index
    %c2_86 = arith.constant 2 : index
    %c0_87 = arith.constant 0 : index
    %c0_88 = arith.constant 0 : index
    %558 = vector.load %arg2[%c0_85, %c2_86, %c0_87, %c0_88] : memref<1x4x16x16xf32, #tpu.memory_space<vmem>>, vector<1x1x16x16xf32>
    %559 = vector.shape_cast %558 : vector<1x1x16x16xf32> to vector<16x16xf32>
    %560 = arith.mulf %559, %545 : vector<16x16xf32>
    %c0_89 = arith.constant 0 : index
    %c2_90 = arith.constant 2 : index
    %c0_91 = arith.constant 0 : index
    %c0_92 = arith.constant 0 : index
    %561 = vector.load %arg3[%c0_89, %c2_90, %c0_91, %c0_92] : memref<1x4x16x16xf32, #tpu.memory_space<vmem>>, vector<1x1x16x16xf32>
    %562 = vector.shape_cast %561 : vector<1x1x16x16xf32> to vector<16x16xf32>
    %563 = vector.shape_cast %560 : vector<16x16xf32> to vector<1x1x16x16xf32>
    tpu.vector_store %arg3[%c0_89, %c2_90, %c0_91, %c0_92], %563 {strides = array<i32>} : memref<1x4x16x16xf32, #tpu.memory_space<vmem>>, vector<1x1x16x16xf32>,
    %c0_93 = arith.constant 0 : index
    %c3_94 = arith.constant 3 : index
    %c0_95 = arith.constant 0 : index
    %c0_96 = arith.constant 0 : index
    %564 = vector.load %arg2[%c0_93, %c3_94, %c0_95, %c0_96] : memref<1x4x16x16xf32, #tpu.memory_space<vmem>>, vector<1x1x16x16xf32>
    %565 = vector.shape_cast %564 : vector<1x1x16x16xf32> to vector<16x16xf32>
    %566 = arith.mulf %565, %545 : vector<16x16xf32>
    %c0_97 = arith.constant 0 : index
    %c3_98 = arith.constant 3 : index
    %c0_99 = arith.constant 0 : index
    %c0_100 = arith.constant 0 : index
    %567 = vector.load %arg3[%c0_97, %c3_98, %c0_99, %c0_100] : memref<1x4x16x16xf32, #tpu.memory_space<vmem>>, vector<1x1x16x16xf32>
    %568 = vector.shape_cast %567 : vector<1x1x16x16xf32> to vector<16x16xf32>
    %569 = vector.shape_cast %566 : vector<16x16xf32> to vector<1x1x16x16xf32>
    tpu.vector_store %arg3[%c0_97, %c3_98, %c0_99, %c0_100], %569 {strides = array<i32>} : memref<1x4x16x16xf32, #tpu.memory_space<vmem>>, vector<1x1x16x16xf32>,
    return
  }
  func.func @transform_0(%arg0: i32) -> i32 {
    %c0_i32 = arith.constant 0 : i32
    %c0_i32_0 = arith.constant 0 : i32
    return %c0_i32 : i32
  }
  func.func @transform_1(%arg0: i32) -> (i32, i32, i32, i32) {
    %c0_i32 = arith.constant 0 : i32
    %c0_i32_0 = arith.constant 0 : i32
    %c0_i32_1 = arith.constant 0 : i32
    %c0_i32_2 = arith.constant 0 : i32
    return %arg0, %c0_i32, %c0_i32_0, %c0_i32_1 : i32, i32, i32, i32
  }
  func.func @transform_2(%arg0: i32) -> (i32, i32, i32, i32) {
    %c0_i32 = arith.constant 0 : i32
    %c0_i32_0 = arith.constant 0 : i32
    %c0_i32_1 = arith.constant 0 : i32
    %c0_i32_2 = arith.constant 0 : i32
    return %arg0, %c0_i32, %c0_i32_0, %c0_i32_1 : i32, i32, i32, i32
  }
}

</mosaic_0001>

<bundles_post_ra>
// kernel: tpu_custom_call.1
= control target key start
LH: loop header
LB: loop body
LE: loop exit
PB: predicated region body
PF: predicated region fallthrough
CT: control target
= control target key end

     0   :  { %s4115_s0 = inlined_call_operand.hbm [shape: f32[98], index: 0, kind: input, shape index: {}]   ;;  %s4116_s1 = inlined_call_operand.hbm [shape: f32[2,4,16,16], index: 1, kind: input, shape index: {}]   ;;  %s4117_s2 = inlined_call_operand.hbm [shape: f32[2,4,16,16], index: 2, kind: output, shape index: {}]  }
   0x1   :  { %4127 = sst [smem:[#allocation14_spill]] %s4115_s0 }
   0x2   :  { %4128 = sst [smem:[#allocation15_spill]] %s4116_s1 }
   0x3   :  { %7 = vsyncpa [#allocation6], 0 }
   0x4   :  { %8 = vsyncpa [#allocation4], 0 }
   0x5   :  { %10 = vsyncpa [#allocation4 + $0x1], 0 }
   0x6   :  { %11 = vsyncpa [#allocation5], 0 }
   0x7   :  { %13 = vsyncpa [#allocation5 + $0x1], 0  ;;  %s2643_s9 = smov 0   ;;  %s2645_s10 = smov 0  }
   0x8   :  { %s2647_s11 = smov 0   ;;  %s2649_s12 = smov 0  }
   0x9 LB: > { %4129 = sst [smem:[#allocation12_spill]] %s2607_s11  ;;  %s2664_s13 = sadd.s32 4294967295, %s2611_s12   ;;  %s2611_s12 = sphi %s2649_s12, %s4155_s12   ;;  %s2607_s11 = sphi %s2647_s11, %s4152_s11   ;;  %s2603_s10 = sphi %s2645_s10, %s4154_s10   ;;  %s2599_s9 = sphi %s2643_s9, %s4153_s9  }
   0xa   : > { %s2274_s14 = sadd.s32 4294967294, %s2611_s12   ;;  %s2668_s15 = sadd.s32 1, %s2611_s12  }
   0xb   : > { %s47_s16 = sadd.s32 1, %s2607_s11  ;;  %s44_s17 = ssub.s32 %s2611_s12, %s2668_s15 }
   0xc   : > { %p54_p0 = scmp.ne.s32.totalorder %s2607_s11, %s2603_s10  ;;  %p45_p1 = scmp.eq.s32.totalorder %s44_s17, 0 }
   0xd   : > { %p55_p2 = scmp.eq.s32.totalorder %s2611_s12, 0  ;;  %p60_p3 = scmp.ne.s32.totalorder %s2603_s10, %s2599_s9 }
   0xe   : > { %p4118_p4 = scmp.eq.s32.totalorder %s2664_s13, 0  ;;  %p84_p7 = scmp.eq.s32.totalorder %s2664_s13, 1 }
   0xf   : > { %s2680_s18 = scalar_select %p45_p1, %s2607_s11, %s47_s16  }
  0x10   : > { %p2682_p5 = por %p55_p2, %p54_p0  ;;  %p2688_p6 = por %p4118_p4, %p60_p3 }
  0x11   : > { %4130 = sst [smem:[#allocation13_spill]] %s2680_s18  ;;  %p90_p8 = scmp.eq.s32.totalorder %s2274_s14, 1 }
  0x12   : > { %s4132_s20 = scalar_select %p2688_p6, 1, 0 }
  0x13   : > { %p2275_p9 = scmp.ge.s32.totalorder %s2611_s12, 1  ;;  %p97_p10 = scmp.lt.s32.totalorder %s2611_s12, 3 }
  0x14   : > { %p2695_p11 = por %p84_p7, %p54_p0  ;;  %p2699_p12 = por %p90_p8, %p60_p3 }
  0x15   : > { %p2703_p13 = pnand %p2275_p9, %p97_p10  ;;  %p2430_p4 = scmp.lt.s32.totalorder %s2611_s12, 2 }
  0x16   : > { %s4133_s21 = scalar_select %p2695_p11, 1, 0 }
  0x17   : > { %s4134_s22 = scalar_select %p2699_p12, 1, 0 }
  0x18   : > { %p2417_p2 = pneg %p2703_p13  ;;  %s119_s24 = sand.u32 1, %s2607_s11  }
  0x19   : > { %s2407_s25 = sshll.u32 %s2611_s12, 10  ;;  %p4136_p6 = scmp.eq.s32.totalorder %s2664_s13, 0 }
  0x1a   : > { %p2717_p7 = pnand %p2430_p4, %p2682_p5  ;;  %s2278_s27 = sshll.u32 %s119_s24, 6 }
  0x1b   : > { %p2418_p0 = pnand %p2417_p2, %p4136_p6  ;;  %s4138_s0 = sld [smem:[#allocation14_spill]] }
  0x1d   : > { %p2500_p8 = pneg %p2418_p0 }
  0x21   : > { %s2498_s30 = scalar_lea.hbm %s4138_s0, 16 }
  0x22   : > { %p2499_p3 = scmp.ne.s32.totalorder %s4138_s0, %s2498_s30  ;;  %p2505_p6 = scmp.lt.u32.totalorder %s2498_s30, %s4138_s0 }
  0x24   : > { %p2501_p9 = pnand %p2500_p8, %p2499_p3 }
  0x26   : > { %p2502_p10 = pneg %p2501_p9 }
  0x28   : > { %p2507_p4 = pnand %p2505_p6, %p2502_p10 }
  0x2a   : > { %2510 = shalt.err (!%p2507_p4)
}
  0x2b   : > { %s2613_s7 = smov [#allocation3]   ;;  %s4139_s1 = sld [smem:[#allocation15_spill]] }
  0x2c   : > { %2420 = dma.hbm_to_smem (!%p2418_p0), %s4138_s0, 16, %s2613_s7, [#allocation6]  }
  0x2d   : > { %s123_s28 = scalar_lea.vmem [#allocation7], %s2278_s27  ;;  %s2740_s30 = scalar_lea.sflag [#allocation4], %s119_s24 }
  0x2e   : > { %s130_s29 = sshll.u32 %s123_s28, 4  ;;  %p2513_p2 = pneg %p2717_p7  ;;  %s2738_s29 = int_to_ptr.vmem [resolvable:$true] %s130_s29 }
  0x31   : > { %s2736_s19 = scalar_lea.hbm %s4139_s1, %s2407_s25  ;;  %s2516_s5 = scalar_lea.hbm %s4139_s1, 2048 }
  0x32   : > { %s2511_s3 = scalar_lea.hbm %s2736_s19, 1024  ;;  %p2517_p8 = scmp.lt.u32.totalorder %s2736_s19, %s4139_s1 }
  0x33   : > { %p2512_p5 = scmp.ne.s32.totalorder %s2736_s19, %s2511_s3  ;;  %p2518_p9 = scmp.lt.u32.totalorder %s2516_s5, %s2511_s3 }
  0x34   : > { %p2520_p6 = scmp.lt.u32.totalorder %s2511_s3, %s2736_s19 }
  0x35   : > { %p2514_p0 = pnand %p2513_p2, %p2512_p5  ;;  %p2519_p10 = por %p2518_p9, %p2517_p8 }
  0x37   : > { %p2515_p3 = pneg %p2514_p0  ;;  %p2521_p4 = por %p2520_p6, %p2519_p10 }
  0x39   : > { %p2522_p1 = pnand %p2521_p4, %p2515_p3 }
  0x3b   : > { %2525 = shalt.err (!%p2522_p1)
}
  0x3c   : > { %s2526_s24 = scalar_lea.vmem %s2738_s29, 1024  ;;  %s2614_s27 = smov [#allocation7]  }
  0x3d   : > { %p2527_p5 = scmp.ne.s32.totalorder %s2738_s29, %s2526_s24  ;;  %s2531_s8 = sshll.u32 %s2614_s27, 4  ;;  %s2532_s8 = int_to_ptr.vmem [resolvable:$false] %s2531_s8 }
  0x3e   : > { %s2533_s14 = scalar_lea.vmem %s2532_s8, 2048  ;;  %p2534_p11 = scmp.lt.s32.totalorder %s2738_s29, %s2532_s8 }
  0x3f   : > { %p2529_p0 = pnand %p2527_p5, %p2513_p2  ;;  %p2535_p8 = scmp.lt.s32.totalorder %s2533_s14, %s2526_s24 }
  0x41   : > { %p2530_p12 = pneg %p2529_p0  ;;  %p2536_p9 = por %p2535_p8, %p2534_p11 }
  0x43   : > { %p2537_p10 = pnand %p2536_p9, %p2530_p12 }
  0x45   : > { %2540 = shalt.err (!%p2537_p10)
}
  0x46   : > { %s2615_s16 = smov 128   ;;  %s2616_s17 = smov 8  }
  0x47   : > { %2424 = dma.hbm_to_vmem [thread:$0]  (!%p2717_p7), %s2736_s19, 1024, %s2738_s29, %s2740_s30, %s2615_s16, %s2615_s16, %s2616_s17  }
  0x48   : > { %142 = sbr.rel (%p2703_p13) target bundleno = 715 (0x2cb), region = 28  ;;  %p4140_p1 = scmp.eq.s32.totalorder (!%p2703_p13), %s2664_s13, 0 }
  0x4f   : > { %2586 = dma.done.wait (%p4140_p1), [#allocation6], 16   ;;  %p4141_p2 = pmov %p4140_p1 }
  0x50   : > { %s2775_s28 = sand.u32 1, %s2603_s10   ;;  %p4142_p11 = scmp.ne.s32.totalorder %s4132_s20, 0 }
  0x51   : > { %2588 = vsyncadd (%p4141_p2), [#allocation6], 4294967280  ;;  %s4121_s3 = sshll.u32 %s2775_s28, 6  ;;  %s149_s25 = scalar_lea.sflag [#allocation4], %s2775_s28 }
  0x52   : > { %s2781_s26 = scalar_lea.vmem [#allocation7], %s4121_s3 }
  0x53   : > { %2590 = dma.done.wait (%p4142_p11), %s149_s25, 1024  }
  0x54   : > { %2592 = vsyncadd (%p4142_p11), %s149_s25, 4294966272 }
  0x55   : > { %157 = sfence }
  0x56   : > { %v174_v0 = vld [vmem:[%s2781_s26] sm:$0xff]  ;;  %v2285_v1 = vld [vmem:[%s2781_s26 + $0x10] sm:$0xff]  ;;  %vm197_vm0 = vcmask 179200   ;;  %v175_v5 = vld [vmem:[%s2781_s26 + $0x8] sm:$0xff]  ;;  %v2617_v7 = vmov 0.0   ;;  %vm200_vm1 = vcmask 177152  }
  0x57   : > { %v2287_v2 = vld [vmem:[%s2781_s26 + $0x20] sm:$0xff]  ;;  %v181_v3 = vmax.f32 %v174_v0, %v2285_v1  ;;  %v179_v4 = vadd.f32 %v2285_v1, %v174_v0  ;;  %v2286_v6 = vld [vmem:[%s2781_s26 + $0x18] sm:$0xff]  ;;  %202 = vst.msk [vmem:[#allocation2 + $0x18] sm:$0xff] %vm197_vm0, %v2617_v7  ;;  %203 = vst.msk [vmem:[#allocation2 + $0x20] sm:$0xff] %vm197_vm0, %v2617_v7  ;;  %s2618_s20 = smov 3   ;;  %vm213_vm2 = vcmask 154648  }
  0x58   : > { %198 = vst.msk [vmem:[#allocation2] sm:$0xff] %vm197_vm0, %v2617_v7  ;;  %199 = vst.msk [vmem:[#allocation2 + $0x8] sm:$0xff] %vm197_vm0, %v2617_v7  ;;  %v2289_v8 = vld [vmem:[%s2781_s26 + $0x30] sm:$0xff]  ;;  %v182_v9 = vmax.f32 %v175_v5, %v2286_v6  ;;  %v2288_v10 = vld [vmem:[%s2781_s26 + $0x28] sm:$0xff]  ;;  %v180_v11 = vadd.f32 %v2286_v6, %v175_v5  ;;  %s2304_s23 = sld [smem:[#allocation3 + $0x1]]  ;;  %s2305_s19 = sld [smem:[#allocation3 + $0x32]] }
  0x59   : > { %204 = vst.msk [vmem:[#allocation2 + $0x28] sm:$0x3f] %vm200_vm1, %v2617_v7  ;;  %201 = vst.msk [vmem:[#allocation2 + $0x10] sm:$0x3f] %vm200_vm1, %v2617_v7  ;;  %v188_v12 = vmax.f32 %v181_v3, %v2287_v2  ;;  %v186_v13 = vadd.f32 %v2287_v2, %v179_v4  ;;  %v2290_v15 = vld [vmem:[%s2781_s26 + $0x38] sm:$0xff]  ;;  %s2318_s29 = sld [smem:[#allocation3 + $0x2]] }
  0x5a   : > { %v189_v14 = vmax.f32 %v182_v9, %v2288_v10  ;;  %v187_v16 = vadd.f32 %v2288_v10, %v180_v11  ;;  %s2319_s30 = sld [smem:[#allocation3 + $0x33]]  ;;  %s2619_s4 = smov 127   ;;  %vm253_vm3 = vcmask 1046528   ;;  %vm288_vm4 = vcmask 1045504  }
  0x5b   : > { %v195_v17 = vmax.f32 %v188_v12, %v2289_v8  ;;  %v193_v18 = vadd.f32 %v2289_v8, %v186_v13  ;;  %s2807_s5 = sld [smem:[#allocation3 + $0x3]]  ;;  %s2306_s6 = sld [smem:[#allocation3 + $0x8]]  ;;  %vm323_vm5 = vcmask 1044480   ;;  %vm358_vm6 = vcmask 1043456  }
  0x5c   : > { %v196_v19 = vmax.f32 %v189_v14, %v2290_v15  ;;  %v194_v20 = vadd.f32 %v2290_v15, %v187_v16  ;;  %s2813_s7 = sld [smem:[#allocation3 + $0x34]]  ;;  %s2307_s24 = sld [smem:[#allocation3 + $0x39]]  ;;  %vm393_vm7 = vcmask 1042432   ;;  %vm428_vm8 = vcmask 1041408  }
  0x5d   : > { %218 = vrot.lane.b32.xlu1 %v195_v17, %s2618_s20  ;;  %207 = vrot.lane.b32.xlu0 %v193_v18, %s2618_s20  ;;  %s2620_s27 = smov 126   ;;  %s2308_s8 = sld [smem:[#allocation3 + $0xf]]  ;;  %vm2151_vm9 = vcmask 130048  }
  0x5e   : > { %v456_v25 = vstv %s2304_s23  ;;  %v470_v27 = vstv %s2305_s19  ;;  %s2309_s14 = sld [smem:[#allocation3 + $0x40]]  ;;  %s4122_s16 = smov 125  }
  0x5f   : > { %v736_v34 = vstv %s2318_s29  ;;  %s2310_s17 = sld [smem:[#allocation3 + $0x16]]  ;;  %s2311_s25 = sld [smem:[#allocation3 + $0x47]] }
  0x60   : > { %v750_v37 = vstv %s2319_s30  ;;  %s2313_s23 = sld [smem:[#allocation3 + $0x4e]]  ;;  %s2314_s19 = sld [smem:[#allocation3 + $0x24]] }
  0x61   : > { %220 = vrot.lane.b32.xlu1 %v196_v19, %s2618_s20  ;;  %209 = vrot.lane.b32.xlu0 %v194_v20, %s2618_s20  ;;  %v1016_v40 = vstv %s2807_s5  ;;  %v484_v43 = vstv %s2306_s6  ;;  %s2312_s20 = sld [smem:[#allocation3 + $0x1d]]  ;;  %s2316_s30 = sld [smem:[#allocation3 + $0x2b]] }
  0x62   : > { %v1030_v44 = vstv %s2813_s7  ;;  %v505_v46 = vstv %s2307_s24  ;;  %s2315_s29 = sld [smem:[#allocation3 + $0x55]]  ;;  %s2317_s5 = sld [smem:[#allocation3 + $0x5c]] }
  0x63   : > { %v526_v57 = vstv %s2308_s8  ;;  %s2320_s6 = sld [smem:[#allocation3 + $0x9]]  ;;  %s2321_s7 = sld [smem:[#allocation3 + $0x3a]] }
  0x64   : > { %v547_v61 = vstv %s2309_s14  ;;  %s2322_s24 = sld [smem:[#allocation3 + $0x10]]  ;;  %s2323_s8 = sld [smem:[#allocation3 + $0x41]] }
  0x65   : > { %v568_v11 = vstv %s2310_s17  ;;  %v589_v15 = vstv %s2311_s25  ;;  %s2324_s14 = sld [smem:[#allocation3 + $0x17]]  ;;  %s2325_s17 = sld [smem:[#allocation3 + $0x48]] }
  0x66   : > { %s2327_s25 = sld [smem:[#allocation3 + $0x4f]]  ;;  %s2991_s3 = sld [smem:[#allocation3 + $0x2a]] }
  0x67   : > { %s3015_s0 = sld [smem:[#allocation3 + $0x11]]  ;;  %s3026_s1 = sld [smem:[#allocation3 + $0x3b]] }
  0x68   : > { %s3028_s18 = sld [smem:[#allocation3 + $0x18]]  ;;  %s3055_s11 = sld [smem:[#allocation3 + $0x26]] }
  0x69   : > { %p4148_p13 = scmp.ne.s32.totalorder %s4133_s21, 0 }
  0xcf   : > { %v219_v21 = vpop.permute.xlu1 %218  ;;  %v208_v22 = vpop.permute.xlu0 %207 }
  0xd0   : > { %225 = vst.msk [vmem:[#allocation2 + $0x1b] sm:$0xff] %vm213_vm2, %v219_v21  ;;  %214 = vst.msk [vmem:[#allocation2 + $0x3] sm:$0xff] %vm213_vm2, %v208_v22 }
  0xd3   : > { %v221_v23 = vpop.permute.xlu1 %220  ;;  %v210_v24 = vpop.permute.xlu0 %209 }
  0xd4   : > { %226 = vst.msk [vmem:[#allocation2 + $0x23] sm:$0xff] %vm213_vm2, %v221_v23  ;;  %215 = vst.msk [vmem:[#allocation2 + $0xb] sm:$0xff] %vm213_vm2, %v210_v24 }
  0xd7   : > { %v2795_v26 = vld [vmem:[#allocation2] sm:$0xff]  ;;  %v2798_v29 = vld [vmem:[#allocation2 + $0x18] sm:$0xff] }
  0xd8   : > { %v457_v28 = vmul.f32 %v456_v25, %v2795_v26  ;;  %v471_v30 = vmul.f32 %v470_v27, %v2798_v29  ;;  %v737_v35 = vmul.f32 %v736_v34, %v2795_v26  ;;  %v751_v38 = vmul.f32 %v750_v37, %v2798_v29 }
  0xd9   : > { %v1017_v41 = vmul.f32 %v1016_v40, %v2795_v26  ;;  %v485_v48 = vmul.f32 %v484_v43, %v2795_v26  ;;  %v1031_v49 = vmul.f32 %v1030_v44, %v2798_v29  ;;  %v506_v51 = vmul.f32 %v505_v46, %v2798_v29 }
  0xda   : > { %461 = vrot.lane.b32.xlu0 %v457_v28, %s2619_s4  ;;  %v527_v2 = vmul.f32 %v526_v57, %v2795_v26  ;;  %v548_v4 = vmul.f32 %v547_v61, %v2798_v29  ;;  %v569_v20 = vmul.f32 %v568_v11, %v2795_v26  ;;  %v590_v23 = vmul.f32 %v589_v15, %v2798_v29 }
  0xdb   : > { %v2802_v31 = vld [vmem:[#allocation2 + $0x8] sm:$0xff]  ;;  %v2805_v33 = vld [vmem:[#allocation2 + $0x20] sm:$0xff]  ;;  %v2826_v47 = vld [vmem:[#allocation2 + $0x10] sm:$0x3f]  ;;  %v491_v56 = vrot.slane %v485_v48, 1  ;;  %v512_v59 = vrot.slane %v506_v51, 1 }
  0xdc   : > { %v458_v32 = vmul.f32 %v456_v25, %v2802_v31  ;;  %v472_v36 = vmul.f32 %v470_v27, %v2805_v33  ;;  %v738_v39 = vmul.f32 %v736_v34, %v2802_v31  ;;  %v752_v42 = vmul.f32 %v750_v37, %v2805_v33  ;;  %v2836_v55 = vld [vmem:[#allocation2 + $0x28] sm:$0x3f] }
  0xdd   : > { %v486_v45 = vmul.f32 %v484_v43, %v2802_v31  ;;  %v1018_v50 = vmul.f32 %v1016_v40, %v2802_v31  ;;  %v507_v53 = vmul.f32 %v505_v46, %v2805_v33  ;;  %v487_v54 = vmul.f32 %v484_v43, %v2826_v47 }
  0xde   : > { %475 = vrot.lane.b32.xlu0 %v471_v30, %s2619_s4  ;;  %463 = vrot.lane.b32.xlu1 %v458_v32, %s2619_s4  ;;  %v1032_v58 = vmul.f32 %v1030_v44, %v2805_v33  ;;  %v528_v60 = vmul.f32 %v526_v57, %v2802_v31  ;;  %v508_v1 = vmul.f32 %v505_v46, %v2836_v55  ;;  %v533_v10 = vrot.slane %v527_v2, 2 }
  0xdf   : > { %v492_v52 = vrot.slane %v486_v45, 1  ;;  %v513_v63 = vrot.slane %v507_v53, 1  ;;  %v494_v0 = vrot.slane %v487_v54, 1  ;;  %v549_v5 = vmul.f32 %v547_v61, %v2805_v33 }
  0xe0   : > { %v534_v3 = vrot.slane %v528_v60, 2  ;;  %v515_v8 = vrot.slane %v508_v1, 1  ;;  %v529_v9 = vmul.f32 %v526_v57, %v2826_v47  ;;  %v554_v12 = vrot.slane %v548_v4, 2 }
  0xe1   : > { %v493_v62 = vsel %vm253_vm3, %v491_v56, %v492_v52  ;;  %v514_v6 = vsel %vm253_vm3, %v512_v59, %v513_v63  ;;  %v495_v7 = vsel %vm253_vm3, %v492_v52, %v494_v0  ;;  %v555_v13 = vrot.slane %v549_v5, 2 }
  0xe2   : > { %741 = vrot.lane.b32.xlu0 %v737_v35, %s2620_s27  ;;  %477 = vrot.lane.b32.xlu1 %v472_v36, %s2619_s4  ;;  %v570_v14 = vmul.f32 %v568_v11, %v2802_v31  ;;  %v535_v16 = vsel %vm288_vm4, %v533_v10, %v534_v3  ;;  %v516_v17 = vsel %vm253_vm3, %v513_v63, %v515_v8  ;;  %v536_v18 = vrot.slane %v529_v9, 2 }
  0xe3   : > { %v550_v19 = vmul.f32 %v547_v61, %v2836_v55  ;;  %v556_v21 = vsel %vm288_vm4, %v554_v12, %v555_v13  ;;  %v591_v27 = vmul.f32 %v589_v15, %v2805_v33  ;;  %v571_v28 = vmul.f32 %v568_v11, %v2826_v47 }
  0xe4   : > { %v576_v22 = vrot.slane %v570_v14, 3  ;;  %v537_v24 = vsel %vm288_vm4, %v534_v3, %v536_v18  ;;  %v575_v30 = vrot.slane %v569_v20, 3  ;;  %v610_v32 = vstv %s2312_s20  ;;  %s2945_s20 = sld [smem:[#allocation3 + $0x25]] }
  0xe5   : > { %v557_v25 = vrot.slane %v550_v19, 2  ;;  %v596_v35 = vrot.slane %v590_v23, 3  ;;  %v612_v36 = vmul.f32 %v610_v32, %v2802_v31  ;;  %v631_v37 = vstv %s2313_s23  ;;  %s2947_s23 = sld [smem:[#allocation3 + $0x2c]] }
  0xe6   : > { %755 = vrot.lane.b32.xlu0 %v751_v38, %s2620_s27  ;;  %743 = vrot.lane.b32.xlu1 %v738_v39, %s2620_s27  ;;  %v577_v34 = vsel %vm323_vm5, %v575_v30, %v576_v22  ;;  %v597_v39 = vrot.slane %v591_v27, 3  ;;  %v578_v40 = vrot.slane %v571_v28, 3  ;;  %v632_v43 = vmul.f32 %v631_v37, %v2798_v29 }
  0xe7   : > { %v558_v38 = vsel %vm288_vm4, %v555_v13, %v557_v25  ;;  %v633_v44 = vmul.f32 %v631_v37, %v2805_v33  ;;  %v613_v45 = vmul.f32 %v610_v32, %v2826_v47  ;;  %v652_v52 = vstv %s2314_s19  ;;  %s2950_s19 = sld [smem:[#allocation3 + $0x56]] }
  0xe8   : > { %v598_v46 = vsel %vm323_vm5, %v596_v35, %v597_v39  ;;  %v579_v48 = vsel %vm323_vm5, %v576_v22, %v578_v40  ;;  %v638_v53 = vrot.slane %v632_v43, 4  ;;  %v654_v57 = vmul.f32 %v652_v52, %v2802_v31 }
  0xe9   : > { %v639_v54 = vrot.slane %v633_v44, 4  ;;  %v620_v56 = vrot.slane %v613_v45, 4  ;;  %v634_v60 = vmul.f32 %v631_v37, %v2836_v55  ;;  %v653_v61 = vmul.f32 %v652_v52, %v2795_v26 }
  0xea   : > { %1021 = vrot.lane.b32.xlu0 %v1017_v41, %s4122_s16  ;;  %757 = vrot.lane.b32.xlu1 %v752_v42, %s2620_s27  ;;  %v592_v41 = vmul.f32 %v589_v15, %v2836_v55  ;;  %v611_v42 = vmul.f32 %v610_v32, %v2795_v26  ;;  %v660_v1 = vrot.slane %v654_v57, 5  ;;  %v655_v5 = vmul.f32 %v652_v52, %v2826_v47 }
  0xeb   : > { %v640_v63 = vsel %vm358_vm6, %v638_v53, %v639_v54  ;;  %v641_v2 = vrot.slane %v634_v60, 4  ;;  %v715_v11 = vstv %s2317_s5  ;;  %v764_v25 = vstv %s2320_s6  ;;  %s2962_s5 = sld [smem:[#allocation3 + $0x7]]  ;;  %s2964_s6 = sld [smem:[#allocation3 + $0xe]] }
  0xec   : > { %v617_v51 = vrot.slane %v611_v42, 4  ;;  %v662_v15 = vrot.slane %v655_v5, 5  ;;  %v716_v19 = vmul.f32 %v715_v11, %v2798_v29  ;;  %v717_v22 = vmul.f32 %v715_v11, %v2805_v33 }
  0xed   : > { %v642_v12 = vsel %vm358_vm6, %v639_v54, %v641_v2  ;;  %v785_v32 = vstv %s2321_s7  ;;  %v718_v37 = vmul.f32 %v715_v11, %v2836_v55  ;;  %s2966_s7 = sld [smem:[#allocation3 + $0x15]] }
  0xee   : > { %1035 = vrot.lane.b32.xlu0 %v1031_v49, %s4122_s16  ;;  %1023 = vrot.lane.b32.xlu1 %v1018_v50, %s4122_s16  ;;  %v618_v49 = vrot.slane %v612_v36, 4  ;;  %v599_v50 = vrot.slane %v592_v41, 3  ;;  %v722_v30 = vrot.slane %v716_v19, 6  ;;  %v766_v36 = vmul.f32 %v764_v25, %v2802_v31 }
  0xef   : > { %v787_v40 = vmul.f32 %v785_v32, %v2805_v33  ;;  %v767_v41 = vmul.f32 %v764_v25, %v2826_v47  ;;  %v725_v45 = vrot.slane %v718_v37, 6 }
  0xf0   : > { %v600_v59 = vsel %vm323_vm5, %v597_v39, %v599_v50  ;;  %v621_v0 = vsel %vm358_vm6, %v618_v49, %v620_v56  ;;  %v786_v39 = vmul.f32 %v785_v32, %v2798_v29  ;;  %v772_v44 = vrot.slane %v766_v36, 1 }
  0xf1   : > { %v793_v50 = vrot.slane %v787_v40, 1  ;;  %v788_v56 = vmul.f32 %v785_v32, %v2836_v55  ;;  %v2987_v36 = vstv %s2947_s23  ;;  %v2999_v40 = vstv %s2950_s19  ;;  %s3005_s23 = sld [smem:[#allocation3 + $0x5b]]  ;;  %s3013_s19 = sld [smem:[#allocation3 + $0xa]] }
  0xf2   : > { %496 = vrot.lane.b32.xlu0 %v493_v62, %s2619_s4  ;;  %1037 = vrot.lane.b32.xlu1 %v1032_v58, %s4122_s16  ;;  %v619_v58 = vsel %vm358_vm6, %v617_v51, %v618_v49  ;;  %v673_v62 = vstv %s2315_s29  ;;  %v792_v49 = vrot.slane %v786_v39, 1  ;;  %v774_v51 = vrot.slane %v767_v41, 1  ;;  %s2956_s29 = sld [smem:[#allocation3]]  ;;  %s3007_s16 = sld [smem:[#allocation3 + $0x5d]] }
  0xf3   : > { %v674_v3 = vmul.f32 %v673_v62, %v2798_v29  ;;  %v675_v4 = vmul.f32 %v673_v62, %v2805_v33  ;;  %v676_v10 = vmul.f32 %v673_v62, %v2836_v55  ;;  %v795_v62 = vrot.slane %v788_v56, 1 }
  0xf4   : > { %v775_v60 = vsel %vm253_vm3, %v772_v44, %v774_v51  ;;  %v3024_v51 = vstv %s2966_s7  ;;  %s3053_s7 = sld [smem:[#allocation3 + $0x49]] }
  0xf5   : > { %v680_v13 = vrot.slane %v674_v3, 5  ;;  %v681_v14 = vrot.slane %v675_v4, 5  ;;  %v683_v18 = vrot.slane %v676_v10, 5  ;;  %v848_v3 = vstv %s2324_s14  ;;  %s2976_s14 = sld [smem:[#allocation3 + $0x1c]] }
  0xf6   : > { %517 = vrot.lane.b32.xlu0 %v514_v6, %s2619_s4  ;;  %498 = vrot.lane.b32.xlu1 %v495_v7, %s2619_s4  ;;  %v659_v6 = vrot.slane %v653_v61, 5  ;;  %v694_v7 = vstv %s2316_s30  ;;  %v850_v5 = vmul.f32 %v848_v3, %v2802_v31  ;;  %v851_v19 = vmul.f32 %v848_v3, %v2826_v47  ;;  %s2960_s30 = sld [smem:[#allocation3 + $0x31]] }
  0xf7   : > { %v696_v9 = vmul.f32 %v694_v7, %v2802_v31  ;;  %v682_v20 = vsel %vm393_vm7, %v680_v13, %v681_v14  ;;  %v697_v23 = vmul.f32 %v694_v7, %v2826_v47  ;;  %v684_v28 = vsel %vm393_vm7, %v681_v14, %v683_v18 }
  0xf8   : > { %v661_v8 = vsel %vm393_vm7, %v659_v6, %v660_v1  ;;  %v856_v13 = vrot.slane %v850_v5, 3 }
  0xf9   : > { %v704_v35 = vrot.slane %v697_v23, 6 }
  0xfa   : > { %538 = vrot.lane.b32.xlu0 %v535_v16, %s2619_s4  ;;  %519 = vrot.lane.b32.xlu1 %v516_v17, %s2619_s4  ;;  %v695_v16 = vmul.f32 %v694_v7, %v2795_v26  ;;  %v702_v17 = vrot.slane %v696_v9, 6  ;;  %v869_v7 = vstv %s2325_s17  ;;  %s2980_s17 = sld [smem:[#allocation3 + $0x46]] }
  0xfb   : > { %v871_v18 = vmul.f32 %v869_v7, %v2805_v33  ;;  %v872_v32 = vmul.f32 %v869_v7, %v2836_v55 }
  0xfc   : > { %v705_v43 = vsel %vm428_vm8, %v702_v17, %v704_v35  ;;  %v932_v35 = vstv %s2945_s20  ;;  %s3001_s20 = sld [smem:[#allocation3 + $0x54]] }
  0xfd   : > { %v3032_v56 = vmul.f32 %v932_v35, %v2802_v31 }
  0xfe   : > { %559 = vrot.lane.b32.xlu0 %v556_v21, %s2619_s4  ;;  %540 = vrot.lane.b32.xlu1 %v537_v24, %s2619_s4  ;;  %v663_v21 = vsel %vm393_vm7, %v660_v1, %v662_v15  ;;  %v701_v24 = vrot.slane %v695_v16, 6  ;;  %v870_v15 = vmul.f32 %v869_v7, %v2798_v29 }
 0x100   : > { %v703_v27 = vsel %vm428_vm8, %v701_v24, %v702_v17  ;;  %v876_v24 = vrot.slane %v870_v15, 3  ;;  %v3091_v15 = vstv %s3013_s19  ;;  %s3683_s19 = sld [smem:[#allocation3 + $0x58]] }
 0x102   : > { %580 = vrot.lane.b32.xlu0 %v577_v34, %s2619_s4  ;;  %561 = vrot.lane.b32.xlu1 %v558_v38, %s2619_s4  ;;  %v723_v34 = vrot.slane %v717_v22, 6  ;;  %v765_v38 = vmul.f32 %v764_v25, %v2795_v26  ;;  %v911_v25 = vstv %s2327_s25  ;;  %s2989_s25 = sld [smem:[#allocation3 + $0x4d]]  ;;  %v3077_v7 = vstv %s3001_s20  ;;  %s3646_s20 = sld [smem:[#allocation3 + $0x51]] }
 0x103   : > { %v912_v37 = vmul.f32 %v911_v25, %v2798_v29 }
 0x104   : > { %v724_v42 = vsel %vm428_vm8, %v722_v30, %v723_v34  ;;  %v726_v54 = vsel %vm428_vm8, %v723_v34, %v725_v45  ;;  %v234_v45 = vstv %s2956_s29  ;;  %s3563_s29 = sld [smem:[#allocation3 + $0x43]] }
 0x106   : > { %601 = vrot.lane.b32.xlu0 %v598_v46, %s2619_s4  ;;  %582 = vrot.lane.b32.xlu1 %v579_v48, %s2619_s4  ;;  %v771_v46 = vrot.slane %v765_v38, 1  ;;  %v806_v48 = vstv %s2322_s24  ;;  %s2970_s24 = sld [smem:[#allocation3 + $0x38]]  ;;  %v2995_v38 = vmul.f32 %v911_v25, %v2805_v33 }
 0x107   : > { %v808_v52 = vmul.f32 %v806_v48, %v2802_v31  ;;  %v807_v57 = vmul.f32 %v806_v48, %v2795_v26  ;;  %v809_v1 = vmul.f32 %v806_v48, %v2826_v47 }
 0x108   : > { %v773_v53 = vsel %vm253_vm3, %v771_v46, %v772_v44  ;;  %v879_v44 = vrot.slane %v872_v32, 3  ;;  %v240_v46 = vstv %s2960_s30  ;;  %s2622_s30 = smov 124  }
 0x109   : > { %v814_v61 = vrot.slane %v808_v52, 2  ;;  %v813_v2 = vrot.slane %v807_v57, 2  ;;  %v816_v11 = vrot.slane %v809_v1, 2  ;;  %v918_v52 = vrot.slane %v912_v37, 4 }
 0x10a   : > { %622 = vrot.lane.b32.xlu0 %v619_v58, %s2619_s4  ;;  %603 = vrot.lane.b32.xlu1 %v600_v59, %s2619_s4  ;;  %v827_v58 = vstv %s2323_s8  ;;  %v794_v59 = vsel %vm253_vm3, %v792_v49, %v793_v50  ;;  %s2974_s8 = sld [smem:[#allocation3 + $0x3f]]  ;;  %v3018_v49 = vstv %s2962_s5  ;;  %s3034_s5 = sld [smem:[#allocation3 + $0x42]] }
 0x10b   : > { %v815_v4 = vsel %vm288_vm4, %v813_v2, %v814_v61  ;;  %v830_v6 = vmul.f32 %v827_v58, %v2836_v55  ;;  %v817_v17 = vsel %vm288_vm4, %v814_v61, %v816_v11  ;;  %v933_v61 = vmul.f32 %v932_v35, %v2795_v26 }
 0x10c   : > { %v3061_v1 = vstv %s2989_s25  ;;  %v935_v11 = vmul.f32 %v932_v35, %v2826_v47  ;;  %v3133_v37 = vstv %s3055_s11  ;;  %s3527_s11 = sld [smem:[#allocation3 + $0x35]]  ;;  %s3629_s25 = sld [smem:[#allocation3 + $0x20]] }
 0x10d   : > { %v837_v14 = vrot.slane %v830_v6, 2  ;;  %v940_v6 = vrot.slane %v3032_v56, 5  ;;  %v241_v56 = vmul.f32 %v240_v46, %v2798_v29 }
 0x10e   : > { %643 = vrot.lane.b32.xlu0 %v640_v63, %s2619_s4  ;;  %624 = vrot.lane.b32.xlu1 %v621_v0, %s2619_s4  ;;  %v828_v63 = vmul.f32 %v827_v58, %v2798_v29  ;;  %v829_v0 = vmul.f32 %v827_v58, %v2805_v33 }
 0x110   : > { %v834_v9 = vrot.slane %v828_v63, 2  ;;  %v835_v10 = vrot.slane %v829_v0, 2  ;;  %v3051_v63 = vstv %s2976_s14  ;;  %v3058_v0 = vstv %s2980_s17  ;;  %s3104_s14 = sld [smem:[#allocation3 + $0x5e]]  ;;  %s3595_s17 = sld [smem:[#allocation3 + $0x19]] }
 0x112   : > { %664 = vrot.lane.b32.xlu0 %v661_v8, %s2619_s4  ;;  %645 = vrot.lane.b32.xlu1 %v642_v12, %s2619_s4  ;;  %v796_v8 = vsel %vm253_vm3, %v793_v50, %v795_v62  ;;  %v849_v12 = vmul.f32 %v848_v3, %v2795_v26  ;;  %v836_v16 = vsel %vm288_vm4, %v834_v9, %v835_v10  ;;  %v3021_v50 = vstv %s2964_s6  ;;  %s3042_s6 = sld [smem:[#allocation3 + $0x1f]] }
 0x113   : > { %v838_v23 = vsel %vm288_vm4, %v835_v10, %v837_v14  ;;  %v3048_v62 = vstv %s2974_s8  ;;  %v3067_v3 = vstv %s2991_s3  ;;  %s3071_s8 = sld [smem:[#allocation3 + $0x2d]]  ;;  %v954_v9 = vmul.f32 %v2999_v40, %v2798_v29  ;;  %s3102_s3 = sld [smem:[#allocation3 + $0x57]] }
 0x114   : > { %v955_v10 = vmul.f32 %v2999_v40, %v2805_v33  ;;  %v995_v14 = vstv %s3007_s16  ;;  %s3548_s16 = sld [smem:[#allocation3 + $0x12]] }
 0x116   : > { %685 = vrot.lane.b32.xlu0 %v682_v20, %s2619_s4  ;;  %666 = vrot.lane.b32.xlu1 %v663_v21, %s2619_s4  ;;  %v855_v20 = vrot.slane %v849_v12, 3  ;;  %v939_v12 = vrot.slane %v933_v61, 5  ;;  %v3165_v61 = vstv %s3104_s14  ;;  %s3778_s14 = sld [smem:[#allocation3 + $0x13]] }
 0x118   : > { %v857_v22 = vsel %vm323_vm5, %v855_v20, %v856_v13  ;;  %v976_v20 = vmul.f32 %v2987_v36, %v2802_v31  ;;  %v3123_v32 = vstv %s3042_s6  ;;  %s3717_s6 = sld [smem:[#allocation3 + $0x5f]] }
 0x11a   : > { %706 = vrot.lane.b32.xlu0 %v703_v27, %s2619_s4  ;;  %687 = vrot.lane.b32.xlu1 %v684_v28, %s2619_s4  ;;  %v877_v27 = vrot.slane %v871_v18, 3  ;;  %v858_v28 = vrot.slane %v851_v19, 3  ;;  %v3100_v18 = vstv %s3028_s18  ;;  %v941_v19 = vsel %vm393_vm7, %v939_v12, %v940_v6  ;;  %s3529_s18 = sld [smem:[#allocation3 + $0xb]] }
 0x11b   : > { %v998_v12 = vmul.f32 %v995_v14, %v2836_v55 }
 0x11c   : > { %v878_v41 = vsel %vm323_vm5, %v876_v24, %v877_v27  ;;  %v880_v58 = vsel %vm323_vm5, %v877_v27, %v879_v44  ;;  %v960_v24 = vrot.slane %v954_v9, 5  ;;  %v942_v27 = vrot.slane %v935_v11, 5 }
 0x11d   : > { %v1046_v11 = vmul.f32 %v3091_v15, %v2802_v31 }
 0x11e   : > { %727 = vrot.lane.b32.xlu0 %v724_v42, %s2619_s4  ;;  %708 = vrot.lane.b32.xlu1 %v705_v43, %s2619_s4  ;;  %v859_v42 = vsel %vm323_vm5, %v856_v13, %v858_v28  ;;  %v3087_v13 = vstv %s3005_s23  ;;  %v975_v28 = vmul.f32 %v2987_v36, %v2795_v26  ;;  %v943_v44 = vsel %vm393_vm7, %v940_v6, %v942_v27  ;;  %s3667_s23 = sld [smem:[#allocation3 + $0x27]] }
 0x11f   : > { %v1045_v27 = vmul.f32 %v3091_v15, %v2795_v26 }
 0x122   : > { %776 = vrot.lane.b32.xlu0 %v773_v53, %s2620_s27  ;;  %729 = vrot.lane.b32.xlu1 %v726_v54, %s2619_s4  ;;  %s2326_s4 = sld [smem:[#allocation3 + $0x1e]]  ;;  %v919_v53 = vrot.slane %v2995_v38, 4  ;;  %v3136_v38 = vstv %s3071_s8 }
 0x123   : > { %s3763_s8 = sld [smem:[#allocation3 + $0x36]] }
 0x126   : > { %797 = vrot.lane.b32.xlu0 %v794_v59, %s2620_s27  ;;  %778 = vrot.lane.b32.xlu1 %v775_v60, %s2620_s27  ;;  %v914_v59 = vmul.f32 %v911_v25, %v2836_v55  ;;  %v3040_v60 = vstv %s2970_s24  ;;  %s3069_s24 = sld [smem:[#allocation3 + $0x50]]  ;;  %v961_v25 = vrot.slane %v955_v10, 5 }
 0x128   : > { %v890_v21 = vstv %s2326_s4  ;;  %s2982_s4 = sld [smem:[#allocation3 + $0x23]] }
 0x129   : > { %v892_v30 = vmul.f32 %v890_v21, %v2802_v31  ;;  %v891_v34 = vmul.f32 %v890_v21, %v2795_v26  ;;  %v893_v39 = vmul.f32 %v890_v21, %v2826_v47  ;;  %v956_v21 = vmul.f32 %v2999_v40, %v2836_v55 }
 0x12a   : > { %818 = vrot.lane.b32.xlu0 %v815_v4, %s2620_s27  ;;  %799 = vrot.lane.b32.xlu1 %v796_v8, %s2620_s27  ;;  %v920_v4 = vsel %vm358_vm6, %v918_v52, %v919_v53  ;;  %v921_v8 = vrot.slane %v914_v59, 4  ;;  %v977_v52 = vmul.f32 %v2987_v36, %v2826_v47  ;;  %v3159_v59 = vmul.f32 %v3040_v60, %v2805_v33 }
 0x12b   : > { %v898_v43 = vrot.slane %v892_v30, 4  ;;  %v897_v48 = vrot.slane %v891_v34, 4  ;;  %v900_v54 = vrot.slane %v893_v39, 4  ;;  %v3120_v30 = vstv %s3053_s7  ;;  %s3750_s7 = sld [smem:[#allocation3 + $0x5]] }
 0x12c   : > { %v3127_v34 = vmul.f32 %v3018_v49, %v2802_v31  ;;  %v3130_v35 = vstv %s3069_s24  ;;  %v982_v39 = vrot.slane %v976_v20, 6  ;;  %v963_v40 = vrot.slane %v956_v21, 5  ;;  %s3759_s24 = sld [smem:[#allocation3 + $0xc]] }
 0x12d   : > { %v899_v57 = vsel %vm358_vm6, %v897_v48, %v898_v43  ;;  %v901_v5 = vsel %vm358_vm6, %v898_v43, %v900_v54  ;;  %v962_v43 = vsel %vm393_vm7, %v960_v24, %v961_v25  ;;  %v247_v48 = vmul.f32 %v3018_v49, %v2795_v26 }
 0x12e   : > { %839 = vrot.lane.b32.xlu0 %v836_v16, %s2620_s27  ;;  %820 = vrot.lane.b32.xlu1 %v817_v17, %s2620_s27  ;;  %v3064_v2 = vstv %s2982_s4  ;;  %v3094_v16 = vstv %s3026_s1  ;;  %v235_v54 = vmul.f32 %v234_v45, %v2795_v26  ;;  %v984_v10 = vrot.slane %v977_v52, 6  ;;  %s3511_s1 = sld [smem:[#allocation3 + $0x4]]  ;;  %s3600_s4 = sld [smem:[#allocation3 + $0x4a]] }
 0x12f   : > { %v3097_v17 = vstv %s3015_s0  ;;  %v3162_v36 = vstv %s3102_s3  ;;  %v254_v9 = vrot.slane %v247_v48, 1  ;;  %v282_v21 = vmul.f32 %v3021_v50, %v2795_v26  ;;  %s4143_s0 = smov 125   ;;  %s2363_s3 = sld [smem:[#allocation3 + $0x3d]] }
 0x130   : > { %v1052_v48 = vrot.slane %v1046_v11, 1  ;;  %v1005_v52 = vrot.slane %v998_v12, 6 }
 0x132   : > { %860 = vrot.lane.b32.xlu0 %v857_v22, %s2620_s27  ;;  %841 = vrot.lane.b32.xlu1 %v838_v23, %s2620_s27  ;;  %v3112_v22 = vstv %s3034_s5  ;;  %v922_v23 = vsel %vm358_vm6, %v919_v53, %v921_v8  ;;  %v981_v53 = vrot.slane %v975_v28, 6  ;;  %v3190_v28 = vmul.f32 %v3048_v62, %v2805_v33  ;;  %s3710_s5 = sld [smem:[#allocation3 + $0x2e]] }
 0x136   : > { %881 = vrot.lane.b32.xlu0 %v878_v41, %s2620_s27  ;;  %862 = vrot.lane.b32.xlu1 %v859_v42, %s2620_s27  ;;  %v996_v41 = vmul.f32 %v995_v14, %v2798_v29  ;;  %v997_v42 = vmul.f32 %v995_v14, %v2805_v33  ;;  %v300_v14 = vmul.f32 %v3048_v62, %v2798_v29 }
 0x138   : > { %v1002_v6 = vrot.slane %v996_v41, 6  ;;  %v1003_v8 = vrot.slane %v997_v42, 6  ;;  %v1066_v42 = vmul.f32 %v3094_v16, %v2798_v29 }
 0x13a   : > { %902 = vrot.lane.b32.xlu0 %v899_v57, %s2620_s27  ;;  %883 = vrot.lane.b32.xlu1 %v880_v58, %s2620_s27  ;;  %v265_v57 = vmul.f32 %v3040_v60, %v2798_v29  ;;  %v255_v58 = vrot.slane %v3127_v34, 1  ;;  %v1004_v41 = vsel %vm428_vm8, %v1002_v6, %v1003_v8  ;;  %v1051_v6 = vrot.slane %v1045_v27, 1 }
 0x13b   : > { %v1072_v12 = vrot.slane %v1066_v42, 1  ;;  %v4125_v27 = vrot.slane %v3190_v28, 2  ;;  %v236_v42 = vmul.f32 %v234_v45, %v2802_v31  ;;  %v1110_v34 = vmul.f32 %v3112_v22, %v2836_v55 }
 0x13c   : > { %v271_v20 = vrot.slane %v265_v57, 1  ;;  %v256_v24 = vsel %vm253_vm3, %v254_v9, %v255_v58  ;;  %v3218_v9 = vmul.f32 %v3024_v51, %v2802_v31 }
 0x13e   : > { %923 = vrot.lane.b32.xlu0 %v920_v4, %s2620_s27  ;;  %904 = vrot.lane.b32.xlu1 %v901_v5, %s2620_s27  ;;  %v983_v4 = vsel %vm428_vm8, %v981_v53, %v982_v39  ;;  %v964_v5 = vsel %vm393_vm7, %v961_v25, %v963_v40  ;;  %v272_v25 = vrot.slane %v3159_v59, 1  ;;  %v1047_v53 = vmul.f32 %v3091_v15, %v2826_v47 }
 0x13f   : > { %v249_v15 = vmul.f32 %v3018_v49, %v2826_v47  ;;  %v1006_v49 = vsel %vm428_vm8, %v1003_v8, %v1005_v52  ;;  %v1117_v59 = vrot.slane %v1110_v34, 2 }
 0x141   : > { %v257_v52 = vrot.slane %v249_v15, 1  ;;  %v1109_v15 = vmul.f32 %v3112_v22, %v2805_v33 }
 0x142   : > { %944 = vrot.lane.b32.xlu0 %v941_v19, %s2620_s27  ;;  %925 = vrot.lane.b32.xlu1 %v922_v23, %s2620_s27  ;;  %v243_v19 = vadd.f32 %v241_v56, %v235_v54  ;;  %v3178_v23 = vmul.f32 %v3021_v50, %v2802_v31  ;;  %v289_v56 = vrot.slane %v282_v21, 2  ;;  %v1053_v21 = vsel %vm253_vm3, %v1051_v6, %v1052_v48 }
 0x144   : > { %v261_v54 = vadd.f32 %v256_v24, %v243_v19  ;;  %v4126_v57 = vrot.slane %v3178_v23, 2  ;;  %v1054_v24 = vrot.slane %v1047_v53, 1 }
 0x146   : > { %965 = vrot.lane.b32.xlu0 %v962_v43, %s2620_s27  ;;  %946 = vrot.lane.b32.xlu1 %v943_v44, %s2620_s27  ;;  %v3199_v43 = vmul.f32 %v3094_v16, %v2805_v33  ;;  %v985_v44 = vsel %vm428_vm8, %v982_v39, %v984_v10  ;;  %v273_v39 = vsel %vm253_vm3, %v271_v20, %v272_v25 }
 0x147   : > { %v3227_v20 = vmul.f32 %v3097_v17, %v2802_v31  ;;  %v278_v8 = vadd.f32 %v273_v39, %v261_v54  ;;  %v1108_v54 = vmul.f32 %v3112_v22, %v2798_v29  ;;  %v302_v22 = vmul.f32 %v3048_v62, %v2836_v55 }
 0x148   : > { %v1073_v19 = vrot.slane %v3199_v43, 1  ;;  %v1087_v43 = vmul.f32 %v3097_v17, %v2795_v26 }
 0x14a   : > { %986 = vrot.lane.b32.xlu0 %v983_v4, %s2620_s27  ;;  %967 = vrot.lane.b32.xlu1 %v964_v5, %s2620_s27  ;;  %v3207_v4 = vmul.f32 %v3024_v51, %v2795_v26  ;;  %v306_v5 = vrot.slane %v300_v14, 2  ;;  %v1068_v14 = vmul.f32 %v3094_v16, %v2836_v55  ;;  %v3247_v16 = vmul.f32 %v3058_v0, %v2798_v29 }
 0x14b   : > { %v1074_v6 = vsel %vm253_vm3, %v1072_v12, %v1073_v19 }
 0x14c   : > { %v3192_v40 = vpop.permute.xlu0 %461  ;;  %v1075_v39 = vrot.slane %v1068_v14, 1  ;;  %v3270_v12 = vsel %vm288_vm4, %v306_v5, %v4125_v27  ;;  %v258_v5 = vsel %vm253_vm3, %v255_v58, %v257_v52  ;;  %v3299_v52 = vmul.f32 %v3051_v63, %v2795_v26 }
 0x14e   : > { %1007 = vrot.lane.b32.xlu0 %v1004_v41, %s2620_s27  ;;  %988 = vrot.lane.b32.xlu1 %v985_v44, %s2620_s27  ;;  %v242_v41 = vmul.f32 %v240_v46, %v2805_v33  ;;  %v324_v44 = vrot.slane %v3207_v4, 3  ;;  %v267_v46 = vmul.f32 %v3040_v60, %v2836_v55  ;;  %v1055_v4 = vsel %vm253_vm3, %v1052_v48, %v1054_v24 }
 0x14f   : > { %v1089_v60 = vmul.f32 %v3097_v17, %v2826_v47  ;;  %v1093_v48 = vrot.slane %v1087_v43, 2  ;;  %v325_v24 = vrot.slane %v3218_v9, 3  ;;  %v3277_v17 = vmul.f32 %v3058_v0, %v2805_v33 }
 0x150   : > { %v3220_v10 = vpop.permute.xlu1 %463  ;;  %v3222_v11 = vpop.permute.xlu0 %475  ;;  %v274_v14 = vrot.slane %v267_v46, 1  ;;  %v1076_v27 = vsel %vm253_vm3, %v1073_v19, %v1075_v39  ;;  %v3303_v46 = vmul.f32 %v3051_v63, %v2802_v31  ;;  %v1194_v9 = vmul.f32 %v3130_v35, %v2836_v55 }
 0x152   : > { %1056 = vrot.lane.b32.xlu0 %v1053_v21, %s4143_s0  ;;  %1009 = vrot.lane.b32.xlu1 %v1006_v49, %s2620_s27  ;;  %v1094_v21 = vrot.slane %v3227_v20, 2  ;;  %v291_v49 = vsel %vm288_vm4, %v289_v56, %v4126_v57  ;;  %v244_v20 = vadd.f32 %v242_v41, %v236_v42  ;;  %v284_v56 = vmul.f32 %v3021_v50, %v2826_v47  ;;  %s3537_s27 = sld [smem:[#allocation3 + $0x3c]] }
 0x153   : > { %v1115_v57 = vrot.slane %v1109_v15, 2  ;;  %v1096_v50 = vrot.slane %v1089_v60, 2  ;;  %v296_v19 = vadd.f32 %v291_v49, %v278_v8  ;;  %v1129_v15 = vmul.f32 %v3100_v18, %v2795_v26 }
 0x154   : > { %v3251_v53 = vpop.permute.xlu1 %477  ;;  %v3253_v45 = vpop.permute.xlu0 %741  ;;  %v1095_v43 = vsel %vm288_vm4, %v1093_v48, %v1094_v21  ;;  %v292_v39 = vrot.slane %v284_v56, 2  ;;  %v275_v60 = vsel %vm253_vm3, %v272_v25, %v274_v14  ;;  %v3323_v8 = vmul.f32 %v3120_v30, %v2805_v33 }
 0x155   : > { %v1097_v49 = vsel %vm288_vm4, %v1094_v21, %v1096_v50  ;;  %v1131_v25 = vmul.f32 %v3100_v18, %v2826_v47  ;;  %v342_v56 = vrot.slane %v3277_v17, 3  ;;  %v3336_v14 = vmul.f32 %v3061_v1, %v2805_v33  ;;  %v3454_v17 = vld [vmem:[#allocation2 + $0x10] sm:$0x3f] }
 0x156   : > { %1077 = vrot.lane.b32.xlu0 %v1074_v6, %s4143_s0  ;;  %1058 = vrot.lane.b32.xlu1 %v1055_v4, %s4143_s0  ;;  %v1114_v6 = vrot.slane %v1108_v54, 2  ;;  %v3291_v4 = vmul.f32 %v3100_v18, %v2802_v31  ;;  %v262_v54 = vadd.f32 %v258_v5, %v244_v20  ;;  %v3332_v5 = vmul.f32 %v3061_v1, %v2798_v29 }
 0x157   : > { %v326_v21 = vsel %vm323_vm5, %v324_v44, %v325_v24  ;;  %v309_v18 = vrot.slane %v302_v22, 2  ;;  %v1138_v22 = vrot.slane %v1131_v25, 3 }
 0x158   : > { %v3284_v41 = vpop.permute.xlu1 %743  ;;  %v3286_v42 = vpop.permute.xlu0 %755  ;;  %v1136_v20 = vrot.slane %v3291_v4, 3  ;;  %v1116_v62 = vsel %vm288_vm4, %v1114_v6, %v1115_v57  ;;  %v319_v6 = vmul.f32 %v3024_v51, %v2826_v47  ;;  %v1135_v4 = vrot.slane %v1129_v15, 3 }
 0x159   : > { %v1118_v51 = vsel %vm288_vm4, %v1115_v57, %v1117_v59  ;;  %v360_v15 = vrot.slane %v3303_v46, 4  ;;  %v4145_v59 = vrot.slane %v3190_v28, 2 }
 0x15a   : > { %1098 = vrot.lane.b32.xlu0 %v1095_v43, %s4143_s0  ;;  %1079 = vrot.lane.b32.xlu1 %v1076_v27, %s4143_s0  ;;  %v1150_v27 = vmul.f32 %v3120_v30, %v2798_v29  ;;  %v279_v43 = vadd.f32 %v275_v60, %v262_v54  ;;  %v4144_v29 = vrot.slane %v3178_v23, 2  ;;  %v1157_v60 = vrot.slane %v3323_v8, 3  ;;  %v3368_v8 = vld [vmem:[#allocation2] sm:$0xff] }
 0x15b   : > { %v1137_v44 = vsel %vm323_vm5, %v1135_v4, %v1136_v20  ;;  %v1152_v23 = vmul.f32 %v3120_v30, %v2836_v55  ;;  %v3372_v57 = vmul.f32 %v3368_v8, %v3064_v2  ;;  %v327_v30 = vrot.slane %v319_v6, 3 }
 0x15c   : > { %v3314_v48 = vpop.permute.xlu1 %757  ;;  %v3316_v58 = vpop.permute.xlu0 %1021  ;;  %v293_v50 = vsel %vm288_vm4, %v4144_v29, %v292_v39  ;;  %v1156_v54 = vrot.slane %v1150_v27, 3  ;;  %v359_v39 = vrot.slane %v3299_v52, 4  ;;  %v313_v27 = vadd.f32 %v3270_v12, %v296_v19  ;;  %v3385_v19 = vld [vmem:[#allocation2 + $0x18] sm:$0xff] }
 0x15d   : > { %v337_v52 = vmul.f32 %v3058_v0, %v2836_v55  ;;  %v310_v25 = vsel %vm288_vm4, %v4145_v59, %v309_v18  ;;  %v1192_v6 = vmul.f32 %v3385_v19, %v3130_v35  ;;  %v1139_v29 = vsel %vm323_vm5, %v1136_v20, %v1138_v22 }
 0x15e   : > { %1119 = vrot.lane.b32.xlu0 %v1116_v62, %s4143_s0  ;;  %1100 = vrot.lane.b32.xlu1 %v1097_v49, %s4143_s0  ;;  %v3355_v62 = vmul.f32 %v3123_v32, %v2802_v31  ;;  %v297_v49 = vadd.f32 %v293_v50, %v279_v43  ;;  %v1171_v31 = vmul.f32 %v3123_v32, %v2795_v26  ;;  %v1159_v0 = vrot.slane %v1152_v23, 3  ;;  %v3390_v50 = vld [vmem:[#allocation2 + $0x20] sm:$0xff] }
 0x15f   : > { %v1158_v26 = vsel %vm323_vm5, %v1156_v54, %v1157_v60  ;;  %v1193_v28 = vmul.f32 %v3390_v50, %v3130_v35  ;;  %v1173_v18 = vmul.f32 %v3123_v32, %v2826_v47  ;;  %v4146_v54 = vrot.slane %v3247_v16, 3 }
 0x160   : > { %v3348_v33 = vpop.permute.xlu1 %1023  ;;  %v3350_v34 = vpop.permute.xlu0 %1035  ;;  %v1178_v12 = vrot.slane %v3355_v62, 4  ;;  %v1177_v20 = vrot.slane %v1171_v31, 4  ;;  %v331_v22 = vadd.f32 %v326_v21, %v313_v27  ;;  %v361_v23 = vsel %vm358_vm6, %v359_v39, %v360_v15  ;;  %v3417_v21 = vld [vmem:[#allocation2 + $0x8] sm:$0xff] }
 0x161   : > { %v343_v62 = vsel %vm323_vm5, %v4146_v54, %v342_v56  ;;  %v344_v32 = vrot.slane %v337_v52, 3  ;;  %v354_v59 = vmul.f32 %v3051_v63, %v2826_v47  ;;  %v328_v16 = vsel %vm323_vm5, %v325_v24, %v327_v30 }
 0x162   : > { %1140 = vrot.lane.b32.xlu0 %v1137_v44, %s4143_s0  ;;  %1121 = vrot.lane.b32.xlu1 %v1118_v51, %s4143_s0  ;;  %v376_v44 = vrot.slane %v3332_v5, 4  ;;  %v314_v51 = vadd.f32 %v310_v25, %v297_v49  ;;  %v1179_v25 = vsel %vm358_vm6, %v1177_v20, %v1178_v12  ;;  %v1198_v31 = vrot.slane %v1192_v6, 4 }
 0x163   : > { %v3421_v39 = vmul.f32 %v3417_v21, %v3133_v37  ;;  %v1160_v27 = vsel %vm323_vm5, %v1157_v60, %v1159_v0  ;;  %v1199_v47 = vrot.slane %v1193_v28, 4  ;;  %v1180_v63 = vrot.slane %v1173_v18, 4 }
 0x164   : > { %v3379_v43 = vpop.permute.xlu1 %1037  ;;  %v3381_v4 = vpop.permute.xlu0 %496  ;;  %v377_v24 = vrot.slane %v3336_v14, 4  ;;  %v3429_v30 = vmul.f32 %v3417_v21, %v3064_v2  ;;  %v332_v52 = vadd.f32 %v328_v16, %v314_v51  ;;  %v348_v60 = vadd.f32 %v343_v62, %v331_v22 }
 0x165   : > { %v394_v6 = vrot.slane %v3372_v57, 5  ;;  %v372_v35 = vmul.f32 %v3061_v1, %v2836_v55  ;;  %v345_v14 = vsel %vm323_vm5, %v342_v56, %v344_v32  ;;  %v1220_v18 = vrot.slane %v3421_v39, 5 }
 0x166   : > { %1161 = vrot.lane.b32.xlu0 %v1158_v26, %s4143_s0  ;;  %1142 = vrot.lane.b32.xlu1 %v1139_v29, %s4143_s0  ;;  %v1213_v26 = vmul.f32 %v3368_v8, %v3133_v37  ;;  %v362_v29 = vrot.slane %v354_v59, 4  ;;  %v1234_v54 = vmul.f32 %v3385_v19, %v3162_v36  ;;  %v3450_v57 = vmul.f32 %v3390_v50, %v3162_v36 }
 0x167   : > { %v1200_v62 = vsel %vm358_vm6, %v1198_v31, %v1199_v47  ;;  %v1181_v55 = vsel %vm358_vm6, %v1178_v12, %v1180_v63  ;;  %v1201_v1 = vrot.slane %v1194_v9, 4  ;;  %v1215_v56 = vmul.f32 %v3454_v17, %v3133_v37 }
 0x168   : > { %v3412_v5 = vpop.permute.xlu1 %498  ;;  %v3414_v49 = vpop.permute.xlu0 %517  ;;  %v378_v51 = vsel %vm358_vm6, %v376_v44, %v377_v24  ;;  %v3461_v20 = vmul.f32 %v3385_v19, %v3077_v7  ;;  %v349_v22 = vadd.f32 %v345_v14, %v332_v52  ;;  %v1219_v32 = vrot.slane %v1213_v26, 5 }
 0x169   : > { %v366_v59 = vadd.f32 %v361_v23, %v348_v60  ;;  %v3467_v12 = vmul.f32 %v3390_v50, %v3077_v7  ;;  %v379_v16 = vrot.slane %v372_v35, 4  ;;  %v389_v37 = vmul.f32 %v3454_v17, %v3064_v2  ;;  %v3485_v2 = vld [vmem:[#allocation2 + $0x28] sm:$0x3f] }
 0x16a   : > { %1182 = vrot.lane.b32.xlu0 %v1179_v25, %s4143_s0  ;;  %1163 = vrot.lane.b32.xlu1 %v1160_v27, %s4143_s0  ;;  %v363_v44 = vsel %vm358_vm6, %v360_v15, %v362_v29  ;;  %v1221_v39 = vsel %vm393_vm7, %v1219_v32, %v1220_v18  ;;  %v1240_v27 = vrot.slane %v1234_v54, 5  ;;  %v1241_v23 = vrot.slane %v3450_v57, 5 }
 0x16b   : > { %v1202_v63 = vsel %vm358_vm6, %v1199_v47, %v1201_v1  ;;  %v1222_v9 = vrot.slane %v1215_v56, 5  ;;  %v3483_v52 = vmul.f32 %v3417_v21, %v3136_v38  ;;  %v1236_v46 = vmul.f32 %v3485_v2, %v3162_v36 }
 0x16c   : > { %v3441_v0 = vpop.permute.xlu1 %519  ;;  %v3443_v28 = vpop.permute.xlu0 %538  ;;  %v395_v15 = vrot.slane %v3429_v30, 5  ;;  %v411_v26 = vrot.slane %v3461_v20, 5  ;;  %v422_v60 = vmul.f32 %v3368_v8, %v3067_v3  ;;  %v367_v29 = vadd.f32 %v363_v44, %v349_v22 }
 0x16d   : > { %v383_v47 = vadd.f32 %v378_v51, %v366_v59  ;;  %v397_v35 = vrot.slane %v389_v37, 5  ;;  %v407_v14 = vmul.f32 %v3485_v2, %v3077_v7  ;;  %v1255_v36 = vmul.f32 %v3368_v8, %v3136_v38 }
 0x16e   : > { %1203 = vrot.lane.b32.xlu0 %v1200_v62, %s4143_s0  ;;  %1184 = vrot.lane.b32.xlu1 %v1181_v55, %s4143_s0  ;;  %v380_v30 = vsel %vm358_vm6, %v377_v24, %v379_v16  ;;  %v1242_v62 = vsel %vm393_vm7, %v1240_v27, %v1241_v23  ;;  %v1276_v55 = vmul.f32 %v3385_v19, %v3165_v61  ;;  %v1262_v56 = vrot.slane %v3483_v52, 6 }
 0x16f   : > { %v3509_v1 = vmul.f32 %v3390_v50, %v3165_v61  ;;  %v1223_v7 = vsel %vm393_vm7, %v1220_v18, %v1222_v9  ;;  %v1243_v24 = vrot.slane %v1236_v46, 5  ;;  %v1257_v51 = vmul.f32 %v3454_v17, %v3136_v38 }
 0x170   : > { %v3474_v25 = vpop.permute.xlu1 %540  ;;  %v3476_v31 = vpop.permute.xlu0 %559  ;;  %v396_v20 = vsel %vm393_vm7, %v394_v6, %v395_v15  ;;  %v412_v22 = vrot.slane %v3467_v12, 5  ;;  %v423_v32 = vmul.f32 %v3417_v21, %v3067_v3  ;;  %v384_v59 = vadd.f32 %v380_v30, %v367_v29 }
 0x171   : > { %v401_v16 = vadd.f32 %v396_v20, %v383_v47  ;;  %v440_v18 = vmul.f32 %v3385_v19, %v3087_v13  ;;  %v424_v37 = vmul.f32 %v3454_v17, %v3067_v3  ;;  %v1261_v38 = vrot.slane %v1255_v36, 6 }
 0x172   : > { %1224 = vrot.lane.b32.xlu0 %v1221_v39, %s4143_s0  ;;  %1205 = vrot.lane.b32.xlu1 %v1202_v63, %s4143_s0  ;;  %v414_v6 = vrot.slane %v407_v14, 5  ;;  %v398_v12 = vsel %vm393_vm7, %v395_v15, %v397_v35  ;;  %v1282_v27 = vrot.slane %v1276_v55, 6  ;;  %v1283_v63 = vrot.slane %v3509_v1, 6 }
 0x173   : > { %v1263_v9 = vsel %vm428_vm8, %v1261_v38, %v1262_v56  ;;  %v1244_v3 = vsel %vm393_vm7, %v1241_v23, %v1243_v24  ;;  %v1264_v52 = vrot.slane %v1257_v51, 6  ;;  %v1278_v46 = vmul.f32 %v3485_v2, %v3165_v61 }
 0x174   : > { %v3500_v54 = vpop.permute.xlu1 %561  ;;  %v3502_v57 = vpop.permute.xlu0 %580  ;;  %v413_v15 = vsel %vm393_vm7, %v411_v26, %v412_v22  ;;  %v430_v29 = vrot.slane %v423_v32, 6  ;;  %v441_v47 = vmul.f32 %v3390_v50, %v3087_v13  ;;  %v402_v35 = vadd.f32 %v398_v12, %v384_v59 }
 0x175   : > { %v418_v14 = vadd.f32 %v413_v15, %v401_v16  ;;  %v429_v23 = vrot.slane %v422_v60, 6  ;;  %v432_v36 = vrot.slane %v424_v37, 6  ;;  %v442_v30 = vmul.f32 %v3485_v2, %v3087_v13 }
 0x176   : > { %1245 = vrot.lane.b32.xlu0 %v1242_v62, %s4143_s0  ;;  %1226 = vrot.lane.b32.xlu1 %v1223_v7, %s4143_s0  ;;  %v1296_v62 = vstv %s3511_s1  ;;  %v415_v55 = vsel %vm393_vm7, %v412_v22, %v414_v6  ;;  %v1284_v1 = vsel %vm428_vm8, %v1282_v27, %v1283_v63  ;;  %v1265_v7 = vsel %vm428_vm8, %v1262_v56, %v1264_v52  ;;  %s3789_s1 = sld [smem:[#allocation3 + $0x44]] }
 0x177   : > { %v1285_v24 = vrot.slane %v1278_v46, 6  ;;  %v431_v60 = vsel %vm428_vm8, %v429_v23, %v430_v29  ;;  %v446_v51 = vrot.slane %v440_v18, 6  ;;  %v447_v20 = vrot.slane %v441_v47, 6 }
 0x178   : > { %v3532_v44 = vpop.permute.xlu1 %582  ;;  %v3534_v39 = vpop.permute.xlu0 %601  ;;  %v419_v13 = vadd.f32 %v415_v55, %v402_v35  ;;  %v436_v32 = vadd.f32 %v431_v60, %v418_v14  ;;  %v1297_v56 = vmul.f32 %v3368_v8, %v1296_v62  ;;  %v1310_v16 = vstv %s3527_s11  ;;  %s3803_s11 = sld [smem:[#allocation3 + $0x1a]] }
 0x179   : > { %v1324_v37 = vstv %s3529_s18  ;;  %v1345_v38 = vstv %s3537_s27  ;;  %v449_v18 = vrot.slane %v442_v30, 6  ;;  %v433_v6 = vsel %vm428_vm8, %v430_v29, %v432_v36  ;;  %s3806_s18 = sld [smem:[#allocation3 + $0x4b]]  ;;  %s3824_s27 = sld [smem:[#allocation3 + $0x21]] }
 0x17a   : > { %1266 = vrot.lane.b32.xlu0 %v1263_v9, %s4143_s0  ;;  %1247 = vrot.lane.b32.xlu1 %v1244_v3, %s4143_s0  ;;  %v1286_v12 = vsel %vm428_vm8, %v1283_v63, %v1285_v24  ;;  %v1326_v27 = vmul.f32 %v3417_v21, %v1324_v37  ;;  %v448_v9 = vsel %vm428_vm8, %v446_v51, %v447_v20  ;;  %v1366_v15 = vstv %s3548_s16  ;;  %s3828_s16 = sld [smem:[#allocation3 + $0x52]] }
 0x17b   : > { %v437_v3 = vadd.f32 %v433_v6, %v419_v13  ;;  %v453_v52 = vadd.f32 %v448_v9, %v436_v32  ;;  %v1325_v46 = vmul.f32 %v3368_v8, %v1324_v37  ;;  %v1311_v63 = vmul.f32 %v3385_v19, %v1310_v16 }
 0x17c   : > { %v3552_v61 = vpop.permute.xlu1 %603  ;;  %v3554_v26 = vpop.permute.xlu0 %622  ;;  %v1298_v35 = vmul.f32 %v3417_v21, %v1296_v62  ;;  %v1346_v14 = vmul.f32 %v3385_v19, %v1345_v38  ;;  %v1347_v23 = vmul.f32 %v3390_v50, %v1345_v38  ;;  %v450_v30 = vsel %vm428_vm8, %v447_v20, %v449_v18 }
 0x17d   : > { %v467_v36 = vadd.f32 %v3192_v40, %v453_v52  ;;  %v1332_v55 = vrot.slane %v1326_v27, 1  ;;  %v1387_v24 = vstv %s3563_s29  ;;  %v1331_v60 = vrot.slane %v1325_v46, 1  ;;  %s3843_s29 = sld [smem:[#allocation3 + $0x28]] }
 0x17e   : > { %1287 = vrot.lane.b32.xlu0 %v1284_v1, %s4143_s0  ;;  %1268 = vrot.lane.b32.xlu1 %v1265_v7, %s4143_s0  ;;  %v1327_v1 = vmul.f32 %v3454_v17, %v1324_v37  ;;  %v454_v7 = vadd.f32 %v450_v30, %v437_v3  ;;  %v1367_v51 = vmul.f32 %v3368_v8, %v1366_v15  ;;  %v1353_v37 = vrot.slane %v1347_v23, 1 }
 0x17f   : > { %v481_v62 = vadd.f32 %v3222_v11, %v467_v36  ;;  %v1368_v40 = vmul.f32 %v3417_v21, %v1366_v15  ;;  %v1312_v32 = vmul.f32 %v3390_v50, %v1310_v16  ;;  %v1348_v18 = vmul.f32 %v3485_v2, %v1345_v38 }
 0x180   : > { %v3565_v22 = vpop.permute.xlu1 %624  ;;  %v3567_v59 = vpop.permute.xlu0 %643  ;;  %v468_v6 = vadd.f32 %v3220_v10, %v454_v7  ;;  %v1334_v27 = vrot.slane %v1327_v1, 1  ;;  %v1373_v3 = vrot.slane %v1367_v51, 2  ;;  %v1408_v36 = vstv %s3595_s17  ;;  %s3866_s17 = sld [smem:[#allocation3 + $0x2f]] }
 0x181   : > { %v502_v11 = vadd.f32 %v3381_v4, %v481_v62  ;;  %v1374_v52 = vrot.slane %v1368_v40, 2  ;;  %v1355_v10 = vrot.slane %v1348_v18, 1  ;;  %v1388_v4 = vmul.f32 %v3385_v19, %v1387_v24 }
 0x182   : > { %1301 = vrot.lane.b32.xlu0 %v1297_v56, %s2622_s30  ;;  %1289 = vrot.lane.b32.xlu1 %v1286_v12, %s4143_s0  ;;  %v1352_v56 = vrot.slane %v1346_v14, 1  ;;  %v1333_v12 = vsel %vm253_vm3, %v1331_v60, %v1332_v55  ;;  %v482_v9 = vadd.f32 %v3251_v53, %v468_v6  ;;  %v1335_v23 = vsel %vm253_vm3, %v1332_v55, %v1334_v27  ;;  %s2623_s0 = smov 123  }
 0x183   : > { %v523_v16 = vadd.f32 %v3414_v49, %v502_v11  ;;  %v1356_v55 = vsel %vm253_vm3, %v1353_v37, %v1355_v10  ;;  %v1394_v62 = vrot.slane %v1388_v4, 2  ;;  %v1409_v18 = vmul.f32 %v3368_v8, %v1408_v36 }
 0x184   : > { %v3581_v47 = vpop.permute.xlu1 %645  ;;  %v3583_v29 = vpop.permute.xlu0 %664  ;;  %v503_v14 = vadd.f32 %v3412_v5, %v482_v9  ;;  %v1354_v49 = vsel %vm253_vm3, %v1352_v56, %v1353_v37  ;;  %v1429_v5 = vstv %s3600_s4  ;;  %s3873_s4 = sld [smem:[#allocation3 + $0x60]] }
 0x185   : > { %v544_v53 = vadd.f32 %v3443_v28, %v523_v16  ;;  %v1431_v27 = vmul.f32 %v3390_v50, %v1429_v5 }
 0x186   : > { %1315 = vrot.lane.b32.xlu0 %v1311_v63, %s2622_s30  ;;  %1303 = vrot.lane.b32.xlu1 %v1298_v35, %s2622_s30  ;;  %v1389_v63 = vmul.f32 %v3390_v50, %v1387_v24  ;;  %v1369_v35 = vmul.f32 %v3454_v17, %v1366_v15  ;;  %v524_v30 = vadd.f32 %v3441_v0, %v503_v14 }
 0x187   : > { %v565_v1 = vadd.f32 %v3476_v31, %v544_v53  ;;  %v1375_v15 = vsel %vm288_vm4, %v1373_v3, %v1374_v52  ;;  %v1410_v0 = vmul.f32 %v3417_v21, %v1408_v36  ;;  %v1390_v31 = vmul.f32 %v3485_v2, %v1387_v24 }
 0x188   : > { %v3602_v20 = vpop.permute.xlu1 %666  ;;  %v3604_v13 = vpop.permute.xlu0 %685  ;;  %v1395_v60 = vrot.slane %v1389_v63, 2  ;;  %v1376_v51 = vrot.slane %v1369_v35, 2  ;;  %v545_v40 = vadd.f32 %v3474_v25, %v524_v30  ;;  %v1411_v25 = vmul.f32 %v3454_v17, %v1408_v36 }
 0x189   : > { %v1416_v9 = vrot.slane %v1410_v0, 3  ;;  %v1397_v16 = vrot.slane %v1390_v31, 2  ;;  %v1450_v3 = vstv %s3629_s25  ;;  %v1437_v14 = vrot.slane %v1431_v27, 3  ;;  %s3905_s25 = sld [smem:[#allocation3 + $0x6]] }
 0x18a   : > { %1336 = vrot.lane.b32.xlu0 %v1333_v12, %s2622_s30  ;;  %1317 = vrot.lane.b32.xlu1 %v1312_v32, %s2622_s30  ;;  %v586_v32 = vadd.f32 %v3502_v57, %v565_v1  ;;  %v566_v56 = vadd.f32 %v3500_v54, %v545_v40  ;;  %v1396_v24 = vsel %vm288_vm4, %v1394_v62, %v1395_v60  ;;  %v1418_v63 = vrot.slane %v1411_v25, 3 }
 0x18b   : > { %v1377_v11 = vsel %vm288_vm4, %v1374_v52, %v1376_v51  ;;  %v1430_v12 = vmul.f32 %v3385_v19, %v1429_v5  ;;  %v1415_v52 = vrot.slane %v1409_v18, 3  ;;  %v1432_v53 = vmul.f32 %v3485_v2, %v1429_v5 }
 0x18c   : > { %v3615_v46 = vpop.permute.xlu1 %687  ;;  %v3617_v38 = vpop.permute.xlu0 %706  ;;  %v607_v37 = vadd.f32 %v3534_v39, %v586_v32  ;;  %v587_v54 = vadd.f32 %v3532_v44, %v566_v56  ;;  %v1398_v36 = vsel %vm288_vm4, %v1395_v60, %v1397_v16  ;;  %v1451_v30 = vmul.f32 %v3368_v8, %v1450_v3 }
 0x18d   : > { %v1471_v1 = vstv %s3646_s20  ;;  %v1439_v60 = vrot.slane %v1432_v53, 3  ;;  %v1453_v40 = vmul.f32 %v3454_v17, %v1450_v3  ;;  %v1492_v18 = vstv %s3667_s23  ;;  %s3914_s20 = sld [smem:[#allocation3 + $0x37]]  ;;  %s2376_s23 = sld [smem:[#allocation3 + $0xd]] }
 0x18e   : > { %1357 = vrot.lane.b32.xlu0 %v1354_v49, %s2622_s30  ;;  %1338 = vrot.lane.b32.xlu1 %v1335_v23, %s2622_s30  ;;  %v628_v39 = vadd.f32 %v3554_v26, %v607_v37  ;;  %v608_v10 = vadd.f32 %v3552_v61, %v587_v54  ;;  %v1436_v26 = vrot.slane %v1430_v12, 3  ;;  %v1452_v49 = vmul.f32 %v3417_v21, %v1450_v3 }
 0x18f   : > { %v1457_v31 = vrot.slane %v1451_v30, 4  ;;  %v1474_v12 = vmul.f32 %v3485_v2, %v1471_v1  ;;  %v1493_v3 = vmul.f32 %v3368_v8, %v1492_v18 }
 0x190   : > { %v3635_v7 = vpop.permute.xlu1 %708  ;;  %v3637_v28 = vpop.permute.xlu0 %727  ;;  %v649_v4 = vadd.f32 %v3567_v59, %v628_v39  ;;  %v629_v23 = vadd.f32 %v3565_v22, %v608_v10  ;;  %v1417_v59 = vsel %vm323_vm5, %v1415_v52, %v1416_v9  ;;  %v1419_v22 = vsel %vm323_vm5, %v1416_v9, %v1418_v63 }
 0x191   : > { %v1438_v62 = vsel %vm323_vm5, %v1436_v26, %v1437_v14  ;;  %v1458_v51 = vrot.slane %v1452_v49, 4  ;;  %v1513_v39 = vstv %s3683_s19  ;;  %v1481_v52 = vrot.slane %v1474_v12, 4  ;;  %s2377_s19 = sld [smem:[#allocation3 + $0x3e]] }
 0x192   : > { %1378 = vrot.lane.b32.xlu0 %v1375_v15, %s2622_s30  ;;  %1359 = vrot.lane.b32.xlu1 %v1356_v55, %s2622_s30  ;;  %v670_v61 = vadd.f32 %v3583_v29, %v649_v4  ;;  %v650_v15 = vadd.f32 %v3581_v47, %v629_v23  ;;  %v1472_v47 = vmul.f32 %v3385_v19, %v1471_v1  ;;  %v1499_v23 = vrot.slane %v1493_v3, 5 }
 0x193   : > { %v1495_v63 = vmul.f32 %v3454_v17, %v1492_v18  ;;  %v1514_v53 = vmul.f32 %v3385_v19, %v1513_v39 }
 0x194   : > { %v3652_v57 = vpop.permute.xlu1 %729  ;;  %v3654_v6 = vpop.permute.xlu0 %776  ;;  %v691_v5 = vadd.f32 %v3604_v13, %v670_v61  ;;  %v671_v32 = vadd.f32 %v3602_v20, %v650_v15  ;;  %v1473_v13 = vmul.f32 %v3390_v50, %v1471_v1  ;;  %v1516_v1 = vmul.f32 %v3485_v2, %v1513_v39 }
 0x195   : > { %v1502_v30 = vrot.slane %v1495_v63, 5  ;;  %v1534_v15 = vstv %s3710_s5  ;;  %v1576_v63 = vstv %s3750_s7  ;;  %s3923_s5 = sld [smem:[#allocation3 + $0x14]]  ;;  %s2624_s7 = smov 122  }
 0x196   : > { %1399 = vrot.lane.b32.xlu0 %v1396_v24, %s2622_s30  ;;  %1380 = vrot.lane.b32.xlu1 %v1377_v11, %s2622_s30  ;;  %v712_v0 = vadd.f32 %v3617_v38, %v691_v5  ;;  %v692_v56 = vadd.f32 %v3615_v46, %v671_v32  ;;  %v1440_v38 = vsel %vm323_vm5, %v1437_v14, %v1439_v60  ;;  %v1460_v11 = vrot.slane %v1453_v40, 4 }
 0x197   : > { %v1459_v24 = vsel %vm358_vm6, %v1457_v31, %v1458_v51  ;;  %v1478_v46 = vrot.slane %v1472_v47, 4  ;;  %v1479_v54 = vrot.slane %v1473_v13, 4  ;;  %v1536_v60 = vmul.f32 %v3417_v21, %v1534_v15 }
 0x198   : > { %v3669_v35 = vpop.permute.xlu1 %778  ;;  %v3671_v44 = vpop.permute.xlu0 %797  ;;  %v733_v37 = vadd.f32 %v3637_v28, %v712_v0  ;;  %v713_v27 = vadd.f32 %v3635_v7, %v692_v56  ;;  %v1494_v28 = vmul.f32 %v3417_v21, %v1492_v18  ;;  %v1461_v4 = vsel %vm358_vm6, %v1458_v51, %v1460_v11 }
 0x199   : > { %v1480_v26 = vsel %vm358_vm6, %v1478_v46, %v1479_v54  ;;  %v1535_v40 = vmul.f32 %v3368_v8, %v1534_v15  ;;  %v1523_v13 = vrot.slane %v1516_v1, 5  ;;  %v1537_v31 = vmul.f32 %v3454_v17, %v1534_v15 }
 0x19a   : > { %1420 = vrot.lane.b32.xlu0 %v1417_v59, %s2622_s30  ;;  %1401 = vrot.lane.b32.xlu1 %v1398_v36, %s2622_s30  ;;  %v747_v9 = vadd.f32 %v3253_v45, %v733_v37  ;;  %v734_v16 = vadd.f32 %v3652_v57, %v713_v27  ;;  %v1500_v14 = vrot.slane %v1494_v28, 5  ;;  %v1515_v45 = vmul.f32 %v3390_v50, %v1513_v39 }
 0x19b   : > { %v1482_v36 = vsel %vm358_vm6, %v1479_v54, %v1481_v52  ;;  %v1542_v37 = vrot.slane %v1536_v60, 6  ;;  %v1544_v46 = vrot.slane %v1537_v31, 6 }
 0x19c   : > { %v3688_v29 = vpop.permute.xlu1 %799  ;;  %v3690_v55 = vpop.permute.xlu0 %818  ;;  %v761_v57 = vadd.f32 %v3286_v42, %v747_v9  ;;  %v748_v49 = vadd.f32 %v3284_v41, %v734_v16  ;;  %v1501_v5 = vsel %vm393_vm7, %v1499_v23, %v1500_v14  ;;  %v1555_v41 = vstv %s3717_s6  ;;  %s3928_s6 = sld [smem:[#allocation3 + $0x45]] }
 0x19d   : > { %v1503_v47 = vsel %vm393_vm7, %v1500_v14, %v1502_v30  ;;  %v1556_v18 = vmul.f32 %v3385_v19, %v1555_v41  ;;  %v1558_v54 = vmul.f32 %v3485_v2, %v1555_v41  ;;  %v1545_v52 = vsel %vm428_vm8, %v1542_v37, %v1544_v46 }
 0x19e   : > { %1422 = vrot.lane.b32.xlu1 %v1419_v22, %s2622_s30  ;;  %1441 = vrot.lane.b32.xlu0 %v1438_v62, %s2622_s30  ;;  %v1520_v22 = vrot.slane %v1514_v53, 5  ;;  %v1521_v62 = vrot.slane %v1515_v45, 5  ;;  %v762_v42 = vadd.f32 %v3314_v48, %v748_v49  ;;  %v782_v51 = vadd.f32 %v3654_v6, %v761_v57 }
 0x19f   : > { %v1557_v48 = vmul.f32 %v3390_v50, %v1555_v41  ;;  %v1562_v39 = vrot.slane %v1556_v18, 6  ;;  %v1565_v53 = vrot.slane %v1558_v54, 6  ;;  %v1577_v49 = vmul.f32 %v3368_v8, %v1576_v63 }
 0x1a0   : > { %v3703_v25 = vpop.permute.xlu1 %820  ;;  %v3705_v20 = vpop.permute.xlu0 %839  ;;  %v1522_v56 = vsel %vm393_vm7, %v1520_v22, %v1521_v62  ;;  %v783_v6 = vadd.f32 %v3669_v35, %v762_v42  ;;  %v1524_v27 = vsel %vm393_vm7, %v1521_v62, %v1523_v13  ;;  %v1590_v23 = vstv %s3763_s8  ;;  %s3951_s8 = sld [smem:[#allocation3 + $0x4c]] }
 0x1a1   : > { %v1591_v60 = vmul.f32 %v3385_v19, %v1590_v23 }
 0x1a2   : > { %1443 = vrot.lane.b32.xlu1 %v1440_v38, %s2622_s30  ;;  %1462 = vrot.lane.b32.xlu0 %v1459_v24, %s2622_s30  ;;  %v803_v38 = vadd.f32 %v3671_v44, %v782_v51  ;;  %v1541_v24 = vrot.slane %v1535_v40, 6  ;;  %v1563_v44 = vrot.slane %v1557_v48, 6  ;;  %v804_v9 = vadd.f32 %v3688_v29, %v783_v6 }
 0x1a3   : > { %v1592_v6 = vmul.f32 %v3390_v50, %v1590_v23 }
 0x1a4   : > { %v3722_v10 = vpop.permute.xlu1 %841  ;;  %v3724_v7 = vpop.permute.xlu0 %860  ;;  %v824_v28 = vadd.f32 %v3690_v55, %v803_v38  ;;  %v1543_v35 = vsel %vm428_vm8, %v1541_v24, %v1542_v37  ;;  %v825_v55 = vadd.f32 %v3703_v25, %v804_v9  ;;  %v1564_v14 = vsel %vm428_vm8, %v1562_v39, %v1563_v44 }
 0x1a5   : > { %v1604_v25 = vstv %s3759_s24  ;;  %v1566_v1 = vsel %vm428_vm8, %v1563_v44, %v1565_v53  ;;  %s3948_s24 = sld [smem:[#allocation3 + $0x1b]] }
 0x1a6   : > { %1464 = vrot.lane.b32.xlu1 %v1461_v4, %s2622_s30  ;;  %1483 = vrot.lane.b32.xlu0 %v1480_v26, %s2622_s30  ;;  %v845_v16 = vadd.f32 %v3705_v20, %v824_v28  ;;  %v846_v29 = vadd.f32 %v3722_v10, %v825_v55  ;;  %v1606_v15 = vmul.f32 %v3417_v21, %v1604_v25 }
 0x1a7   : > { %v1607_v41 = vmul.f32 %v3454_v17, %v1604_v25 }
 0x1a8   : > { %v3735_v61 = vpop.permute.xlu1 %862  ;;  %v882_v59 = vpop.permute.xlu0 %881  ;;  %v866_v26 = vadd.f32 %v3724_v7, %v845_v16 }
 0x1a9   : > { %v867_v7 = vadd.f32 %v3735_v61, %v846_v29  ;;  %v1578_v61 = vmul.f32 %v3417_v21, %v1576_v63  ;;  %v1614_v38 = vrot.slane %v1607_v41, 1 }
 0x1aa   : > { %1485 = vrot.lane.b32.xlu1 %v1482_v36, %s2622_s30  ;;  %1504 = vrot.lane.b32.xlu0 %v1501_v5, %s2622_s30  ;;  %v887_v20 = vadd.f32 %v882_v59, %v866_v26  ;;  %v1625_v36 = vstv %s2363_s3  ;;  %v1605_v5 = vmul.f32 %v3368_v8, %v1604_v25  ;;  %s2382_s3 = sld [smem:[#allocation3 + $0x22]] }
 0x1ab   : > { %v1626_v42 = vmul.f32 %v3385_v19, %v1625_v36  ;;  %v1628_v37 = vmul.f32 %v3485_v2, %v1625_v36 }
 0x1ac   : > { %v884_v32 = vpop.permute.xlu1 %883  ;;  %v903_v0 = vpop.permute.xlu0 %902 }
 0x1ad   : > { %v908_v30 = vadd.f32 %v903_v0, %v887_v20  ;;  %v888_v10 = vadd.f32 %v884_v32, %v867_v7  ;;  %v1612_v0 = vrot.slane %v1606_v15, 1  ;;  %v1646_v32 = vstv %s3778_s14  ;;  %s3971_s14 = sld [smem:[#allocation3 + $0x53]] }
 0x1ae   : > { %1506 = vrot.lane.b32.xlu1 %v1503_v47, %s2622_s30  ;;  %1525 = vrot.lane.b32.xlu0 %v1522_v56, %s2622_s30  ;;  %v1627_v47 = vmul.f32 %v3390_v50, %v1625_v36  ;;  %v1611_v56 = vrot.slane %v1605_v5, 1  ;;  %v1632_v24 = vrot.slane %v1626_v42, 1  ;;  %v1647_v28 = vmul.f32 %v3368_v8, %v1646_v32 }
 0x1af   : > { %v1635_v9 = vrot.slane %v1628_v37, 1  ;;  %v1649_v63 = vmul.f32 %v3454_v17, %v1646_v32 }
 0x1b0   : > { %v905_v11 = vpop.permute.xlu1 %904  ;;  %v924_v12 = vpop.permute.xlu0 %923  ;;  %v1613_v46 = vsel %vm253_vm3, %v1611_v56, %v1612_v0  ;;  %v1633_v54 = vrot.slane %v1627_v47, 1  ;;  %v1653_v29 = vrot.slane %v1647_v28, 2 }
 0x1b1   : > { %v929_v59 = vadd.f32 %v924_v12, %v908_v30  ;;  %v909_v51 = vadd.f32 %v905_v11, %v888_v10  ;;  %v1648_v11 = vmul.f32 %v3417_v21, %v1646_v32  ;;  %v1656_v36 = vrot.slane %v1649_v63, 2 }
 0x1b2   : > { %1527 = vrot.lane.b32.xlu1 %v1524_v27, %s2622_s30  ;;  %1546 = vrot.lane.b32.xlu0 %v1543_v35, %s2622_s30  ;;  %v1667_v35 = vstv %s3789_s1  ;;  %v1634_v26 = vsel %vm253_vm3, %v1632_v24, %v1633_v54  ;;  %v1688_v30 = vstv %s3803_s11  ;;  %s3985_s1 = sld [smem:[#allocation3 + $0x5a]]  ;;  %s2386_s11 = sld [smem:[#allocation3 + $0x30]] }
 0x1b3   : > { %v1669_v53 = vmul.f32 %v3390_v50, %v1667_v35  ;;  %v1670_v7 = vmul.f32 %v3485_v2, %v1667_v35  ;;  %v1690_v10 = vmul.f32 %v3417_v21, %v1688_v30  ;;  %v1691_v41 = vmul.f32 %v3454_v17, %v1688_v30 }
 0x1b4   : > { %v926_v3 = vpop.permute.xlu1 %925  ;;  %v945_v4 = vpop.permute.xlu0 %944  ;;  %v1772_v63 = vstv %s3843_s29 }
 0x1b5   : > { %v950_v40 = vadd.f32 %v945_v4, %v929_v59  ;;  %v930_v13 = vadd.f32 %v926_v3, %v909_v51  ;;  %v1615_v4 = vsel %vm253_vm3, %v1612_v0, %v1614_v38  ;;  %v1675_v15 = vrot.slane %v1669_v53, 2 }
 0x1b6   : > { %1548 = vrot.lane.b32.xlu1 %v1545_v52, %s2622_s30  ;;  %1567 = vrot.lane.b32.xlu0 %v1564_v14, %s2622_s30  ;;  %v1654_v52 = vrot.slane %v1648_v11, 2  ;;  %v1668_v14 = vmul.f32 %v3385_v19, %v1667_v35  ;;  %v1709_v59 = vstv %s3806_s18  ;;  %v1696_v0 = vrot.slane %v1690_v10, 3  ;;  %s4008_s18 = sld [smem:[#allocation3 + $0x61]] }
 0x1b7   : > { %v1710_v42 = vmul.f32 %v3385_v19, %v1709_v59  ;;  %v1711_v47 = vmul.f32 %v3390_v50, %v1709_v59  ;;  %v1775_v10 = vmul.f32 %v3454_v17, %v1772_v63 }
 0x1b8   : > { %v947_v45 = vpop.permute.xlu1 %946  ;;  %v966_v57 = vpop.permute.xlu0 %965  ;;  %v1655_v25 = vsel %vm288_vm4, %v1653_v29, %v1654_v52  ;;  %v1657_v51 = vsel %vm288_vm4, %v1654_v52, %v1656_v36 }
 0x1b9   : > { %v971_v31 = vadd.f32 %v966_v57, %v950_v40  ;;  %v951_v12 = vadd.f32 %v947_v45, %v930_v13  ;;  %v1636_v57 = vsel %vm253_vm3, %v1633_v54, %v1635_v9  ;;  %v1717_v24 = vrot.slane %v1711_v47, 3 }
 0x1ba   : > { %1569 = vrot.lane.b32.xlu1 %v1566_v1, %s2622_s30  ;;  %1581 = vrot.lane.b32.xlu0 %v1577_v49, %s2623_s0  ;;  %v1674_v1 = vrot.slane %v1668_v14, 2  ;;  %s3851_s30 = sld [smem:[#allocation3 + $0x59]]  ;;  %v1782_v47 = vrot.slane %v1775_v10, 5 }
 0x1bc   : > { %v968_v22 = vpop.permute.xlu1 %967  ;;  %v987_v62 = vpop.permute.xlu0 %986  ;;  %v1676_v40 = vsel %vm288_vm4, %v1674_v1, %v1675_v15  ;;  %v3875_v1 = vld [vmem:[#allocation2] sm:$0xff] }
 0x1bd   : > { %v992_v27 = vadd.f32 %v987_v62, %v971_v31  ;;  %v972_v39 = vadd.f32 %v968_v22, %v951_v12  ;;  %v1689_v22 = vmul.f32 %v3368_v8, %v1688_v30  ;;  %v1751_v12 = vstv %s3828_s16  ;;  %s4147_s16 = sshll.u32 %s2775_s28, 6 }
 0x1be   : > { %1583 = vrot.lane.b32.xlu1 %v1578_v61, %s2623_s0  ;;  %1595 = vrot.lane.b32.xlu0 %v1591_v60, %s2623_s0  ;;  %v1677_v60 = vrot.slane %v1670_v7, 2  ;;  %v1753_v9 = vmul.f32 %v3390_v50, %v1751_v12  ;;  %s173_s29 = scalar_lea.vmem [#allocation8], %s4147_s16 }
 0x1bf   : > { %v1695_v13 = vrot.slane %v1689_v22, 3  ;;  %v3880_v22 = vld [vmem:[#allocation2 + $0x18] sm:$0xff] }
 0x1c0   : > { %v989_v18 = vpop.permute.xlu1 %988  ;;  %v1008_v48 = vpop.permute.xlu0 %1007  ;;  %v1678_v37 = vsel %vm288_vm4, %v1675_v15, %v1677_v60  ;;  %v1793_v36 = vstv %s3851_s30  ;;  %v1773_v15 = vmul.f32 %v3875_v1, %v1772_v63  ;;  %s2189_s30 = sshll.u32 %s173_s29, 4  ;;  %s4067_s30 = int_to_ptr.vmem [resolvable:$true] %s2189_s30 }
 0x1c1   : > { %v1013_v44 = vadd.f32 %v1008_v48, %v992_v27  ;;  %v993_v55 = vadd.f32 %v989_v18, %v972_v39  ;;  %v1698_v18 = vrot.slane %v1691_v41, 3  ;;  %v1716_v48 = vrot.slane %v1710_v42, 3 }
 0x1c2   : > { %1597 = vrot.lane.b32.xlu1 %v1592_v6, %s2623_s0  ;;  %1616 = vrot.lane.b32.xlu0 %v1613_v46, %s2623_s0  ;;  %v1730_v6 = vstv %s3824_s27  ;;  %v1697_v38 = vsel %vm323_vm5, %v1695_v13, %v1696_v0  ;;  %s2408_s27 = sshll.u32 %s2664_s13, 10 }
 0x1c3   : > { %v1027_v20 = vadd.f32 %v3316_v58, %v1013_v44  ;;  %v1732_v11 = vmul.f32 %v3417_v21, %v1730_v6  ;;  %v1731_v54 = vmul.f32 %v3368_v8, %v1730_v6  ;;  %v1733_v39 = vmul.f32 %v3454_v17, %v1730_v6  ;;  %s4065_s13 = scalar_lea.hbm %s4117_s2, %s2408_s27 }
 0x1c4   : > { %v1010_v16 = vpop.permute.xlu1 %1009  ;;  %v1057_v3 = vpop.permute.xlu0 %1056  ;;  %v1752_v44 = vmul.f32 %v3385_v19, %v1751_v12  ;;  %v1754_v19 = vmul.f32 %v3485_v2, %v1751_v12  ;;  %v1835_v12 = vstv %s3873_s4 }
 0x1c5   : > { %v1014_v45 = vadd.f32 %v1010_v16, %v993_v55  ;;  %v1041_v58 = vadd.f32 %v3350_v34, %v1027_v20  ;;  %v1738_v52 = vrot.slane %v1732_v11, 4  ;;  %v1737_v14 = vrot.slane %v1731_v54, 4 }
 0x1c6   : > { %1618 = vrot.lane.b32.xlu1 %v1615_v4, %s2623_s0  ;;  %1637 = vrot.lane.b32.xlu0 %v1634_v26, %s2623_s0  ;;  %v1718_v4 = vsel %vm323_vm5, %v1716_v48, %v1717_v24  ;;  %v1740_v29 = vrot.slane %v1733_v39, 4  ;;  %v1758_v20 = vrot.slane %v1752_v44, 4  ;;  %v3902_v39 = vld [vmem:[#allocation2 + $0x10] sm:$0x3f] }
 0x1c7   : > { %v1028_v5 = vadd.f32 %v3348_v33, %v1014_v45  ;;  %v1712_v33 = vmul.f32 %v3485_v2, %v1709_v59  ;;  %v1062_v32 = vadd.f32 %v1057_v3, %v1041_v58  ;;  %v1699_v3 = vsel %vm323_vm5, %v1696_v0, %v1698_v18 }
 0x1c8   : > { %v1059_v49 = vpop.permute.xlu1 %1058  ;;  %v1078_v23 = vpop.permute.xlu0 %1077  ;;  %v1759_v45 = vrot.slane %v1753_v9, 4  ;;  %v1741_v58 = vsel %vm358_vm6, %v1738_v52, %v1740_v29  ;;  %v1779_v0 = vrot.slane %v1773_v15, 5 }
 0x1c9   : > { %v1042_v34 = vadd.f32 %v3379_v43, %v1028_v5  ;;  %v1719_v43 = vrot.slane %v1712_v33, 3  ;;  %v1083_v46 = vadd.f32 %v1078_v23, %v1062_v32  ;;  %v1761_v5 = vrot.slane %v1754_v19, 4 }
 0x1ca   : > { %1639 = vrot.lane.b32.xlu1 %v1636_v57, %s2623_s0  ;;  %1658 = vrot.lane.b32.xlu0 %v1655_v25, %s2623_s0  ;;  %v1774_v57 = vmul.f32 %v3417_v21, %v1772_v63  ;;  %v1739_v25 = vsel %vm358_vm6, %v1737_v14, %v1738_v52  ;;  %v1814_v33 = vstv %s3866_s17  ;;  %v1838_v19 = vmul.f32 %v3485_v2, %v1835_v12 }
 0x1cb   : > { %v1063_v27 = vadd.f32 %v1059_v49, %v1042_v34  ;;  %v1720_v8 = vsel %vm323_vm5, %v1717_v24, %v1719_v43  ;;  %v1815_v11 = vmul.f32 %v3875_v1, %v1814_v33  ;;  %v1817_v44 = vmul.f32 %v3902_v39, %v1814_v33 }
 0x1cc   : > { %v1080_v62 = vpop.permute.xlu1 %1079  ;;  %v1099_v61 = vpop.permute.xlu0 %1098 }
 0x1cd   : > { %v1104_v16 = vadd.f32 %v1099_v61, %v1083_v46  ;;  %v1084_v55 = vadd.f32 %v1080_v62, %v1063_v27  ;;  %v1794_v62 = vmul.f32 %v3880_v22, %v1793_v36  ;;  %v3883_v61 = vld [vmem:[#allocation2 + $0x20] sm:$0xff]  ;;  %v1821_v52 = vrot.slane %v1815_v11, 6 }
 0x1ce   : > { %1660 = vrot.lane.b32.xlu1 %v1657_v51, %s2623_s0  ;;  %1679 = vrot.lane.b32.xlu0 %v1676_v40, %s2623_s0  ;;  %v1795_v60 = vmul.f32 %v3883_v61, %v1793_v36  ;;  %v1760_v51 = vsel %vm358_vm6, %v1758_v20, %v1759_v45  ;;  %v1780_v40 = vrot.slane %v1774_v57, 5  ;;  %v1824_v14 = vrot.slane %v1817_v44, 6 }
 0x1cf   : > { %v1800_v13 = vrot.slane %v1794_v62, 5 }
 0x1d0   : > { %v1101_v31 = vpop.permute.xlu1 %1100  ;;  %v1120_v56 = vpop.permute.xlu0 %1119  ;;  %v1781_v24 = vsel %vm393_vm7, %v1779_v0, %v1780_v40  ;;  %v1783_v43 = vsel %vm393_vm7, %v1780_v40, %v1782_v47 }
 0x1d1   : > { %v1125_v26 = vadd.f32 %v1120_v56, %v1104_v16  ;;  %v1105_v49 = vadd.f32 %v1101_v31, %v1084_v55  ;;  %v1801_v31 = vrot.slane %v1795_v60, 5  ;;  %v1796_v56 = vmul.f32 %v3485_v2, %v1793_v36 }
 0x1d2   : > { %1681 = vrot.lane.b32.xlu1 %v1678_v37, %s2623_s0  ;;  %1700 = vrot.lane.b32.xlu0 %v1697_v38, %s2623_s0  ;;  %v3891_v37 = vld [vmem:[#allocation2 + $0x8] sm:$0xff]  ;;  %v1762_v38 = vsel %vm358_vm6, %v1759_v45, %v1761_v5 }
 0x1d3   : > { %v1816_v18 = vmul.f32 %v3891_v37, %v1814_v33  ;;  %v1802_v54 = vsel %vm393_vm7, %v1800_v13, %v1801_v31 }
 0x1d4   : > { %v1122_v28 = vpop.permute.xlu1 %1121  ;;  %v1141_v35 = vpop.permute.xlu0 %1140 }
 0x1d5   : > { %v1146_v23 = vadd.f32 %v1141_v35, %v1125_v26  ;;  %v1126_v7 = vadd.f32 %v1122_v28, %v1105_v49  ;;  %v1803_v28 = vrot.slane %v1796_v56, 5  ;;  %v1822_v35 = vrot.slane %v1816_v18, 6 }
 0x1d6   : > { %1702 = vrot.lane.b32.xlu1 %v1699_v3, %s2623_s0  ;;  %1721 = vrot.lane.b32.xlu0 %v1718_v4, %s2623_s0  ;;  %v1836_v3 = vmul.f32 %v3880_v22, %v1835_v12  ;;  %v1837_v4 = vmul.f32 %v3883_v61, %v1835_v12  ;;  %v1845_v49 = vrot.slane %v1838_v19, 6 }
 0x1d7   : > { %v1804_v55 = vsel %vm393_vm7, %v1801_v31, %v1803_v28  ;;  %v1823_v26 = vsel %vm428_vm8, %v1821_v52, %v1822_v35  ;;  %v1825_v2 = vsel %vm428_vm8, %v1822_v35, %v1824_v14 }
 0x1d8   : > { %v1143_v50 = vpop.permute.xlu1 %1142  ;;  %v1162_v53 = vpop.permute.xlu0 %1161  ;;  %v1842_v29 = vrot.slane %v1836_v3, 6  ;;  %v1843_v20 = vrot.slane %v1837_v4, 6 }
 0x1d9   : > { %v1167_v30 = vadd.f32 %v1162_v53, %v1146_v23  ;;  %v1147_v41 = vadd.f32 %v1143_v50, %v1126_v7  ;;  %v1856_v23 = vstv %s3905_s25  ;;  %s2541_s25 = scalar_lea.vmem %s4067_s30, 1024 }
 0x1da   : > { %1723 = vrot.lane.b32.xlu1 %v1720_v8, %s2623_s0  ;;  %1742 = vrot.lane.b32.xlu0 %v1739_v25, %s2623_s0  ;;  %v1844_v7 = vsel %vm428_vm8, %v1842_v29, %v1843_v20  ;;  %v1846_v10 = vsel %vm428_vm8, %v1843_v20, %v1845_v49  ;;  %p2542_p12 = scmp.ne.s32.totalorder %s4067_s30, %s2541_s25 }
 0x1dc   : > { %v1164_v21 = vpop.permute.xlu1 %1163  ;;  %v1183_v59 = vpop.permute.xlu0 %1182  ;;  %p2543_p7 = pnand %p2542_p12, %p4148_p13 }
 0x1dd   : > { %v1188_v42 = vadd.f32 %v1183_v59, %v1167_v30  ;;  %v1168_v17 = vadd.f32 %v1164_v21, %v1147_v41  ;;  %v1857_v21 = vmul.f32 %v3875_v1, %v1856_v23  ;;  %v1870_v59 = vstv %s3914_s20  ;;  %s2625_s20 = smov [#allocation8]  }
 0x1de   : > { %1744 = vrot.lane.b32.xlu1 %v1741_v58, %s2623_s0  ;;  %1763 = vrot.lane.b32.xlu0 %v1760_v51, %s2623_s0  ;;  %v1884_v58 = vstv %s2376_s23  ;;  %v1905_v41 = vstv %s2377_s19  ;;  %v1871_v0 = vmul.f32 %v3880_v22, %v1870_v59  ;;  %v1872_v56 = vmul.f32 %v3883_v61, %v1870_v59  ;;  %p2544_p3 = pneg %p2543_p7  ;;  %s2545_s23 = sshll.u32 %s2625_s20, 4  ;;  %s2546_s23 = int_to_ptr.vmem [resolvable:$false] %s2545_s23 }
 0x1df   : > { %v1886_v60 = vmul.f32 %v3891_v37, %v1884_v58  ;;  %v1887_v47 = vmul.f32 %v3902_v39, %v1884_v58  ;;  %v1906_v33 = vmul.f32 %v3880_v22, %v1905_v41  ;;  %v1907_v31 = vmul.f32 %v3883_v61, %v1905_v41  ;;  %s2547_s19 = scalar_lea.vmem %s2546_s23, 2048  ;;  %p2548_p6 = scmp.lt.s32.totalorder %s4067_s30, %s2546_s23 }
 0x1e0   : > { %v1185_v34 = vpop.permute.xlu1 %1184  ;;  %v1204_v32 = vpop.permute.xlu0 %1203  ;;  %p2549_p4 = scmp.lt.s32.totalorder %s2547_s19, %s2541_s25 }
 0x1e1   : > { %v1189_v48 = vadd.f32 %v1185_v34, %v1168_v17  ;;  %v1209_v6 = vadd.f32 %v1204_v32, %v1188_v42  ;;  %v1885_v42 = vmul.f32 %v3875_v1, %v1884_v58  ;;  %v1858_v17 = vmul.f32 %v3891_v37, %v1856_v23 }
 0x1e2   : > { %1765 = vrot.lane.b32.xlu1 %v1762_v38, %s2623_s0  ;;  %1784 = vrot.lane.b32.xlu0 %v1781_v24, %s2623_s0  ;;  %v1892_v13 = vrot.slane %v1886_v60, 1  ;;  %v1926_v38 = vstv %s3923_s5  ;;  %v1894_v12 = vrot.slane %v1887_v47, 1  ;;  %v1913_v44 = vrot.slane %v1907_v31, 1  ;;  %p2550_p5 = por %p2549_p4, %p2548_p6 }
 0x1e3   : > { %v1891_v18 = vrot.slane %v1885_v42, 1  ;;  %v1929_v3 = vmul.f32 %v3902_v39, %v1926_v38 }
 0x1e4   : > { %v1206_v27 = vpop.permute.xlu1 %1205  ;;  %v1225_v46 = vpop.permute.xlu0 %1224  ;;  %v1895_v19 = vsel %vm253_vm3, %v1892_v13, %v1894_v12  ;;  %p2551_p0 = pnand %p2550_p5, %p2544_p3 }
 0x1e5   : > { %v1210_v9 = vadd.f32 %v1206_v27, %v1189_v48  ;;  %v1230_v16 = vadd.f32 %v1225_v46, %v1209_v6  ;;  %v3942_v48 = vld [vmem:[#allocation2 + $0x28] sm:$0x3f]  ;;  %v1928_v27 = vmul.f32 %v3891_v37, %v1926_v38  ;;  %v1947_v46 = vstv %s3928_s6 }
 0x1e6   : > { %1786 = vrot.lane.b32.xlu1 %v1783_v43, %s2623_s0  ;;  %1805 = vrot.lane.b32.xlu0 %v1802_v54, %s2623_s0  ;;  %v1908_v6 = vmul.f32 %v3942_v48, %v1905_v41  ;;  %v1912_v43 = vrot.slane %v1906_v33, 1  ;;  %v1893_v35 = vsel %vm253_vm3, %v1891_v18, %v1892_v13  ;;  %v1936_v20 = vrot.slane %v1929_v3, 2 }
 0x1e8   : > { %v1227_v8 = vpop.permute.xlu1 %1226  ;;  %v1246_v63 = vpop.permute.xlu0 %1245 }
 0x1e9   : > { %v1231_v50 = vadd.f32 %v1227_v8, %v1210_v9  ;;  %v1251_v53 = vadd.f32 %v1246_v63, %v1230_v16  ;;  %v1927_v9 = vmul.f32 %v3875_v1, %v1926_v38  ;;  %v1915_v16 = vrot.slane %v1908_v6, 1 }
 0x1ea   : > { %1807 = vrot.lane.b32.xlu1 %v1804_v55, %s2623_s0  ;;  %1826 = vrot.lane.b32.xlu0 %v1823_v26, %s2623_s0  ;;  %v1934_v8 = vrot.slane %v1928_v27, 2  ;;  %v1948_v63 = vmul.f32 %v3880_v22, %v1947_v46  ;;  %v1949_v55 = vmul.f32 %v3883_v61, %v1947_v46  ;;  %v2031_v27 = vstv %s3971_s14 }
 0x1eb   : > { %v1916_v29 = vsel %vm253_vm3, %v1913_v44, %v1915_v16 }
 0x1ec   : > { %v1248_v45 = vpop.permute.xlu1 %1247  ;;  %v1267_v57 = vpop.permute.xlu0 %1266 }
 0x1ed   : > { %v1252_v25 = vadd.f32 %v1248_v45, %v1231_v50  ;;  %v1272_v36 = vadd.f32 %v1267_v57, %v1251_v53  ;;  %v1914_v50 = vsel %vm253_vm3, %v1912_v43, %v1913_v44  ;;  %v1933_v53 = vrot.slane %v1927_v9, 2 }
 0x1ee   : > { %1828 = vrot.lane.b32.xlu1 %v1825_v2, %s2623_s0  ;;  %1847 = vrot.lane.b32.xlu0 %v1844_v7, %s2623_s0  ;;  %v1950_v45 = vmul.f32 %v3942_v48, %v1947_v46  ;;  %v1968_v2 = vstv %s3948_s24 }
 0x1ef   : > { %v1935_v23 = vsel %vm288_vm4, %v1933_v53, %v1934_v8  ;;  %v1969_v59 = vmul.f32 %v3875_v1, %v1968_v2  ;;  %v1971_v60 = vmul.f32 %v3902_v39, %v1968_v2 }
 0x1f0   : > { %v1269_v30 = vpop.permute.xlu1 %1268  ;;  %v1288_v15 = vpop.permute.xlu0 %1287 }
 0x1f1   : > { %v1273_v5 = vadd.f32 %v1269_v30, %v1252_v25  ;;  %v1293_v62 = vadd.f32 %v1288_v15, %v1272_v36  ;;  %v1954_v25 = vrot.slane %v1948_v63, 2  ;;  %v1955_v36 = vrot.slane %v1949_v55, 2 }
 0x1f2   : > { %1849 = vrot.lane.b32.xlu1 %v1846_v10, %s2623_s0  ;;  %1861 = vrot.lane.b32.xlu0 %v1857_v21, %s2624_s7  ;;  %v1970_v15 = vmul.f32 %v3891_v37, %v1968_v2  ;;  %v1989_v10 = vstv %s3951_s8  ;;  %v1957_v21 = vrot.slane %v1950_v45, 2  ;;  %v1975_v47 = vrot.slane %v1969_v59, 3  ;;  %s3982_s0 = sld [smem:[#allocation3 + $0x29]] }
 0x1f3   : > { %v1990_v41 = vmul.f32 %v3880_v22, %v1989_v10  ;;  %v1991_v42 = vmul.f32 %v3883_v61, %v1989_v10  ;;  %v1992_v33 = vmul.f32 %v3942_v48, %v1989_v10  ;;  %v1978_v31 = vrot.slane %v1971_v60, 3 }
 0x1f4   : > { %v1290_v51 = vpop.permute.xlu1 %1289  ;;  %v1302_v40 = vpop.permute.xlu0 %1301  ;;  %v2073_v45 = vstv %s3985_s1 }
 0x1f5   : > { %v1294_v34 = vadd.f32 %v1290_v51, %v1273_v5  ;;  %v1307_v32 = vadd.f32 %v1302_v40, %v1293_v62  ;;  %v1937_v62 = vsel %vm288_vm4, %v1934_v8, %v1936_v20  ;;  %v1997_v18 = vrot.slane %v1991_v42, 3 }
 0x1f6   : > { %1863 = vrot.lane.b32.xlu1 %v1858_v17, %s2624_s7  ;;  %1875 = vrot.lane.b32.xlu0 %v1871_v0, %s2624_s7  ;;  %v1956_v17 = vsel %vm288_vm4, %v1954_v25, %v1955_v36  ;;  %v1976_v0 = vrot.slane %v1970_v15, 3  ;;  %v1999_v46 = vrot.slane %v1992_v33, 3  ;;  %v2033_v8 = vmul.f32 %v3883_v61, %v2031_v27 }
 0x1f7   : > { %v2075_v59 = vmul.f32 %v3883_v61, %v2073_v45 }
 0x1f8   : > { %v1304_v24 = vpop.permute.xlu1 %1303  ;;  %v1316_v11 = vpop.permute.xlu0 %1315  ;;  %v1977_v12 = vsel %vm323_vm5, %v1975_v47, %v1976_v0  ;;  %v2000_v55 = vsel %vm323_vm5, %v1997_v18, %v1999_v46  ;;  %v2039_v25 = vrot.slane %v2033_v8, 4 }
 0x1f9   : > { %v1308_v54 = vadd.f32 %v1304_v24, %v1294_v34  ;;  %v1321_v28 = vadd.f32 %v1316_v11, %v1307_v32  ;;  %v2010_v34 = vstv %s2382_s3  ;;  %v1958_v11 = vsel %vm288_vm4, %v1955_v36, %v1957_v21 }
 0x1fa   : > { %1877 = vrot.lane.b32.xlu1 %v1872_v56, %s2624_s7  ;;  %1896 = vrot.lane.b32.xlu0 %v1893_v35, %s2624_s7  ;;  %v1996_v56 = vrot.slane %v1990_v41, 3  ;;  %v2012_v6 = vmul.f32 %v3891_v37, %v2010_v34  ;;  %v2011_v43 = vmul.f32 %v3875_v1, %v2010_v34  ;;  %v1979_v35 = vsel %vm323_vm5, %v1976_v0, %v1978_v31 }
 0x1fb   : > { %v2013_v16 = vmul.f32 %v3902_v39, %v2010_v34  ;;  %v2074_v21 = vmul.f32 %v3880_v22, %v2073_v45  ;;  %v2081_v33 = vrot.slane %v2075_v59, 5  ;;  %v2094_v34 = vstv %s2386_s11 }
 0x1fc   : > { %v1318_v4 = vpop.permute.xlu1 %1317  ;;  %v1337_v52 = vpop.permute.xlu0 %1336  ;;  %v1998_v44 = vsel %vm323_vm5, %v1996_v56, %v1997_v18  ;;  %v2018_v9 = vrot.slane %v2012_v6, 4  ;;  %v2017_v63 = vrot.slane %v2011_v43, 4  ;;  %v2096_v56 = vmul.f32 %v3891_v37, %v2094_v34 }
 0x1fd   : > { %v1322_v26 = vadd.f32 %v1318_v4, %v1308_v54  ;;  %v1342_v14 = vadd.f32 %v1337_v52, %v1321_v28  ;;  %v2032_v52 = vmul.f32 %v3880_v22, %v2031_v27  ;;  %v2080_v47 = vrot.slane %v2074_v21, 5 }
 0x1fe   : > { %1898 = vrot.lane.b32.xlu1 %v1895_v19, %s2624_s7  ;;  %1917 = vrot.lane.b32.xlu0 %v1914_v50, %s2624_s7  ;;  %v2019_v53 = vsel %vm358_vm6, %v2017_v63, %v2018_v9  ;;  %v2115_v18 = vstv %s4008_s18  ;;  %v2095_v6 = vmul.f32 %v3875_v1, %v2094_v34 }
 0x200   : > { %v1339_v57 = vpop.permute.xlu1 %1338  ;;  %v1358_v49 = vpop.permute.xlu0 %1357 }
 0x201   : > { %v1343_v7 = vadd.f32 %v1339_v57, %v1322_v26  ;;  %v1363_v30 = vadd.f32 %v1358_v49, %v1342_v14  ;;  %v2034_v26 = vmul.f32 %v3942_v48, %v2031_v27  ;;  %v2052_v14 = vstv %s3982_s0 }
 0x202   : > { %1919 = vrot.lane.b32.xlu1 %v1916_v29, %s2624_s7  ;;  %1938 = vrot.lane.b32.xlu0 %v1935_v23, %s2624_s7  ;;  %v2020_v29 = vrot.slane %v2013_v16, 4  ;;  %v2054_v20 = vmul.f32 %v3891_v37, %v2052_v14  ;;  %v2038_v23 = vrot.slane %v2032_v52, 4  ;;  %v2053_v2 = vmul.f32 %v3875_v1, %v2052_v14 }
 0x203   : > { %v2041_v36 = vrot.slane %v2034_v26, 4  ;;  %v2055_v10 = vmul.f32 %v3902_v39, %v2052_v14  ;;  %v2097_v27 = vmul.f32 %v3902_v39, %v2094_v34  ;;  %v2116_v37 = vmul.f32 %v3880_v22, %v2115_v18 }
 0x204   : > { %v1360_v58 = vpop.permute.xlu1 %1359  ;;  %v1379_v5 = vpop.permute.xlu0 %1378  ;;  %v2021_v15 = vsel %vm358_vm6, %v2018_v9, %v2020_v29  ;;  %v2060_v60 = vrot.slane %v2054_v20, 5  ;;  %v2059_v42 = vrot.slane %v2053_v2, 5  ;;  %v2101_v1 = vrot.slane %v2095_v6, 6 }
 0x205   : > { %v1364_v51 = vadd.f32 %v1360_v58, %v1343_v7  ;;  %v1384_v40 = vadd.f32 %v1379_v5, %v1363_v30  ;;  %v2042_v41 = vsel %vm358_vm6, %v2039_v25, %v2041_v36  ;;  %v2062_v0 = vrot.slane %v2055_v10, 5 }
 0x206   : > { %1940 = vrot.lane.b32.xlu1 %v1937_v62, %s2624_s7  ;;  %1959 = vrot.lane.b32.xlu0 %v1956_v17, %s2624_s7  ;;  %v2040_v62 = vsel %vm358_vm6, %v2038_v23, %v2039_v25  ;;  %v2061_v31 = vsel %vm393_vm7, %v2059_v42, %v2060_v60  ;;  %v2104_v16 = vrot.slane %v2097_v27, 6  ;;  %v2118_v52 = vmul.f32 %v3942_v48, %v2115_v18 }
 0x208   : > { %v1381_v32 = vpop.permute.xlu1 %1380  ;;  %v1400_v13 = vpop.permute.xlu0 %1399 }
 0x209   : > { %v1385_v38 = vadd.f32 %v1381_v32, %v1364_v51  ;;  %v1405_v24 = vadd.f32 %v1400_v13, %v1384_v40  ;;  %v2076_v51 = vmul.f32 %v3942_v48, %v2073_v45 }
 0x20a   : > { %1961 = vrot.lane.b32.xlu1 %v1958_v11, %s2624_s7  ;;  %1980 = vrot.lane.b32.xlu0 %v1977_v12, %s2624_s7  ;;  %v2063_v11 = vsel %vm393_vm7, %v2060_v60, %v2062_v0  ;;  %v2082_v12 = vsel %vm393_vm7, %v2080_v47, %v2081_v33 }
 0x20b   : > { %v2083_v43 = vrot.slane %v2076_v51, 5 }
 0x20c   : > { %v1402_v54 = vpop.permute.xlu1 %1401  ;;  %v1421_v28 = vpop.permute.xlu0 %1420 }
 0x20d   : > { %v1406_v3 = vadd.f32 %v1402_v54, %v1385_v38  ;;  %v1426_v4 = vadd.f32 %v1421_v28, %v1405_v24  ;;  %v2102_v54 = vrot.slane %v2096_v56, 6  ;;  %v2117_v28 = vmul.f32 %v3883_v61, %v2115_v18 }
 0x20e   : > { %1982 = vrot.lane.b32.xlu1 %v1979_v35, %s2624_s7  ;;  %2001 = vrot.lane.b32.xlu0 %v1998_v44, %s2624_s7  ;;  %v2084_v9 = vsel %vm393_vm7, %v2081_v33, %v2083_v43 }
 0x20f   : > { %v2123_v39 = vrot.slane %v2117_v28, 6  ;;  %v2105_v8 = vsel %vm428_vm8, %v2102_v54, %v2104_v16 }
 0x210   : > { %v1423_v19 = vpop.permute.xlu1 %1422  ;;  %v1442_v50 = vpop.permute.xlu0 %1441 }
 0x211   : > { %v1427_v57 = vadd.f32 %v1423_v19, %v1406_v3  ;;  %v1447_v49 = vadd.f32 %v1442_v50, %v1426_v4  ;;  %v2103_v3 = vsel %vm428_vm8, %v2101_v1, %v2102_v54  ;;  %v2122_v4 = vrot.slane %v2116_v37, 6 }
 0x212   : > { %2003 = vrot.lane.b32.xlu1 %v2000_v55, %s2624_s7  ;;  %2022 = vrot.lane.b32.xlu0 %v2019_v53, %s2624_s7  ;;  %v2125_v55 = vrot.slane %v2118_v52, 6 }
 0x213   : > { %v2124_v63 = vsel %vm428_vm8, %v2122_v4, %v2123_v39 }
 0x214   : > { %v1444_v7 = vpop.permute.xlu1 %1443  ;;  %v1463_v30 = vpop.permute.xlu0 %1462  ;;  %v2126_v19 = vsel %vm428_vm8, %v2123_v39, %v2125_v55 }
 0x215   : > { %v1448_v58 = vadd.f32 %v1444_v7, %v1427_v57  ;;  %v1468_v5 = vadd.f32 %v1463_v30, %v1447_v49 }
 0x216   : > { %2024 = vrot.lane.b32.xlu1 %v2021_v15, %s2624_s7  ;;  %2043 = vrot.lane.b32.xlu0 %v2040_v62, %s2624_s7 }
 0x218   : > { %v1465_v40 = vpop.permute.xlu1 %1464  ;;  %v1484_v17 = vpop.permute.xlu0 %1483 }
 0x219   : > { %v1469_v32 = vadd.f32 %v1465_v40, %v1448_v58  ;;  %v4020_v13 = vadd.f32 %v1484_v17, %v1468_v5 }
 0x21a   : > { %2045 = vrot.lane.b32.xlu1 %v2042_v41, %s2624_s7  ;;  %2064 = vrot.lane.b32.xlu0 %v2061_v31, %s2624_s7 }
 0x21c   : > { %v1486_v38 = vpop.permute.xlu1 %1485  ;;  %v1505_v24 = vpop.permute.xlu0 %1504 }
 0x21d   : > { %v1490_v46 = vadd.f32 %v1486_v38, %v1469_v32  ;;  %v1510_v51 = vadd.f32 %v1505_v24, %v4020_v13 }
 0x21e   : > { %2066 = vrot.lane.b32.xlu1 %v2063_v11, %s2624_s7  ;;  %2085 = vrot.lane.b32.xlu0 %v2082_v12, %s2624_s7 }
 0x220   : > { %v1507_v35 = vpop.permute.xlu1 %1506  ;;  %v1526_v44 = vpop.permute.xlu0 %1525 }
 0x221   : > { %v1531_v0 = vadd.f32 %v1526_v44, %v1510_v51  ;;  %v1511_v47 = vadd.f32 %v1507_v35, %v1490_v46 }
 0x222   : > { %2087 = vrot.lane.b32.xlu1 %v2084_v9, %s2624_s7  ;;  %2106 = vrot.lane.b32.xlu0 %v2103_v3, %s2624_s7 }
 0x224   : > { %v1528_v22 = vpop.permute.xlu1 %1527  ;;  %v1547_v61 = vpop.permute.xlu0 %1546 }
 0x225   : > { %v1552_v33 = vadd.f32 %v1547_v61, %v1531_v0  ;;  %v1532_v31 = vadd.f32 %v1528_v22, %v1511_v47 }
 0x226   : > { %2108 = vrot.lane.b32.xlu1 %v2105_v8, %s2624_s7  ;;  %2127 = vrot.lane.b32.xlu0 %v2124_v63, %s2624_s7 }
 0x228   : > { %v1549_v26 = vpop.permute.xlu1 %1548  ;;  %v1568_v14 = vpop.permute.xlu0 %1567 }
 0x229   : > { %v1573_v56 = vadd.f32 %v1568_v14, %v1552_v33  ;;  %v1553_v18 = vadd.f32 %v1549_v26, %v1532_v31 }
 0x22a   : > { %2129 = vrot.lane.b32.xlu1 %v2126_v19, %s2624_s7 }
 0x22c   : > { %v1570_v48 = vpop.permute.xlu1 %1569  ;;  %v1582_v50 = vpop.permute.xlu0 %1581 }
 0x22d   : > { %v1587_v6 = vadd.f32 %v1582_v50, %v1573_v56  ;;  %v1574_v12 = vadd.f32 %v1570_v48, %v1553_v18 }
 0x230   : > { %v1584_v53 = vpop.permute.xlu1 %1583  ;;  %v1596_v29 = vpop.permute.xlu0 %1595 }
 0x231   : > { %v1601_v43 = vadd.f32 %v1596_v29, %v1587_v6  ;;  %v1588_v27 = vadd.f32 %v1584_v53, %v1574_v12 }
 0x234   : > { %v1598_v20 = vpop.permute.xlu1 %1597  ;;  %v1617_v45 = vpop.permute.xlu0 %1616 }
 0x235   : > { %v1622_v54 = vadd.f32 %v1617_v45, %v1601_v43  ;;  %v1602_v13 = vadd.f32 %v1598_v20, %v1588_v27 }
 0x238   : > { %v1619_v57 = vpop.permute.xlu1 %1618  ;;  %v1638_v49 = vpop.permute.xlu0 %1637 }
 0x239   : > { %v1643_v24 = vadd.f32 %v1638_v49, %v1622_v54  ;;  %v1623_v1 = vadd.f32 %v1619_v57, %v1602_v13 }
 0x23c   : > { %v1640_v23 = vpop.permute.xlu1 %1639  ;;  %v1659_v25 = vpop.permute.xlu0 %1658 }
 0x23d   : > { %v1664_v44 = vadd.f32 %v1659_v25, %v1643_v24  ;;  %v1644_v9 = vadd.f32 %v1640_v23, %v1623_v1 }
 0x240   : > { %v1661_v36 = vpop.permute.xlu1 %1660  ;;  %v1680_v2 = vpop.permute.xlu0 %1679 }
 0x241   : > { %v1685_v16 = vadd.f32 %v1680_v2, %v1664_v44  ;;  %v1665_v3 = vadd.f32 %v1661_v36, %v1644_v9 }
 0x244   : > { %v1682_v7 = vpop.permute.xlu1 %1681  ;;  %v1701_v30 = vpop.permute.xlu0 %1700 }
 0x245   : > { %v1706_v4 = vadd.f32 %v1701_v30, %v1685_v16  ;;  %v1686_v22 = vadd.f32 %v1682_v7, %v1665_v3 }
 0x248   : > { %v1703_v15 = vpop.permute.xlu1 %1702  ;;  %v1722_v10 = vpop.permute.xlu0 %1721 }
 0x249   : > { %v1727_v61 = vadd.f32 %v1722_v10, %v1706_v4  ;;  %v1707_v8 = vadd.f32 %v1703_v15, %v1686_v22 }
 0x24c   : > { %v1724_v21 = vpop.permute.xlu1 %1723  ;;  %v1743_v59 = vpop.permute.xlu0 %1742 }
 0x24d   : > { %v1748_v63 = vadd.f32 %v1743_v59, %v1727_v61  ;;  %v1728_v14 = vadd.f32 %v1724_v21, %v1707_v8 }
 0x250   : > { %v1745_v58 = vpop.permute.xlu1 %1744  ;;  %v1764_v5 = vpop.permute.xlu0 %1763 }
 0x251   : > { %v1769_v19 = vadd.f32 %v1764_v5, %v1748_v63  ;;  %v1749_v48 = vadd.f32 %v1745_v58, %v1728_v14 }
 0x254   : > { %v1766_v62 = vpop.permute.xlu1 %1765  ;;  %v1785_v60 = vpop.permute.xlu0 %1784 }
 0x255   : > { %v1790_v50 = vadd.f32 %v1785_v60, %v1769_v19  ;;  %v1770_v20 = vadd.f32 %v1766_v62, %v1749_v48  ;;  %v2147_v19 = vld [vmem:[%s2781_s26] sm:$0xff]  ;;  %v2390_v48 = vld [vmem:[%s2781_s26 + $0x10] sm:$0xff] }
 0x258   : > { %v1787_v41 = vpop.permute.xlu1 %1786  ;;  %v1806_v42 = vpop.permute.xlu0 %1805 }
 0x259   : > { %v1811_v45 = vadd.f32 %v1806_v42, %v1790_v50  ;;  %v1791_v57 = vadd.f32 %v1787_v41, %v1770_v20  ;;  %v2394_v50 = vld [vmem:[%s2781_s26 + $0x20] sm:$0xff]  ;;  %v2148_v20 = vld [vmem:[%s2781_s26 + $0x8] sm:$0xff] }
 0x25c   : > { %v1808_v40 = vpop.permute.xlu1 %1807  ;;  %v1827_v17 = vpop.permute.xlu0 %1826 }
 0x25d   : > { %v1832_v49 = vadd.f32 %v1827_v17, %v1811_v45  ;;  %v1812_v36 = vadd.f32 %v1808_v40, %v1791_v57 }
 0x260   : > { %v1829_v34 = vpop.permute.xlu1 %1828  ;;  %v1848_v32 = vpop.permute.xlu0 %1847 }
 0x261   : > { %v1853_v2 = vadd.f32 %v1848_v32, %v1832_v49  ;;  %v1833_v7 = vadd.f32 %v1829_v34, %v1812_v36  ;;  %v2395_v36 = vld [vmem:[%s2781_s26 + $0x28] sm:$0xff] }
 0x264   : > { %v1850_v38 = vpop.permute.xlu1 %1849  ;;  %v1862_v11 = vpop.permute.xlu0 %1861 }
 0x265   : > { %v1867_v30 = vadd.f32 %v1862_v11, %v1853_v2  ;;  %v1854_v59 = vadd.f32 %v1850_v38, %v1833_v7  ;;  %v2399_v2 = vld [vmem:[%s2781_s26 + $0x38] sm:$0xff] }
 0x268   : > { %v1864_v37 = vpop.permute.xlu1 %1863  ;;  %v1876_v28 = vpop.permute.xlu0 %1875 }
 0x269   : > { %v1881_v51 = vadd.f32 %v1876_v28, %v1867_v30  ;;  %v1868_v21 = vadd.f32 %v1864_v37, %v1854_v59 }
 0x26c   : > { %v1878_v46 = vpop.permute.xlu1 %1877  ;;  %v1897_v35 = vpop.permute.xlu0 %1896 }
 0x26d   : > { %v1902_v5 = vadd.f32 %v1897_v35, %v1881_v51  ;;  %v1882_v0 = vadd.f32 %v1878_v46, %v1868_v21 }
 0x270   : > { %v1899_v39 = vpop.permute.xlu1 %1898  ;;  %v1918_v52 = vpop.permute.xlu0 %1917 }
 0x271   : > { %v1923_v47 = vadd.f32 %v1918_v52, %v1902_v5  ;;  %v1903_v62 = vadd.f32 %v1899_v39, %v1882_v0 }
 0x274   : > { %v1920_v55 = vpop.permute.xlu1 %1919  ;;  %v1939_v26 = vpop.permute.xlu0 %1938 }
 0x275   : > { %v1944_v42 = vadd.f32 %v1939_v26, %v1923_v47  ;;  %v1924_v33 = vadd.f32 %v1920_v55, %v1903_v62 }
 0x278   : > { %v1941_v53 = vpop.permute.xlu1 %1940  ;;  %v1960_v29 = vpop.permute.xlu0 %1959 }
 0x279   : > { %v1965_v31 = vadd.f32 %v1960_v29, %v1944_v42  ;;  %v1945_v40 = vadd.f32 %v1941_v53, %v1924_v33  ;;  %v2398_v53 = vld [vmem:[%s2781_s26 + $0x30] sm:$0xff] }
 0x27c   : > { %v1962_v23 = vpop.permute.xlu1 %1961  ;;  %v1981_v25 = vpop.permute.xlu0 %1980 }
 0x27d   : > { %v1986_v32 = vadd.f32 %v1981_v25, %v1965_v31  ;;  %v1966_v18 = vadd.f32 %v1962_v23, %v1945_v40  ;;  %v2391_v25 = vld [vmem:[%s2781_s26 + $0x18] sm:$0xff]  ;;  %s2176_s26 = scalar_lea.sflag [#allocation5], %s2775_s28 }
 0x280   : > { %v1983_v15 = vpop.permute.xlu1 %1982  ;;  %v2002_v10 = vpop.permute.xlu0 %2001 }
 0x281   : > { %v2007_v6 = vadd.f32 %v2002_v10, %v1986_v32  ;;  %v1987_v38 = vadd.f32 %v1983_v15, %v1966_v18 }
 0x284   : > { %v2004_v58 = vpop.permute.xlu1 %2003  ;;  %v2023_v60 = vpop.permute.xlu0 %2022 }
 0x285   : > { %v2028_v11 = vadd.f32 %v2023_v60, %v2007_v6  ;;  %v2008_v27 = vadd.f32 %v2004_v58, %v1987_v38 }
 0x288   : > { %v2025_v41 = vpop.permute.xlu1 %2024  ;;  %v2044_v17 = vpop.permute.xlu0 %2043 }
 0x289   : > { %v2049_v54 = vadd.f32 %v2044_v17, %v2028_v11  ;;  %v2029_v37 = vadd.f32 %v2025_v41, %v2008_v27 }
 0x28c   : > { %v2046_v34 = vpop.permute.xlu1 %2045  ;;  %v2065_v56 = vpop.permute.xlu0 %2064 }
 0x28d   : > { %v2070_v28 = vadd.f32 %v2065_v56, %v2049_v54  ;;  %v2050_v1 = vadd.f32 %v2046_v34, %v2029_v37 }
 0x290   : > { %v2067_v12 = vpop.permute.xlu1 %2066  ;;  %v2086_v43 = vpop.permute.xlu0 %2085 }
 0x291   : > { %v2091_v44 = vadd.f32 %v2086_v43, %v2070_v28  ;;  %v2071_v46 = vadd.f32 %v2067_v12, %v2050_v1 }
 0x294   : > { %v2088_v13 = vpop.permute.xlu1 %2087  ;;  %v2107_v24 = vpop.permute.xlu0 %2106 }
 0x295   : > { %v2112_v35 = vadd.f32 %v2107_v24, %v2091_v44  ;;  %v2092_v3 = vadd.f32 %v2088_v13, %v2071_v46 }
 0x298   : > { %v2109_v9 = vpop.permute.xlu1 %2108  ;;  %v2128_v16 = vpop.permute.xlu0 %2127 }
 0x299   : > { %v2133_v4 = vadd.f32 %v2128_v16, %v2112_v35  ;;  %v2113_v39 = vadd.f32 %v2109_v9, %v2092_v3 }
 0x29b   : > { %v2388_v52 = vmul.f32 -1.442695, %v2133_v4 }
 0x29c   : > { %v2130_v22 = vpop.permute.xlu1 %2129 }
 0x29d   : > { %2478 = vpow2.f32 %v2388_v52  ;;  %v2134_v61 = vadd.f32 %v2130_v22, %v2113_v39 }
 0x29f   : > { %v2389_v8 = vmul.f32 -1.442695, %v2134_v61 }
 0x2a1   : > { %2480 = vpow2.f32 %v2389_v8 }
 0x2a7   : > { %v2479_v63 = vpop.eup %2478 }
 0x2a8   : > { %v2141_v55 = vadd.f32 1.0, %v2479_v63 }
 0x2aa   : > { %2482 = vrcp.f32 %v2141_v55 }
 0x2ab   : > { %v2481_v26 = vpop.eup %2480 }
 0x2ac   : > { %v2142_v14 = vadd.f32 1.0, %v2481_v26 }
 0x2ae   : > { %2484 = vrcp.f32 %v2142_v14 }
 0x2b4   : > { %v2483_v29 = vpop.eup %2482 }
 0x2b5   : > { %v2149_v45 = vmul.f32 %v2483_v29, %v2147_v19  ;;  %v2156_v57 = vmul.f32 %v2483_v29, %v2390_v48  ;;  %v2163_v49 = vmul.f32 %v2483_v29, %v2394_v50  ;;  %v2170_v23 = vmul.f32 %v2483_v29, %v2398_v53 }
 0x2b7   : > { %2152 = vst.msk [vmem:[%s173_s29] sm:$0xff] %vm2151_vm9, %v2149_v45  ;;  %2392 = vst.msk [vmem:[%s173_s29 + $0x10] sm:$0xff] %vm2151_vm9, %v2156_v57 }
 0x2b8   : > { %2396 = vst.msk [vmem:[%s173_s29 + $0x20] sm:$0xff] %vm2151_vm9, %v2163_v49  ;;  %2400 = vst.msk [vmem:[%s173_s29 + $0x30] sm:$0xff] %vm2151_vm9, %v2170_v23  ;;  %v2485_v7 = vpop.eup %2484 }
 0x2b9   : > { %v2150_v30 = vmul.f32 %v2485_v7, %v2148_v20  ;;  %v2157_v15 = vmul.f32 %v2485_v7, %v2391_v25  ;;  %v2164_v10 = vmul.f32 %v2485_v7, %v2395_v36  ;;  %v2171_v59 = vmul.f32 %v2485_v7, %v2399_v2 }
 0x2bb   : > { %2153 = vst.msk [vmem:[%s173_s29 + $0x8] sm:$0xff] %vm2151_vm9, %v2150_v30  ;;  %2393 = vst.msk [vmem:[%s173_s29 + $0x18] sm:$0xff] %vm2151_vm9, %v2157_v15 }
 0x2bc   : > { %2397 = vst.msk [vmem:[%s173_s29 + $0x28] sm:$0xff] %vm2151_vm9, %v2164_v10  ;;  %2401 = vst.msk [vmem:[%s173_s29 + $0x38] sm:$0xff] %vm2151_vm9, %v2171_v59 }
 0x2bd   : > { %2554 = shalt.err (!%p2551_p0)
}
 0x2be   : > { %s2555_s5 = scalar_lea.hbm %s4065_s13, 1024  ;;  %s2559_s24 = scalar_lea.hbm %s4117_s2, 2048 }
 0x2bf   : > { %p2556_p8 = scmp.ne.s32.totalorder %s4065_s13, %s2555_s5  ;;  %p2560_p1 = scmp.lt.u32.totalorder %s4065_s13, %s4117_s2 }
 0x2c0   : > { %p2561_p2 = scmp.lt.u32.totalorder %s2559_s24, %s2555_s5  ;;  %p2563_p12 = scmp.lt.u32.totalorder %s2555_s5, %s4065_s13 }
 0x2c1   : > { %p2557_p9 = pnand %p2556_p8, %p4148_p13 }
 0x2c2   : > { %p2562_p11 = por %p2561_p2, %p2560_p1 }
 0x2c3   : > { %p2558_p10 = pneg %p2557_p9 }
 0x2c4   : > { %p2564_p7 = por %p2563_p12, %p2562_p11 }
 0x2c6   : > { %p2565_p3 = pnand %p2564_p7, %p2558_p10 }
 0x2c8   : > { %2568 = shalt.err (!%p2565_p3)
}
 0x2c9   : > { %s2626_s14 = smov 128   ;;  %s2627_s0 = smov 8  }
 0x2ca   : > { %2415 = dma.vmem_to_hbm [thread:$0]  (%p4148_p13), %s4067_s30, 1024, %s4065_s13, %s2176_s26, %s2626_s14, %s2626_s14, %s2627_s0  }
 0x2cb PF: > { %s2204_s1 = sand.u32 1, %s2599_s9   ;;  %p4149_p6 = scmp.ne.s32.totalorder %s4134_s22, 0 }
 0x2cc   : > { %p4150_p4 = scmp.ge.s32.totalorder %s2611_s12, 2  ;;  %s2205_s11 = scalar_lea.sflag [#allocation5], %s2204_s1 }
 0x2ce   : > { %p2426_p5 = pnand %p4150_p4, %p4149_p6 }
 0x2d0   : > { %2594 = dma.done.wait (!%p2426_p5), %s2205_s11, 1024  }
 0x2d1   : > { %2596 = vsyncadd (!%p2426_p5), %s2205_s11, 4294966272  ;;  %s4151_s18 = sld [smem:[#allocation12_spill]]  ;;  %s4152_s11 = sld [smem:[#allocation13_spill]] }
 0x2d2   : > { %p16_p0 = scmp.ge.s32.totalorder %s2668_s15, 4   ;;  %s4153_s9 = smov %s2603_s10 }
 0x2d3   : > { %s4155_s12 = smov %s2668_s15 }
 0x2d4   :  { %18 = sbr.rel (!%p16_p0) target bundleno = 9 (0x9), region = 85 }
 0x2d7   : > { %s4154_s10 = smov %s4151_s18 }
 0x2db   :  { %2210 = vsyncpa [#allocation4], 1 }
 0x2dc   :  { %2212 = vsyncpa [#allocation4 + $0x1], 1 }
 0x2dd   :  { %2213 = vsyncpa [#allocation5], 1 }
 0x2de   :  { %2215 = vsyncpa [#allocation5 + $0x1], 1 }
 0x2df   :  { %2216 = vsyncpa [#allocation6], 1 }
 0x2e0   :  { %2218 = vsyncpa [#allocation6 + $0x1], 1 }

</bundles_post_ra>
